<compile_context>
chip_gen: v6e
topology: v6e:2x2x1
jax: 0.10.0
libtpu: 0.0.40
codegen_flags: <defaults>
</compile_context>

<pallas_src>
import functools

import numpy as np
import jax
import jax.numpy as jnp
from jax.experimental import pallas as pl
from jax.experimental.pallas import tpu as pltpu


def _round_up(x, m):
    return ((x + m - 1) // m) * m


# --------------------------------------------------------------------------
# Fused forward kernel: one grid step = one batch tile of B images.
# --------------------------------------------------------------------------
def _convnet_kernel(x_ref, m1_ref, b1_ref, m2_ref, b2_ref, w3_ref, b3_ref,
                    w4_ref, b4_ref, out_ref):
    B = x_ref.shape[1]
    f32 = jnp.float32
    bf16 = jnp.bfloat16

    x = x_ref[...]                                    # (28, B, 28) bf16, height-major

    # ---- conv1 (5x5, 1->10) as ONE banded matmul, K = 5*28 = 140 -----------
    # rows r = i*B + b (i = conv1 output row 0..23); weight lanes are
    # (delta | q | co) with output width j = 2q+delta, so the width half of the
    # 2x2 pool is a lane-aligned max of the two 128-wide column halves.
    slab1 = jnp.concatenate(
        [x[dh:dh + 24].reshape(24 * B, 28) for dh in range(5)], axis=1)
    y1 = jnp.dot(slab1, m1_ref[...], preferred_element_type=f32)   # (24B, 256)

    # ---- fused bias + ReLU + 2x2 max-pool, entirely in registers -----------
    v = jnp.maximum(jnp.maximum(y1[:, 0:128], y1[:, 128:256]) + b1_ref[...], 0.0)
    v4 = v.reshape(12, 2, B, 128)
    pooled = jnp.maximum(v4[:, 0], v4[:, 1])          # (12, B, 128) f32

    # ---- conv2 (3x3, 10->20) as ONE banded matmul, K = 3*128 = 384 ---------
    # Only the 10 valid output rows per image are computed (no garbage rows);
    # the lane concat is 128-aligned so it is free.
    pooled_bf = pooled.astype(bf16)
    slab2 = jnp.concatenate(
        [pooled_bf[dh2:dh2 + 10].reshape(10 * B, 128) for dh2 in range(3)],
        axis=1)                                       # (10B, 384) bf16
    y2 = jnp.dot(slab2, m2_ref[...], preferred_element_type=f32)   # (10B, 200)
    z = jnp.maximum(y2 + b2_ref[...], 0.0).astype(bf16).reshape(10, B, 200)

    # ---- fc1 (+ReLU): 10 full-M (B,200)x(200,500) dots, contiguous slices --
    # (w3 is pre-permuted so this contraction IS PyTorch's flatten + fc1.)
    acc = jnp.dot(z[0], w3_ref[0], preferred_element_type=f32)
    for p2 in range(1, 10):
        acc = acc + jnp.dot(z[p2], w3_ref[p2], preferred_element_type=f32)
    h = jnp.maximum(acc + b3_ref[...], 0.0)           # (B, 500) f32

    # ---- fc2 + log_softmax over a lane-dense 128-wide logits slab ----------
    # Pad lanes 10..127 carry a -1e9 bias, so their exp underflows to 0 and the
    # softmax normalizes over the 10 real classes only.
    logits = jnp.dot(h.astype(bf16), w4_ref[...],
                     preferred_element_type=f32) + b4_ref[...]     # (B, 128)
    m = jnp.max(logits, axis=1, keepdims=True)
    s = logits - m
    lse = jnp.log(jnp.sum(jnp.exp(s), axis=1, keepdims=True))
    out_ref[...] = (s - lse).astype(out_ref.dtype)


# --------------------------------------------------------------------------
# Wrapper: one pallas_call, batch-tiled grid, weights resident in VMEM.
# --------------------------------------------------------------------------
def _resident_spec(arr):
    if arr.ndim == 2:
        return pl.BlockSpec(arr.shape, lambda i: (0, 0))
    return pl.BlockSpec(arr.shape, lambda i: (0, 0, 0))


def convnet_forward(params, x, *, block_b=128):
    """x: (N, 1, 28, 28) float32 -> (N, 10) log-probabilities."""
    n = x.shape[0]
    assert x.shape[1:] == (1, 28, 28)

    # Effective batch tile: multiple of 8, no larger than the (padded) batch.
    bb = min(block_b, _round_up(n, 8))
    bb = max(8, (bb // 8) * 8)
    n_pad = _round_up(n, bb)

    x2 = x.reshape(n, 28, 28).astype(jnp.bfloat16)
    if n_pad != n:
        x2 = jnp.pad(x2, ((0, n_pad - n), (0, 0), (0, 0)))
    x2 = jnp.transpose(x2, (1, 0, 2))                 # (28, n_pad, 28), height-major

    weight_names = ("m1", "b1", "m2", "b2", "w3", "b3", "w4", "b4")
    in_specs = [pl.BlockSpec((28, bb, 28), lambda i: (0, i, 0))]
    for name in weight_names:
        in_specs.append(_resident_spec(params[name]))

    out = pl.pallas_call(
        _convnet_kernel,
        out_shape=jax.ShapeDtypeStruct((n_pad, 128), jnp.float32),
        grid_spec=pltpu.PrefetchScalarGridSpec(
            num_scalar_prefetch=0,
            grid=(n_pad // bb,),
            in_specs=in_specs,
            out_specs=pl.BlockSpec((bb, 128), lambda i: (i, 0)),
        ),
        compiler_params=pltpu.CompilerParams(
            dimension_semantics=("parallel",),
            vmem_limit_bytes=48 * 1024 * 1024),       # safe on v5e/v6e/v7x
    )(x2, *[params[name] for name in weight_names])

    return out[:n, :10]


# --------------------------------------------------------------------------
# One-time host-side weight packing (banded conv matrices, permuted fc1, bf16)
# --------------------------------------------------------------------------
def prepare_params(raw):
    w1 = np.asarray(raw["conv1_w"], np.float32)   # (10, 1, 5, 5)
    b1 = np.asarray(raw["conv1_b"], np.float32)
    w2 = np.asarray(raw["conv2_w"], np.float32)   # (20, 10, 3, 3)
    b2 = np.asarray(raw["conv2_b"], np.float32)
    fw1 = np.asarray(raw["fc1_w"], np.float32)    # (500, 2000)
    fb1 = np.asarray(raw["fc1_b"], np.float32)
    fw2 = np.asarray(raw["fc2_w"], np.float32)    # (10, 500)
    fb2 = np.asarray(raw["fc2_b"], np.float32)

    # conv1 banded matrix (fused over dh): rows = dh*28 + w,
    # cols = delta*128 + q*10 + co with output width j = 2q + delta.
    m1 = np.zeros((5, 28, 256), np.float32)
    for dh in range(5):
        for q in range(12):
            for delta in range(2):
                j = 2 * q + delta
                for dw in range(5):
                    col = delta * 128 + q * 10
                    m1[dh, j + dw, col:col + 10] = w1[:, 0, dh, dw]
    m1_cat = m1.reshape(140, 256)
    b1row = np.zeros((1, 128), np.float32)
    for q in range(12):
        b1row[0, q * 10:q * 10 + 10] = b1

    # conv2 banded matrix (fused over dh2): rows = dh2*128 + q*10 + ci,
    # cols = q2*20 + co2.
    m2 = np.zeros((3, 128, 200), np.float32)
    for dh2 in range(3):
        for q2 in range(10):
            for dw2 in range(3):
                q = q2 + dw2
                for ci in range(10):
                    m2[dh2, q * 10 + ci, q2 * 20:q2 * 20 + 20] = w2[:, ci, dh2, dw2]
    m2_cat = m2.reshape(384, 200)
    b2row = np.tile(b2, 10)[None].astype(np.float32)              # (1, 200)

    # fc1 pre-permuted to the kernel's (p2 | q2*20+co2) layout (the flatten).
    w3 = fw1.reshape(500, 20, 10, 10).transpose(2, 3, 1, 0).reshape(10, 200, 500)

    # fc2 padded to a lane-dense 128-wide logits slab; pad lanes get -1e9 bias.
    w4p = np.zeros((500, 128), np.float32)
    w4p[:, :10] = fw2.T
    b4p = np.full((1, 128), -1e9, np.float32)
    b4p[0, :10] = fb2

    return {
        "m1": jnp.asarray(m1_cat, jnp.bfloat16),
        "b1": jnp.asarray(b1row, jnp.float32),
        "m2": jnp.asarray(m2_cat, jnp.bfloat16),
        "b2": jnp.asarray(b2row, jnp.float32),
        "w3": jnp.asarray(w3, jnp.bfloat16),
        "b3": jnp.asarray(fb1[None], jnp.float32),
        "w4": jnp.asarray(w4p, jnp.bfloat16),
        "b4": jnp.asarray(b4p, jnp.float32),
    }


def init_params(key):
    """Deterministic PyTorch-style (uniform +/- 1/sqrt(fan_in)) init."""
    ks = jax.random.split(key, 8)

    def u(k, shape, fan_in):
        bound = 1.0 / float(fan_in) ** 0.5
        return jax.random.uniform(k, shape, jnp.float32, -bound, bound)

    return {
        "conv1_w": u(ks[0], (10, 1, 5, 5), 1 * 5 * 5),
        "conv1_b": u(ks[1], (10,), 1 * 5 * 5),
        "conv2_w": u(ks[2], (20, 10, 3, 3), 10 * 3 * 3),
        "conv2_b": u(ks[3], (20,), 10 * 3 * 3),
        "fc1_w": u(ks[4], (500, 2000), 2000),
        "fc1_b": u(ks[5], (500,), 2000),
        "fc2_w": u(ks[6], (10, 500), 500),
        "fc2_b": u(ks[7], (10,), 500),
    }


# --------------------------------------------------------------------------
# Pure-JAX reference (f32) for correctness checking
# --------------------------------------------------------------------------
def convnet_reference(raw, x):
    dn = ("NCHW", "OIHW", "NCHW")
    y = jax.lax.conv_general_dilated(x, raw["conv1_w"], (1, 1), "VALID",
                                     dimension_numbers=dn)
    y = jnp.maximum(y + raw["conv1_b"].reshape(1, 10, 1, 1), 0.0)
    y = jax.lax.reduce_window(y, -jnp.inf, jax.lax.max,
                              (1, 1, 2, 2), (1, 1, 2, 2), "VALID")
    y = jax.lax.conv_general_dilated(y, raw["conv2_w"], (1, 1), "VALID",
                                     dimension_numbers=dn)
    y = jnp.maximum(y + raw["conv2_b"].reshape(1, 20, 1, 1), 0.0)
    flat = y.reshape(x.shape[0], -1)
    h = jnp.maximum(flat @ raw["fc1_w"].T + raw["fc1_b"], 0.0)
    logits = h @ raw["fc2_w"].T + raw["fc2_b"]
    return jax.nn.log_softmax(logits, axis=1)


if __name__ == "__main__":
    key = jax.random.PRNGKey(0)
    pkey, xkey = jax.random.split(key)
    raw = init_params(pkey)
    params = prepare_params(raw)

    # Small demo batch (exercises batch padding and a multi-step grid).
    n = 30
    x = jax.random.normal(xkey, (n, 1, 28, 28), jnp.float32)

    fwd = jax.jit(functools.partial(convnet_forward, block_b=16))
    out = jax.block_until_ready(fwd(params, x))

    assert out.shape == (n, 10) and out.dtype == jnp.float32
    # log_softmax rows exponentiate-sum to 1
    assert bool(jnp.all(jnp.abs(jnp.sum(jnp.exp(out), axis=1) - 1.0) < 2e-3))
    # match the pure-JAX f32 reference (kernel uses bf16 matmul inputs/images)
    ref = convnet_reference(raw, x)
    err = float(jnp.max(jnp.abs(out - ref)))
    assert err < 0.3, f"mismatch vs reference: {err}"
    print("KERNEL_OK")
</pallas_src>

<mosaic_0001>
module attributes {stable_mosaic.version = 11 : i64} {
  func.func @_convnet_kernel(%arg0: i32, %arg1: memref<28x16x28xbf16, #tpu.memory_space<vmem>>, %arg2: memref<140x256xbf16, #tpu.memory_space<vmem>>, %arg3: memref<1x128xf32, #tpu.memory_space<vmem>>, %arg4: memref<384x200xbf16, #tpu.memory_space<vmem>>, %arg5: memref<1x200xf32, #tpu.memory_space<vmem>>, %arg6: memref<10x200x500xbf16, #tpu.memory_space<vmem>>, %arg7: memref<1x500xf32, #tpu.memory_space<vmem>>, %arg8: memref<500x128xbf16, #tpu.memory_space<vmem>>, %arg9: memref<1x128xf32, #tpu.memory_space<vmem>>, %arg10: memref<16x128xf32, #tpu.memory_space<vmem>>) attributes {dimension_semantics = [#tpu.dimension_semantics<parallel>], iteration_bounds = array<i64: 2>, scalar_prefetch = 0 : i64, scratch_operands = 0 : i64, tpu.core_type = #tpu.core_type<tc>, window_params = [{transform_indices = @transform_0, window_bounds = array<i64: 28, 16, 28>}, {pipeline_mode = #tpu.pipeline_mode<synchronous>, transform_indices = @transform_1, window_bounds = array<i64: 140, 256>}, {pipeline_mode = #tpu.pipeline_mode<synchronous>, transform_indices = @transform_2, window_bounds = array<i64: 1, 128>}, {pipeline_mode = #tpu.pipeline_mode<synchronous>, transform_indices = @transform_3, window_bounds = array<i64: 384, 200>}, {pipeline_mode = #tpu.pipeline_mode<synchronous>, transform_indices = @transform_4, window_bounds = array<i64: 1, 200>}, {pipeline_mode = #tpu.pipeline_mode<synchronous>, transform_indices = @transform_5, window_bounds = array<i64: 10, 200, 500>}, {pipeline_mode = #tpu.pipeline_mode<synchronous>, transform_indices = @transform_6, window_bounds = array<i64: 1, 500>}, {pipeline_mode = #tpu.pipeline_mode<synchronous>, transform_indices = @transform_7, window_bounds = array<i64: 500, 128>}, {pipeline_mode = #tpu.pipeline_mode<synchronous>, transform_indices = @transform_8, window_bounds = array<i64: 1, 128>}, {transform_indices = @transform_9, window_bounds = array<i64: 16, 128>}]} {
    %c0 = arith.constant 0 : index
    %c0_0 = arith.constant 0 : index
    %c0_1 = arith.constant 0 : index
    %0 = vector.load %arg1[%c0, %c0_0, %c0_1] : memref<28x16x28xbf16, #tpu.memory_space<vmem>>, vector<28x16x28xbf16>
    %1 = vector.extract_strided_slice %0 {offsets = [0, 0, 0], sizes = [24, 16, 28], strides = [1, 1, 1]} : vector<28x16x28xbf16> to vector<24x16x28xbf16>
    %2 = vector.shape_cast %1 : vector<24x16x28xbf16> to vector<384x28xbf16>
    %3 = vector.extract_strided_slice %0 {offsets = [1, 0, 0], sizes = [24, 16, 28], strides = [1, 1, 1]} : vector<28x16x28xbf16> to vector<24x16x28xbf16>
    %4 = vector.shape_cast %3 : vector<24x16x28xbf16> to vector<384x28xbf16>
    %5 = vector.extract_strided_slice %0 {offsets = [2, 0, 0], sizes = [24, 16, 28], strides = [1, 1, 1]} : vector<28x16x28xbf16> to vector<24x16x28xbf16>
    %6 = vector.shape_cast %5 : vector<24x16x28xbf16> to vector<384x28xbf16>
    %7 = vector.extract_strided_slice %0 {offsets = [3, 0, 0], sizes = [24, 16, 28], strides = [1, 1, 1]} : vector<28x16x28xbf16> to vector<24x16x28xbf16>
    %8 = vector.shape_cast %7 : vector<24x16x28xbf16> to vector<384x28xbf16>
    %9 = vector.extract_strided_slice %0 {offsets = [4, 0, 0], sizes = [24, 16, 28], strides = [1, 1, 1]} : vector<28x16x28xbf16> to vector<24x16x28xbf16>
    %10 = vector.shape_cast %9 : vector<24x16x28xbf16> to vector<384x28xbf16>
    %11 = tpu.concatenate %2, %4, %6, %8, %10 in 1 : vector<384x28xbf16>, vector<384x28xbf16>, vector<384x28xbf16>, vector<384x28xbf16>, vector<384x28xbf16> -> vector<384x140xbf16>
    %c0_2 = arith.constant 0 : index
    %c0_3 = arith.constant 0 : index
    %12 = vector.load %arg2[%c0_2, %c0_3] : memref<140x256xbf16, #tpu.memory_space<vmem>>, vector<140x256xbf16>
    %cst = arith.constant dense<0.000000e+00> : vector<384x256xf32>
    %13 = tpu.matmul %11, %12, %cst {dimension_numbers = #tpu.dot_dimension_numbers<[1], [0], [0], [1], [0, 0, 1, 1], [], []>} : vector<384x140xbf16>, vector<140x256xbf16>, vector<384x256xf32> -> vector<384x256xf32>
    %14 = vector.extract_strided_slice %13 {offsets = [0, 0], sizes = [384, 128], strides = [1, 1]} : vector<384x256xf32> to vector<384x128xf32>
    %15 = vector.extract_strided_slice %13 {offsets = [0, 128], sizes = [384, 128], strides = [1, 1]} : vector<384x256xf32> to vector<384x128xf32>
    %16 = arith.maximumf %14, %15 : vector<384x128xf32>
    %c0_4 = arith.constant 0 : index
    %c0_5 = arith.constant 0 : index
    %17 = vector.load %arg3[%c0_4, %c0_5] : memref<1x128xf32, #tpu.memory_space<vmem>>, vector<1x128xf32>
    %18 = vector.broadcast %17 : vector<1x128xf32> to vector<384x128xf32>
    %19 = arith.addf %16, %18 : vector<384x128xf32>
    %cst_6 = arith.constant 0.000000e+00 : f32
    %20 = vector.broadcast %cst_6 : f32 to vector<384x128xf32>
    %21 = arith.maximumf %19, %20 : vector<384x128xf32>
    %22 = vector.shape_cast %21 : vector<384x128xf32> to vector<12x2x16x128xf32>
    %23 = vector.extract_strided_slice %22 {offsets = [0, 0, 0, 0], sizes = [12, 1, 16, 128], strides = [1, 1, 1, 1]} : vector<12x2x16x128xf32> to vector<12x1x16x128xf32>
    %24 = vector.shape_cast %23 : vector<12x1x16x128xf32> to vector<12x16x128xf32>
    %25 = vector.extract_strided_slice %22 {offsets = [0, 1, 0, 0], sizes = [12, 1, 16, 128], strides = [1, 1, 1, 1]} : vector<12x2x16x128xf32> to vector<12x1x16x128xf32>
    %26 = vector.shape_cast %25 : vector<12x1x16x128xf32> to vector<12x16x128xf32>
    %27 = arith.maximumf %24, %26 : vector<12x16x128xf32>
    %28 = arith.truncf %27 : vector<12x16x128xf32> to vector<12x16x128xbf16>
    %29 = vector.extract_strided_slice %28 {offsets = [0, 0, 0], sizes = [10, 16, 128], strides = [1, 1, 1]} : vector<12x16x128xbf16> to vector<10x16x128xbf16>
    %30 = vector.shape_cast %29 : vector<10x16x128xbf16> to vector<160x128xbf16>
    %31 = vector.extract_strided_slice %28 {offsets = [1, 0, 0], sizes = [10, 16, 128], strides = [1, 1, 1]} : vector<12x16x128xbf16> to vector<10x16x128xbf16>
    %32 = vector.shape_cast %31 : vector<10x16x128xbf16> to vector<160x128xbf16>
    %33 = vector.extract_strided_slice %28 {offsets = [2, 0, 0], sizes = [10, 16, 128], strides = [1, 1, 1]} : vector<12x16x128xbf16> to vector<10x16x128xbf16>
    %34 = vector.shape_cast %33 : vector<10x16x128xbf16> to vector<160x128xbf16>
    %35 = tpu.concatenate %30, %32, %34 in 1 : vector<160x128xbf16>, vector<160x128xbf16>, vector<160x128xbf16> -> vector<160x384xbf16>
    %c0_7 = arith.constant 0 : index
    %c0_8 = arith.constant 0 : index
    %36 = vector.load %arg4[%c0_7, %c0_8] : memref<384x200xbf16, #tpu.memory_space<vmem>>, vector<384x200xbf16>
    %cst_9 = arith.constant dense<0.000000e+00> : vector<160x200xf32>
    %37 = tpu.matmul %35, %36, %cst_9 {dimension_numbers = #tpu.dot_dimension_numbers<[1], [0], [0], [1], [0, 0, 1, 1], [], []>} : vector<160x384xbf16>, vector<384x200xbf16>, vector<160x200xf32> -> vector<160x200xf32>
    %c0_10 = arith.constant 0 : index
    %c0_11 = arith.constant 0 : index
    %38 = vector.load %arg5[%c0_10, %c0_11] : memref<1x200xf32, #tpu.memory_space<vmem>>, vector<1x200xf32>
    %39 = vector.broadcast %38 : vector<1x200xf32> to vector<160x200xf32>
    %40 = arith.addf %37, %39 : vector<160x200xf32>
    %cst_12 = arith.constant 0.000000e+00 : f32
    %41 = vector.broadcast %cst_12 : f32 to vector<160x200xf32>
    %42 = arith.maximumf %40, %41 : vector<160x200xf32>
    %43 = arith.truncf %42 : vector<160x200xf32> to vector<160x200xbf16>
    %44 = vector.shape_cast %43 : vector<160x200xbf16> to vector<10x16x200xbf16>
    %45 = vector.extract_strided_slice %44 {offsets = [0, 0, 0], sizes = [1, 16, 200], strides = [1, 1, 1]} : vector<10x16x200xbf16> to vector<1x16x200xbf16>
    %46 = vector.shape_cast %45 : vector<1x16x200xbf16> to vector<16x200xbf16>
    %c0_13 = arith.constant 0 : index
    %c0_14 = arith.constant 0 : index
    %c0_15 = arith.constant 0 : index
    %47 = vector.load %arg6[%c0_13, %c0_14, %c0_15] : memref<10x200x500xbf16, #tpu.memory_space<vmem>>, vector<1x200x500xbf16>
    %48 = vector.shape_cast %47 : vector<1x200x500xbf16> to vector<200x500xbf16>
    %cst_16 = arith.constant dense<0.000000e+00> : vector<16x500xf32>
    %49 = tpu.matmul %46, %48, %cst_16 {dimension_numbers = #tpu.dot_dimension_numbers<[1], [0], [0], [1], [0, 0, 1, 1], [], []>} : vector<16x200xbf16>, vector<200x500xbf16>, vector<16x500xf32> -> vector<16x500xf32>
    %50 = vector.extract_strided_slice %44 {offsets = [1, 0, 0], sizes = [1, 16, 200], strides = [1, 1, 1]} : vector<10x16x200xbf16> to vector<1x16x200xbf16>
    %51 = vector.shape_cast %50 : vector<1x16x200xbf16> to vector<16x200xbf16>
    %c1 = arith.constant 1 : index
    %c0_17 = arith.constant 0 : index
    %c0_18 = arith.constant 0 : index
    %52 = vector.load %arg6[%c1, %c0_17, %c0_18] : memref<10x200x500xbf16, #tpu.memory_space<vmem>>, vector<1x200x500xbf16>
    %53 = vector.shape_cast %52 : vector<1x200x500xbf16> to vector<200x500xbf16>
    %cst_19 = arith.constant dense<0.000000e+00> : vector<16x500xf32>
    %54 = tpu.matmul %51, %53, %cst_19 {dimension_numbers = #tpu.dot_dimension_numbers<[1], [0], [0], [1], [0, 0, 1, 1], [], []>} : vector<16x200xbf16>, vector<200x500xbf16>, vector<16x500xf32> -> vector<16x500xf32>
    %55 = arith.addf %49, %54 : vector<16x500xf32>
    %56 = vector.extract_strided_slice %44 {offsets = [2, 0, 0], sizes = [1, 16, 200], strides = [1, 1, 1]} : vector<10x16x200xbf16> to vector<1x16x200xbf16>
    %57 = vector.shape_cast %56 : vector<1x16x200xbf16> to vector<16x200xbf16>
    %c2 = arith.constant 2 : index
    %c0_20 = arith.constant 0 : index
    %c0_21 = arith.constant 0 : index
    %58 = vector.load %arg6[%c2, %c0_20, %c0_21] : memref<10x200x500xbf16, #tpu.memory_space<vmem>>, vector<1x200x500xbf16>
    %59 = vector.shape_cast %58 : vector<1x200x500xbf16> to vector<200x500xbf16>
    %cst_22 = arith.constant dense<0.000000e+00> : vector<16x500xf32>
    %60 = tpu.matmul %57, %59, %cst_22 {dimension_numbers = #tpu.dot_dimension_numbers<[1], [0], [0], [1], [0, 0, 1, 1], [], []>} : vector<16x200xbf16>, vector<200x500xbf16>, vector<16x500xf32> -> vector<16x500xf32>
    %61 = arith.addf %55, %60 : vector<16x500xf32>
    %62 = vector.extract_strided_slice %44 {offsets = [3, 0, 0], sizes = [1, 16, 200], strides = [1, 1, 1]} : vector<10x16x200xbf16> to vector<1x16x200xbf16>
    %63 = vector.shape_cast %62 : vector<1x16x200xbf16> to vector<16x200xbf16>
    %c3 = arith.constant 3 : index
    %c0_23 = arith.constant 0 : index
    %c0_24 = arith.constant 0 : index
    %64 = vector.load %arg6[%c3, %c0_23, %c0_24] : memref<10x200x500xbf16, #tpu.memory_space<vmem>>, vector<1x200x500xbf16>
    %65 = vector.shape_cast %64 : vector<1x200x500xbf16> to vector<200x500xbf16>
    %cst_25 = arith.constant dense<0.000000e+00> : vector<16x500xf32>
    %66 = tpu.matmul %63, %65, %cst_25 {dimension_numbers = #tpu.dot_dimension_numbers<[1], [0], [0], [1], [0, 0, 1, 1], [], []>} : vector<16x200xbf16>, vector<200x500xbf16>, vector<16x500xf32> -> vector<16x500xf32>
    %67 = arith.addf %61, %66 : vector<16x500xf32>
    %68 = vector.extract_strided_slice %44 {offsets = [4, 0, 0], sizes = [1, 16, 200], strides = [1, 1, 1]} : vector<10x16x200xbf16> to vector<1x16x200xbf16>
    %69 = vector.shape_cast %68 : vector<1x16x200xbf16> to vector<16x200xbf16>
    %c4 = arith.constant 4 : index
    %c0_26 = arith.constant 0 : index
    %c0_27 = arith.constant 0 : index
    %70 = vector.load %arg6[%c4, %c0_26, %c0_27] : memref<10x200x500xbf16, #tpu.memory_space<vmem>>, vector<1x200x500xbf16>
    %71 = vector.shape_cast %70 : vector<1x200x500xbf16> to vector<200x500xbf16>
    %cst_28 = arith.constant dense<0.000000e+00> : vector<16x500xf32>
    %72 = tpu.matmul %69, %71, %cst_28 {dimension_numbers = #tpu.dot_dimension_numbers<[1], [0], [0], [1], [0, 0, 1, 1], [], []>} : vector<16x200xbf16>, vector<200x500xbf16>, vector<16x500xf32> -> vector<16x500xf32>
    %73 = arith.addf %67, %72 : vector<16x500xf32>
    %74 = vector.extract_strided_slice %44 {offsets = [5, 0, 0], sizes = [1, 16, 200], strides = [1, 1, 1]} : vector<10x16x200xbf16> to vector<1x16x200xbf16>
    %75 = vector.shape_cast %74 : vector<1x16x200xbf16> to vector<16x200xbf16>
    %c5 = arith.constant 5 : index
    %c0_29 = arith.constant 0 : index
    %c0_30 = arith.constant 0 : index
    %76 = vector.load %arg6[%c5, %c0_29, %c0_30] : memref<10x200x500xbf16, #tpu.memory_space<vmem>>, vector<1x200x500xbf16>
    %77 = vector.shape_cast %76 : vector<1x200x500xbf16> to vector<200x500xbf16>
    %cst_31 = arith.constant dense<0.000000e+00> : vector<16x500xf32>
    %78 = tpu.matmul %75, %77, %cst_31 {dimension_numbers = #tpu.dot_dimension_numbers<[1], [0], [0], [1], [0, 0, 1, 1], [], []>} : vector<16x200xbf16>, vector<200x500xbf16>, vector<16x500xf32> -> vector<16x500xf32>
    %79 = arith.addf %73, %78 : vector<16x500xf32>
    %80 = vector.extract_strided_slice %44 {offsets = [6, 0, 0], sizes = [1, 16, 200], strides = [1, 1, 1]} : vector<10x16x200xbf16> to vector<1x16x200xbf16>
    %81 = vector.shape_cast %80 : vector<1x16x200xbf16> to vector<16x200xbf16>
    %c6 = arith.constant 6 : index
    %c0_32 = arith.constant 0 : index
    %c0_33 = arith.constant 0 : index
    %82 = vector.load %arg6[%c6, %c0_32, %c0_33] : memref<10x200x500xbf16, #tpu.memory_space<vmem>>, vector<1x200x500xbf16>
    %83 = vector.shape_cast %82 : vector<1x200x500xbf16> to vector<200x500xbf16>
    %cst_34 = arith.constant dense<0.000000e+00> : vector<16x500xf32>
    %84 = tpu.matmul %81, %83, %cst_34 {dimension_numbers = #tpu.dot_dimension_numbers<[1], [0], [0], [1], [0, 0, 1, 1], [], []>} : vector<16x200xbf16>, vector<200x500xbf16>, vector<16x500xf32> -> vector<16x500xf32>
    %85 = arith.addf %79, %84 : vector<16x500xf32>
    %86 = vector.extract_strided_slice %44 {offsets = [7, 0, 0], sizes = [1, 16, 200], strides = [1, 1, 1]} : vector<10x16x200xbf16> to vector<1x16x200xbf16>
    %87 = vector.shape_cast %86 : vector<1x16x200xbf16> to vector<16x200xbf16>
    %c7 = arith.constant 7 : index
    %c0_35 = arith.constant 0 : index
    %c0_36 = arith.constant 0 : index
    %88 = vector.load %arg6[%c7, %c0_35, %c0_36] : memref<10x200x500xbf16, #tpu.memory_space<vmem>>, vector<1x200x500xbf16>
    %89 = vector.shape_cast %88 : vector<1x200x500xbf16> to vector<200x500xbf16>
    %cst_37 = arith.constant dense<0.000000e+00> : vector<16x500xf32>
    %90 = tpu.matmul %87, %89, %cst_37 {dimension_numbers = #tpu.dot_dimension_numbers<[1], [0], [0], [1], [0, 0, 1, 1], [], []>} : vector<16x200xbf16>, vector<200x500xbf16>, vector<16x500xf32> -> vector<16x500xf32>
    %91 = arith.addf %85, %90 : vector<16x500xf32>
    %92 = vector.extract_strided_slice %44 {offsets = [8, 0, 0], sizes = [1, 16, 200], strides = [1, 1, 1]} : vector<10x16x200xbf16> to vector<1x16x200xbf16>
    %93 = vector.shape_cast %92 : vector<1x16x200xbf16> to vector<16x200xbf16>
    %c8 = arith.constant 8 : index
    %c0_38 = arith.constant 0 : index
    %c0_39 = arith.constant 0 : index
    %94 = vector.load %arg6[%c8, %c0_38, %c0_39] : memref<10x200x500xbf16, #tpu.memory_space<vmem>>, vector<1x200x500xbf16>
    %95 = vector.shape_cast %94 : vector<1x200x500xbf16> to vector<200x500xbf16>
    %cst_40 = arith.constant dense<0.000000e+00> : vector<16x500xf32>
    %96 = tpu.matmul %93, %95, %cst_40 {dimension_numbers = #tpu.dot_dimension_numbers<[1], [0], [0], [1], [0, 0, 1, 1], [], []>} : vector<16x200xbf16>, vector<200x500xbf16>, vector<16x500xf32> -> vector<16x500xf32>
    %97 = arith.addf %91, %96 : vector<16x500xf32>
    %98 = vector.extract_strided_slice %44 {offsets = [9, 0, 0], sizes = [1, 16, 200], strides = [1, 1, 1]} : vector<10x16x200xbf16> to vector<1x16x200xbf16>
    %99 = vector.shape_cast %98 : vector<1x16x200xbf16> to vector<16x200xbf16>
    %c9 = arith.constant 9 : index
    %c0_41 = arith.constant 0 : index
    %c0_42 = arith.constant 0 : index
    %100 = vector.load %arg6[%c9, %c0_41, %c0_42] : memref<10x200x500xbf16, #tpu.memory_space<vmem>>, vector<1x200x500xbf16>
    %101 = vector.shape_cast %100 : vector<1x200x500xbf16> to vector<200x500xbf16>
    %cst_43 = arith.constant dense<0.000000e+00> : vector<16x500xf32>
    %102 = tpu.matmul %99, %101, %cst_43 {dimension_numbers = #tpu.dot_dimension_numbers<[1], [0], [0], [1], [0, 0, 1, 1], [], []>} : vector<16x200xbf16>, vector<200x500xbf16>, vector<16x500xf32> -> vector<16x500xf32>
    %103 = arith.addf %97, %102 : vector<16x500xf32>
    %c0_44 = arith.constant 0 : index
    %c0_45 = arith.constant 0 : index
    %104 = vector.load %arg7[%c0_44, %c0_45] : memref<1x500xf32, #tpu.memory_space<vmem>>, vector<1x500xf32>
    %105 = vector.broadcast %104 : vector<1x500xf32> to vector<16x500xf32>
    %106 = arith.addf %103, %105 : vector<16x500xf32>
    %cst_46 = arith.constant 0.000000e+00 : f32
    %107 = vector.broadcast %cst_46 : f32 to vector<16x500xf32>
    %108 = arith.maximumf %106, %107 : vector<16x500xf32>
    %109 = arith.truncf %108 : vector<16x500xf32> to vector<16x500xbf16>
    %c0_47 = arith.constant 0 : index
    %c0_48 = arith.constant 0 : index
    %110 = vector.load %arg8[%c0_47, %c0_48] : memref<500x128xbf16, #tpu.memory_space<vmem>>, vector<500x128xbf16>
    %cst_49 = arith.constant dense<0.000000e+00> : vector<16x128xf32>
    %111 = tpu.matmul %109, %110, %cst_49 {dimension_numbers = #tpu.dot_dimension_numbers<[1], [0], [0], [1], [0, 0, 1, 1], [], []>} : vector<16x500xbf16>, vector<500x128xbf16>, vector<16x128xf32> -> vector<16x128xf32>
    %c0_50 = arith.constant 0 : index
    %c0_51 = arith.constant 0 : index
    %112 = vector.load %arg9[%c0_50, %c0_51] : memref<1x128xf32, #tpu.memory_space<vmem>>, vector<1x128xf32>
    %113 = vector.broadcast %112 : vector<1x128xf32> to vector<16x128xf32>
    %114 = arith.addf %111, %113 : vector<16x128xf32>
    %cst_52 = arith.constant dense<0xFF800000> : vector<16xf32>
    %115 = vector.multi_reduction <maximumf>, %114, %cst_52 [1] : vector<16x128xf32> to vector<16xf32>
    %116 = vector.shape_cast %115 : vector<16xf32> to vector<16x1xf32>
    %117 = vector.broadcast %116 : vector<16x1xf32> to vector<16x128xf32>
    %118 = arith.subf %114, %117 : vector<16x128xf32>
    %119 = math.exp %118 : vector<16x128xf32>
    %cst_53 = arith.constant dense<0.000000e+00> : vector<16xf32>
    %120 = vector.multi_reduction <add>, %119, %cst_53 [1] : vector<16x128xf32> to vector<16xf32>
    %121 = vector.shape_cast %120 : vector<16xf32> to vector<16x1xf32>
    %122 = math.log %121 : vector<16x1xf32>
    %123 = vector.broadcast %122 : vector<16x1xf32> to vector<16x128xf32>
    %124 = arith.subf %118, %123 : vector<16x128xf32>
    %c0_54 = arith.constant 0 : index
    %c0_55 = arith.constant 0 : index
    %125 = vector.load %arg10[%c0_54, %c0_55] : memref<16x128xf32, #tpu.memory_space<vmem>>, vector<16x128xf32>
    tpu.vector_store %arg10[%c0_54, %c0_55], %124 {strides = array<i32>} : memref<16x128xf32, #tpu.memory_space<vmem>>, vector<16x128xf32>,
    return
  }
  func.func @transform_0(%arg0: i32) -> (i32, i32, i32) {
    %c0_i32 = arith.constant 0 : i32
    %c0_i32_0 = arith.constant 0 : i32
    %c0_i32_1 = arith.constant 0 : i32
    return %c0_i32, %arg0, %c0_i32_0 : i32, i32, i32
  }
  func.func @transform_1(%arg0: i32) -> (i32, i32) {
    %c0_i32 = arith.constant 0 : i32
    %c0_i32_0 = arith.constant 0 : i32
    %c0_i32_1 = arith.constant 0 : i32
    return %c0_i32, %c0_i32_0 : i32, i32
  }
  func.func @transform_2(%arg0: i32) -> (i32, i32) {
    %c0_i32 = arith.constant 0 : i32
    %c0_i32_0 = arith.constant 0 : i32
    %c0_i32_1 = arith.constant 0 : i32
    return %c0_i32, %c0_i32_0 : i32, i32
  }
  func.func @transform_3(%arg0: i32) -> (i32, i32) {
    %c0_i32 = arith.constant 0 : i32
    %c0_i32_0 = arith.constant 0 : i32
    %c0_i32_1 = arith.constant 0 : i32
    return %c0_i32, %c0_i32_0 : i32, i32
  }
  func.func @transform_4(%arg0: i32) -> (i32, i32) {
    %c0_i32 = arith.constant 0 : i32
    %c0_i32_0 = arith.constant 0 : i32
    %c0_i32_1 = arith.constant 0 : i32
    return %c0_i32, %c0_i32_0 : i32, i32
  }
  func.func @transform_5(%arg0: i32) -> (i32, i32, i32) {
    %c0_i32 = arith.constant 0 : i32
    %c0_i32_0 = arith.constant 0 : i32
    %c0_i32_1 = arith.constant 0 : i32
    %c0_i32_2 = arith.constant 0 : i32
    return %c0_i32, %c0_i32_0, %c0_i32_1 : i32, i32, i32
  }
  func.func @transform_6(%arg0: i32) -> (i32, i32) {
    %c0_i32 = arith.constant 0 : i32
    %c0_i32_0 = arith.constant 0 : i32
    %c0_i32_1 = arith.constant 0 : i32
    return %c0_i32, %c0_i32_0 : i32, i32
  }
  func.func @transform_7(%arg0: i32) -> (i32, i32) {
    %c0_i32 = arith.constant 0 : i32
    %c0_i32_0 = arith.constant 0 : i32
    %c0_i32_1 = arith.constant 0 : i32
    return %c0_i32, %c0_i32_0 : i32, i32
  }
  func.func @transform_8(%arg0: i32) -> (i32, i32) {
    %c0_i32 = arith.constant 0 : i32
    %c0_i32_0 = arith.constant 0 : i32
    %c0_i32_1 = arith.constant 0 : i32
    return %c0_i32, %c0_i32_0 : i32, i32
  }
  func.func @transform_9(%arg0: i32) -> (i32, i32) {
    %c0_i32 = arith.constant 0 : i32
    %c0_i32_0 = arith.constant 0 : i32
    return %arg0, %c0_i32 : i32, i32
  }
}

</mosaic_0001>

<bundles_post_ra>
// kernel: convnet_forward.1
= control target key start
LH: loop header
LB: loop body
LE: loop exit
PB: predicated region body
PF: predicated region fallthrough
CT: control target
= control target key end

     0   :  { %14 = vsyncpa [#allocation4], 0  ;;  %s10466_s0 = inlined_call_operand.vmem [shape: bf16[28,32,28], index: 0, kind: input, shape index: {}]   ;;  %s10467_s1 = inlined_call_operand.hbm [shape: bf16[140,256], index: 1, kind: input, shape index: {}]   ;;  %s10468_s2 = inlined_call_operand.hbm [shape: f32[1,128], index: 2, kind: input, shape index: {}]   ;;  %s10469_s3 = inlined_call_operand.vmem [shape: bf16[384,200], index: 3, kind: input, shape index: {}]   ;;  %s10470_s4 = inlined_call_operand.hbm [shape: f32[1,200], index: 4, kind: input, shape index: {}]   ;;  %s10471_s5 = inlined_call_operand.hbm [shape: bf16[10,200,500], index: 5, kind: input, shape index: {}]   ;;  %s10472_s6 = inlined_call_operand.hbm [shape: f32[1,500], index: 6, kind: input, shape index: {}]   ;;  %s10473_s7 = inlined_call_operand.hbm [shape: bf16[500,128], index: 7, kind: input, shape index: {}]   ;;  %s10474_s8 = inlined_call_operand.hbm [shape: f32[1,128], index: 8, kind: input, shape index: {}]   ;;  %s10475_s9 = inlined_call_operand.vmem [shape: f32[32,128], index: 9, kind: output, shape index: {}]  }
   0x1   :  { %15 = vsyncpa [#allocation6], 0 }
   0x2   :  { %16 = vsyncpa [#allocation9], 0 }
   0x3   :  { %17 = vsyncpa [#allocation12], 0  ;;  %s9334_s30 = smov 0   ;;  %s9336_s10 = smov 0  }
   0x4   :  { %s9338_s11 = smov 0  }
   0x5 LB: > { %s10476_s12 = sadd.s32 4294967295, %s9264_s11   ;;  %s9351_s13 = sadd.s32 1, %s9264_s11   ;;  %s9264_s11 = sphi %s9338_s11, %s10529_s11   ;;  %s9260_s10 = sphi %s9336_s10, %s10528_s10   ;;  %s9256_s30 = sphi %s9334_s30, %s10527_s30  }
   0x6   : > { %s27_s14 = ssub.s32 %s9264_s11, %s9351_s13  ;;  %s30_s15 = sadd.s32 1, %s9260_s10 }
   0x7   : > { %p28_p0 = scmp.eq.s32.totalorder %s27_s14, 0  ;;  %p37_p1 = scmp.ne.s32.totalorder %s9260_s10, %s9256_s30 }
   0x8   : > { %p38_p2 = scmp.eq.s32.totalorder %s9264_s11, 0  ;;  %p7205_p3 = scmp.ge.s32.totalorder %s9264_s11, 1 }
   0x9   : > { %s9361_s16 = scalar_select %p28_p0, %s9260_s10, %s30_s15  }
   0xa   : > { %p9363_p4 = por %p38_p2, %p37_p1  ;;  %p248_p5 = scmp.lt.s32.totalorder %s9264_s11, 3 }
   0xb   : > { %p9370_p6 = scmp.eq.s32.totalorder %s10476_s12, 0  ;;  %s9266_s20 = smov [#allocation5]  }
   0xc   : > { %s10484_s17 = scalar_select %p9363_p4, 1, 0 }
   0xd   : > { %s10485_s18 = scalar_select %p9370_p6, 1, 0 }
   0xe   : > { %p9374_p7 = pnand %p7205_p3, %p248_p5  ;;  %s274_s21 = sshll.u32 %s9266_s20, 4  ;;  %s275_s21 = int_to_ptr.vmem [resolvable:$true] %s274_s21 }
   0xf   : > { %s9267_s22 = smov [#allocation8]   ;;  %s9268_s25 = smov [#allocation11]  }
  0x10   : > { %s10486_s19 = scalar_select %p9374_p7, 1, 0 }
  0x11   : > { %p8018_p8 = pneg %p9374_p7  ;;  %s298_s23 = sshll.u32 %s9267_s22, 4  ;;  %s9386_s23 = int_to_ptr.vmem [resolvable:$true] %s298_s23 }
  0x12   : > { %s322_s26 = sshll.u32 %s9268_s25, 4  ;;  %s9055_s28 = scalar_lea.vmem %s275_s21, 16  ;;  %s323_s26 = int_to_ptr.vmem [resolvable:$true] %s322_s26 }
  0x13   : > { %p9382_p9 = pnand %p9370_p6, %p8018_p8  ;;  %p9056_p11 = scmp.ne.s32.totalorder %s275_s21, %s9055_s28 }
  0x14   : > { %s9062_s29 = scalar_lea.vmem %s275_s21, 32  ;;  %p9063_p0 = scmp.lt.s32.totalorder %s275_s21, %s275_s21 }
  0x15   : > { %p9390_p10 = pneg %p9382_p9  ;;  %p9064_p1 = scmp.lt.s32.totalorder %s9062_s29, %s9055_s28 }
  0x17   : > { %p9058_p12 = pnand %p9056_p11, %p9390_p10  ;;  %p9065_p2 = por %p9064_p1, %p9063_p0 }
  0x19   : > { %p9059_p13 = pneg %p9058_p12 }
  0x1b   : > { %p9066_p3 = pnand %p9065_p2, %p9059_p13 }
  0x1d   : > { %9069 = shalt.err (!%p9066_p3)
}
  0x1e   : > { %8024 = dma.hbm_to_vmem [thread:$0]  (!%p9382_p9), %s10468_s2, 16, %s275_s21, [#allocation6]  }
  0x1f   : > { %s9081_s20 = scalar_lea.vmem %s9386_s23, 64000  ;;  %p9089_p12 = scmp.lt.s32.totalorder %s9386_s23, %s9386_s23 }
  0x20   : > { %p9082_p5 = scmp.ne.s32.totalorder %s9386_s23, %s9081_s20  ;;  %p9090_p0 = scmp.lt.s32.totalorder %s9081_s20, %s9081_s20 }
  0x22   : > { %p9084_p8 = pnand %p9082_p5, %p9390_p10  ;;  %p9091_p13 = por %p9090_p0, %p9089_p12 }
  0x24   : > { %p9085_p11 = pneg %p9084_p8 }
  0x26   : > { %p9092_p1 = pnand %p9091_p13, %p9085_p11 }
  0x28   : > { %9095 = shalt.err (!%p9092_p1)
}
  0x29   : > { %s9269_s22 = smov 256   ;;  %s9270_s25 = smov 16  }
  0x2a   : > { %8030 = dma.hbm_to_vmem [thread:$0]  (!%p9382_p9), %s10471_s5, 64000, %s9386_s23, [#allocation9], %s9269_s22, %s9269_s22, %s9270_s25  }
  0x2b   : > { %s9107_s21 = scalar_lea.vmem %s323_s26, 4032  ;;  %p9115_p8 = scmp.lt.s32.totalorder %s323_s26, %s323_s26 }
  0x2c   : > { %p9108_p2 = scmp.ne.s32.totalorder %s323_s26, %s9107_s21  ;;  %p9116_p12 = scmp.lt.s32.totalorder %s9107_s21, %s9107_s21 }
  0x2e   : > { %p9110_p3 = pnand %p9108_p2, %p9390_p10  ;;  %p9117_p11 = por %p9116_p12, %p9115_p8 }
  0x30   : > { %p9111_p5 = pneg %p9110_p3 }
  0x32   : > { %p9118_p0 = pnand %p9117_p11, %p9111_p5 }
  0x34   : > { %9121 = shalt.err (!%p9118_p0)
}
  0x35   : > { %s9271_s14 = smov 64   ;;  %s9272_s15 = smov 4  }
  0x36   : > { %8036 = dma.hbm_to_vmem [thread:$0]  (!%p9382_p9), %s10473_s7, 4032, %s323_s26, [#allocation12], %s9271_s14, %s9271_s14, %s9272_s15  }
  0x37   : > { %s9273_s23 = smov [#allocation3]  }
  0x38   : > { %s260_s22 = sshll.u32 %s9273_s23, 4  ;;  %s261_s22 = int_to_ptr.vmem [resolvable:$true] %s260_s22 }
  0x39   : > { %s9133_s25 = scalar_lea.vmem %s261_s22, 2304  ;;  %p9141_p3 = scmp.lt.s32.totalorder %s261_s22, %s261_s22 }
  0x3a   : > { %p9134_p13 = scmp.ne.s32.totalorder %s261_s22, %s9133_s25  ;;  %p9142_p5 = scmp.lt.s32.totalorder %s9133_s25, %s9133_s25 }
  0x3c   : > { %p9136_p1 = pnand %p9134_p13, %p9390_p10  ;;  %p9143_p8 = por %p9142_p5, %p9141_p3 }
  0x3e   : > { %p9137_p2 = pneg %p9136_p1 }
  0x40   : > { %p9144_p12 = pnand %p9143_p8, %p9137_p2 }
  0x42   : > { %9147 = shalt.err (!%p9144_p12)
}
  0x43   : > { %s9274_s28 = smov 128   ;;  %s9275_s29 = smov 8  }
  0x44   : > { %8021 = dma.hbm_to_vmem [thread:$0]  (!%p9382_p9), %s10467_s1, 2304, %s261_s22, [#allocation4], %s9274_s28, %s9274_s28, %s9275_s29  }
  0x45   : > { %s9276_s21 = smov [#allocation7]   ;;  %s9277_s15 = smov [#allocation10]  }
  0x46   : > { %s288_s14 = sshll.u32 %s9276_s21, 4  ;;  %s312_s20 = sshll.u32 %s9277_s15, 4  ;;  %s289_s14 = int_to_ptr.vmem [resolvable:$true] %s288_s14  ;;  %s313_s20 = int_to_ptr.vmem [resolvable:$true] %s312_s20 }
  0x47   : > { %s9159_s23 = scalar_lea.vmem %s289_s14, 32  ;;  %p9167_p1 = scmp.lt.s32.totalorder %s289_s14, %s289_s14 }
  0x48   : > { %p9160_p11 = scmp.ne.s32.totalorder %s289_s14, %s9159_s23  ;;  %p9168_p2 = scmp.lt.s32.totalorder %s9159_s23, %s9159_s23 }
  0x4a   : > { %p9162_p0 = pnand %p9160_p11, %p9390_p10  ;;  %p9169_p3 = por %p9168_p2, %p9167_p1 }
  0x4c   : > { %p9163_p13 = pneg %p9162_p0 }
  0x4e   : > { %p9170_p5 = pnand %p9169_p3, %p9163_p13 }
  0x50   : > { %9173 = shalt.err (!%p9170_p5)
}
  0x51   : > { %8027 = dma.hbm_to_vmem [thread:$0]  (!%p9382_p9), %s10470_s4, 32, %s289_s14, [#allocation6]  }
  0x52   : > { %s9185_s28 = scalar_lea.vmem %s313_s20, 64  ;;  %p9193_p7 = scmp.lt.s32.totalorder %s313_s20, %s313_s20 }
  0x53   : > { %p9186_p8 = scmp.ne.s32.totalorder %s313_s20, %s9185_s28  ;;  %p9194_p11 = scmp.lt.s32.totalorder %s9185_s28, %s9185_s28 }
  0x55   : > { %p9188_p12 = pnand %p9186_p8, %p9390_p10  ;;  %p9195_p0 = por %p9194_p11, %p9193_p7 }
  0x57   : > { %p9189_p6 = pneg %p9188_p12 }
  0x59   : > { %p9196_p4 = pnand %p9195_p0, %p9189_p6 }
  0x5b   : > { %9199 = shalt.err (!%p9196_p4)
}
  0x5c   : > { %8033 = dma.hbm_to_vmem [thread:$0]  (!%p9382_p9), %s10472_s6, 64, %s313_s20, [#allocation9]  }
  0x5d   : > { %s9278_s26 = smov [#allocation13]  }
  0x5e   : > { %s336_s21 = sshll.u32 %s9278_s26, 4  ;;  %s337_s21 = int_to_ptr.vmem [resolvable:$true] %s336_s21 }
  0x5f   : > { %s9211_s14 = scalar_lea.vmem %s337_s21, 16  ;;  %s9218_s15 = scalar_lea.vmem %s337_s21, 32 }
  0x60   : > { %p9212_p13 = scmp.ne.s32.totalorder %s337_s21, %s9211_s14  ;;  %p9219_p3 = scmp.lt.s32.totalorder %s337_s21, %s337_s21 }
  0x61   : > { %p9220_p7 = scmp.lt.s32.totalorder %s9218_s15, %s9211_s14 }
  0x62   : > { %p9214_p1 = pnand %p9212_p13, %p9390_p10 }
  0x63   : > { %p9221_p6 = por %p9220_p7, %p9219_p3 }
  0x64   : > { %p9215_p2 = pneg %p9214_p1 }
  0x66   : > { %p9222_p4 = pnand %p9221_p6, %p9215_p2 }
  0x68   : > { %9225 = shalt.err (!%p9222_p4)
}
  0x69   : > { %8039 = dma.hbm_to_vmem [thread:$0]  (!%p9382_p9), %s10474_s8, 16, %s337_s21, [#allocation12]  }
  0x6a   : > { %p7213_p5 = scmp.ge.s32.totalorder %s9264_s11, 2 }
  0x6b   : > { %p10489_p8 = scmp.ne.s32.totalorder (!%p7213_p5), %s10484_s17, 0 }
  0x6c   : > { %343 = sbr.rel (%p7213_p5) target bundleno = 131 (0x83), region = 48 }
  0x71   : > { %346 = sbr.rel (!%p10489_p8) target bundleno = 131 (0x83), region = 52  ;;  %s348_s27 = sand.u32 (%p10489_p8), 1, %s9260_s10  }
  0x72   : > { %s7942_s20 = sshll.u32 (%p10489_p8), %s9264_s11, 3  ;;  %s7988_s22 = smul.u32 (%p10489_p8), 224, %s348_s27 }
  0x73   : > { %s9456_s12 = scalar_lea.vmem (%p10489_p8), %s10466_s0, %s7942_s20 }
  0x74   : > { %v370_v0 = vld [vmem:[%s9456_s12] sm:$0xff] (%p10489_p8)   ;;  %v374_v1 = vld [vmem:[%s9456_s12 + $0x10] sm:$0xff] (%p10489_p8)   ;;  %s9464_s17 = scalar_lea.vmem (%p10489_p8), [#allocation2], %s7988_s22 }
  0x75   : > { %v378_v2 = vld [vmem:[%s9456_s12 + $0x20] sm:$0xff] (%p10489_p8)   ;;  %v382_v3 = vld [vmem:[%s9456_s12 + $0x30] sm:$0xff] (%p10489_p8)   ;;  %371 = vst [vmem:[%s9464_s17] sm:$0xff] (%p10489_p8), %v370_v0   ;;  %375 = vst [vmem:[%s9464_s17 + $0x8] sm:$0xff] (%p10489_p8), %v374_v1  }
  0x76   : > { %v386_v4 = vld [vmem:[%s9456_s12 + $0x40] sm:$0xff]   ;;  %v390_v5 = vld [vmem:[%s9456_s12 + $0x50] sm:$0xff]   ;;  %379 = vst [vmem:[%s9464_s17 + $0x10] sm:$0xff] %v378_v2   ;;  %383 = vst [vmem:[%s9464_s17 + $0x18] sm:$0xff] %v382_v3  }
  0x77   : > { %387 = vst [vmem:[%s9464_s17 + $0x20] sm:$0xff] %v386_v4   ;;  %391 = vst [vmem:[%s9464_s17 + $0x28] sm:$0xff] %v390_v5   ;;  %v394_v6 = vld [vmem:[%s9456_s12 + $0x60] sm:$0xff]   ;;  %v398_v7 = vld [vmem:[%s9456_s12 + $0x70] sm:$0xff]  }
  0x78   : > { %v402_v8 = vld [vmem:[%s9456_s12 + $0x80] sm:$0xff]   ;;  %395 = vst [vmem:[%s9464_s17 + $0x30] sm:$0xff] %v394_v6   ;;  %399 = vst [vmem:[%s9464_s17 + $0x38] sm:$0xff] %v398_v7   ;;  %v406_v9 = vld [vmem:[%s9456_s12 + $0x90] sm:$0xff]  }
  0x79   : > { %403 = vst [vmem:[%s9464_s17 + $0x40] sm:$0xff] %v402_v8   ;;  %v410_v10 = vld [vmem:[%s9456_s12 + $0xa0] sm:$0xff]   ;;  %v414_v11 = vld [vmem:[%s9456_s12 + $0xb0] sm:$0xff]   ;;  %407 = vst [vmem:[%s9464_s17 + $0x48] sm:$0xff] %v406_v9  }
  0x7a   : > { %411 = vst [vmem:[%s9464_s17 + $0x50] sm:$0xff] %v410_v10   ;;  %415 = vst [vmem:[%s9464_s17 + $0x58] sm:$0xff] %v414_v11   ;;  %v418_v12 = vld [vmem:[%s9456_s12 + $0xc0] sm:$0xff]   ;;  %v422_v13 = vld [vmem:[%s9456_s12 + $0xd0] sm:$0xff]  }
  0x7b   : > { %v426_v14 = vld [vmem:[%s9456_s12 + $0xe0] sm:$0xff]   ;;  %419 = vst [vmem:[%s9464_s17 + $0x60] sm:$0xff] %v418_v12   ;;  %423 = vst [vmem:[%s9464_s17 + $0x68] sm:$0xff] %v422_v13   ;;  %v430_v15 = vld [vmem:[%s9456_s12 + $0xf0] sm:$0xff]  }
  0x7c   : > { %427 = vst [vmem:[%s9464_s17 + $0x70] sm:$0xff] %v426_v14   ;;  %v434_v16 = vld [vmem:[%s9456_s12 + $0x100] sm:$0xff]   ;;  %v438_v17 = vld [vmem:[%s9456_s12 + $0x110] sm:$0xff]   ;;  %431 = vst [vmem:[%s9464_s17 + $0x78] sm:$0xff] %v430_v15  }
  0x7d   : > { %435 = vst [vmem:[%s9464_s17 + $0x80] sm:$0xff] %v434_v16   ;;  %439 = vst [vmem:[%s9464_s17 + $0x88] sm:$0xff] %v438_v17   ;;  %v442_v18 = vld [vmem:[%s9456_s12 + $0x120] sm:$0xff]   ;;  %v446_v19 = vld [vmem:[%s9456_s12 + $0x130] sm:$0xff]  }
  0x7e   : > { %v450_v20 = vld [vmem:[%s9456_s12 + $0x140] sm:$0xff]   ;;  %443 = vst [vmem:[%s9464_s17 + $0x90] sm:$0xff] %v442_v18   ;;  %447 = vst [vmem:[%s9464_s17 + $0x98] sm:$0xff] %v446_v19   ;;  %v454_v21 = vld [vmem:[%s9456_s12 + $0x150] sm:$0xff]  }
  0x7f   : > { %451 = vst [vmem:[%s9464_s17 + $0xa0] sm:$0xff] %v450_v20   ;;  %v458_v22 = vld [vmem:[%s9456_s12 + $0x160] sm:$0xff]   ;;  %v462_v23 = vld [vmem:[%s9456_s12 + $0x170] sm:$0xff]   ;;  %455 = vst [vmem:[%s9464_s17 + $0xa8] sm:$0xff] %v454_v21  }
  0x80   : > { %459 = vst [vmem:[%s9464_s17 + $0xb0] sm:$0xff] %v458_v22   ;;  %463 = vst [vmem:[%s9464_s17 + $0xb8] sm:$0xff] %v462_v23   ;;  %v466_v24 = vld [vmem:[%s9456_s12 + $0x180] sm:$0xff]   ;;  %v470_v25 = vld [vmem:[%s9456_s12 + $0x190] sm:$0xff]  }
  0x81   : > { %v474_v26 = vld [vmem:[%s9456_s12 + $0x1a0] sm:$0xff]   ;;  %467 = vst [vmem:[%s9464_s17 + $0xc0] sm:$0xff] %v466_v24   ;;  %471 = vst [vmem:[%s9464_s17 + $0xc8] sm:$0xff] %v470_v25   ;;  %v478_v27 = vld [vmem:[%s9456_s12 + $0x1b0] sm:$0xff]  }
  0x82   : > { %475 = vst [vmem:[%s9464_s17 + $0xd0] sm:$0xff] %v474_v26   ;;  %479 = vst [vmem:[%s9464_s17 + $0xd8] sm:$0xff] %v478_v27  }
  0x83 PF: > { %p10490_p9 = scmp.ne.s32.totalorder %s10486_s19, 0 }
  0x85   : > { %620 = sbr.rel (%p10490_p9) target bundleno = 2066 (0x812), region = 93 }
  0x8a   : > { %s623_s24 = sand.u32 1, %s9256_s30   ;;  %p10491_p10 = scmp.ne.s32.totalorder %s10485_s18, 0 }
  0x8b   : > { %s7989_s26 = smul.u32 224, %s623_s24 }
  0x8d   : > { %s9519_s21 = scalar_lea.vmem [#allocation2], %s7989_s26 }
  0x8e   : > { %9239 = dma.done.wait (%p10491_p10), [#allocation4], 2304  }
  0x8f   : > { %9241 = vsyncadd (%p10491_p10), [#allocation4], 4294964992 }
  0x90   : > { %9243 = dma.done.wait (%p10491_p10), [#allocation6], 48  }
  0x91   : > { %9245 = vsyncadd (%p10491_p10), [#allocation6], 4294967248 }
  0x92   : > { %9247 = dma.done.wait (%p10491_p10), [#allocation9], 64064  }
  0x93   : > { %9249 = vsyncadd (%p10491_p10), [#allocation9], 4294903232 }
  0x94   : > { %9251 = dma.done.wait (%p10491_p10), [#allocation12], 4048  }
  0x95   : > { %9253 = vsyncadd (%p10491_p10), [#allocation12], 4294963248  ;;  %v9538_v28 = vld [vmem:[%s9519_s21 + $0x8] sm:$0xff]   ;;  %v8097_v29 = vld [vmem:[%s9519_s21 + $0x18] sm:$0xff]   ;;  %s9279_s30 = smov 28   ;;  %s9280_s19 = smov 84  }
  0x96   : > { %875 = vrot.lane.b32.xlu0 %v9538_v28, %s9279_s30  ;;  %v9544_v30 = vld [vmem:[%s9519_s21 + $0x10] sm:$0xff]   ;;  %981 = vrot.lane.b32.xlu1 %v8097_v29, %s9280_s19  ;;  %v8099_v31 = vld [vmem:[%s9519_s21 + $0x20] sm:$0xff]   ;;  %s9281_s18 = smov 56   ;;  %s9282_s14 = smov 112   ;;  %vm1481_vm0 = vcmask 1045504   ;;  %vm1082_vm1 = vcmask 228352  }
  0x97   : > { %v8100_v32 = vld [vmem:[%s9519_s21 + $0x28] sm:$0xff]   ;;  %v8110_v33 = vld [vmem:[#allocation3 + $0x74] ss:$8 sps:$4 sm:$0xff]   ;;  %v8112_v34 = vld [vmem:[#allocation3 + $0x70] ss:$8 sps:$4 sm:$0xff]   ;;  %vm1155_vm2 = vcmask 457728  }
  0x98   : > { %1488 = vmatprep.subr.bf16.mxu0 %v8110_v33  ;;  %v8113_v35 = vld [vmem:[#allocation3 + $0x64] ss:$8 sps:$4 sm:$0xff]   ;;  %v8115_v36 = vld [vmem:[#allocation3 + $0x60] ss:$8 sps:$4 sm:$0xff]   ;;  %v8117_v37 = vld [vmem:[#allocation3 + $0x54] ss:$8 sps:$4 sm:$0xff]  }
  0x99   : > { %1489 = vmatpush1.bf16.msra.mxu0 %v8112_v34  ;;  %v8101_v38 = vld [vmem:[%s9519_s21 + $0x30] sm:$0xff]   ;;  %v8120_v40 = vld [vmem:[#allocation3 + $0x44] ss:$8 sps:$4 sm:$0xff]   ;;  %v8122_v41 = vld [vmem:[#allocation3 + $0x40] ss:$8 sps:$4 sm:$0xff]   ;;  %vm1432_vm3 = vcmask 97280  }
  0x9a   : > { %928 = vrot.lane.b32.xlu0 %v9544_v30, %s9281_s18  ;;  %1034 = vrot.lane.b32.xlu1 %v8099_v31, %s9282_s14  ;;  %v8119_v39 = vld [vmem:[#allocation3 + $0x50] ss:$8 sps:$4 sm:$0xff]   ;;  %v8124_v42 = vld [vmem:[#allocation3 + $0x34] ss:$8 sps:$4 sm:$0xff]   ;;  %v8127_v45 = vld [vmem:[#allocation3 + $0x24] ss:$8 sps:$4 sm:$0xff]  }
  0x9b   : > { %1490 = vmatprep.subr.bf16.mxu0 %v8113_v35  ;;  %v8102_v43 = vld [vmem:[%s9519_s21 + $0x38] sm:$0xff]   ;;  %v8103_v46 = vld [vmem:[%s9519_s21 + $0x40] sm:$0xff]   ;;  %v8104_v54 = vld [vmem:[%s9519_s21 + $0x48] sm:$0xff]   ;;  %vm1204_vm4 = vcmask 687104   ;;  %vm1253_vm5 = vcmask 916480   ;;  %vm2929_vm6 = vcmask 1043456  }
  0x9c   : > { %v8126_v44 = vld [vmem:[#allocation3 + $0x30] ss:$8 sps:$4 sm:$0xff]   ;;  %v8129_v47 = vld [vmem:[#allocation3 + $0x20] ss:$8 sps:$4 sm:$0xff]   ;;  %v8131_v48 = vld [vmem:[#allocation3 + $0x14] ss:$8 sps:$4 sm:$0xff]  }
  0x9d   : > { %1491 = vmatpush1.bf16.msra.mxu0 %v8115_v36  ;;  %v8133_v49 = vld [vmem:[#allocation3 + $0x10] ss:$8 sps:$4 sm:$0xff]   ;;  %v8134_v50 = vld [vmem:[#allocation3 + $0x4] ss:$8 sps:$4 sm:$0xff]   ;;  %v8137_v51 = vld [vmem:[#allocation3] ss:$8 sps:$4 sm:$0xff]  }
  0x9e   : > { %877 = vrot.lane.b32.xlu0 %v9544_v30, %s9279_s30  ;;  %930 = vrot.lane.b32.xlu1 %v8097_v29, %s9281_s18  ;;  %v8139_v52 = vld [vmem:[#allocation3 + $0x84] ss:$8 sps:$4 sm:$0x3f]   ;;  %v8141_v53 = vld [vmem:[#allocation3 + $0x80] ss:$8 sps:$4 sm:$0x3f]  }
  0x9f   : > { %1492 = vmatprep.subr.bf16.mxu0 %v8117_v37  ;;  %v1483_v55 = vsel %vm1481_vm0, %v8141_v53, 0  ;;  %v8105_v56 = vld [vmem:[%s9519_s21 + $0x50] sm:$0xff]   ;;  %v8106_v57 = vld [vmem:[%s9519_s21 + $0x58] sm:$0xff]   ;;  %v8107_v58 = vld [vmem:[%s9519_s21 + $0x60] sm:$0xff]   ;;  %vm2925_vm7 = vcmask 588800   ;;  %vm6964_vm8 = vcmask 1041408  }
  0xa0   : > { %v8108_v59 = vld [vmem:[%s9519_s21 + $0x68] sm:$0xff]   ;;  %v8109_v60 = vld [vmem:[%s9519_s21 + $0x70] sm:$0xff]   ;;  %v8116_v61 = vld [vmem:[%s9519_s21 + $0x78] sm:$0xff]   ;;  %vm6960_vm9 = vcmask 949248   ;;  %s10526_s20 = sadd.s32 4294967295, %s9264_s11  }
  0xa1   : > { %1493 = vmatpush1.bf16.msra.mxu0 %v8119_v39  ;;  %v8123_v62 = vld [vmem:[%s9519_s21 + $0x80] sm:$0xff]   ;;  %v8130_v63 = vld [vmem:[%s9519_s21 + $0x88] sm:$0xff]   ;;  %v8138_v0 = vld [vmem:[%s9519_s21 + $0x90] sm:$0xff]   ;;  %s7224_s22 = sshll.u32 %s10526_s20, 1 }
  0xa2   : > { %983 = vrot.lane.b32.xlu0 %v8099_v31, %s9280_s19  ;;  %1036 = vrot.lane.b32.xlu1 %v8100_v32, %s9282_s14  ;;  %v8136_v1 = vld [vmem:[%s9519_s21] sm:$0xff]   ;;  %v8142_v8 = vld [vmem:[%s9519_s21 + $0x98] sm:$0xff]   ;;  %p688_p12 = scmp.lt.s32.totalorder %s7224_s22, 3 }
  0xa3   : > { %1494 = vmatprep.subr.bf16.mxu0 %v8120_v40  ;;  %v8143_v18 = vld [vmem:[%s9519_s21 + $0xa0] sm:$0xff]   ;;  %v8144_v27 = vld [vmem:[%s9519_s21 + $0xa8] sm:$0xff]   ;;  %v8145_v37 = vld [vmem:[%s9519_s21 + $0xb0] sm:$0xff]  }
  0xa4   : > { %v9024_v40 = vld [vmem:[%s9519_s21 + $0x20] sm:$0xff]   ;;  %s10531_s22 = smov (!%p688_p12, %s7224_s22), 3 }
  0xa5   : > { %1495 = vmatpush1.bf16.msra.mxu0 %v8122_v41 }
  0xa6   : > { %879 = vrot.lane.b32.xlu0 %v8097_v29, %s9279_s30  ;;  %932 = vrot.lane.b32.xlu1 %v8099_v31, %s9281_s18 }
  0xa7   : > { %1496 = vmatprep.subr.bf16.mxu0 %v8124_v42 }
  0xa9   : > { %1497 = vmatpush1.bf16.msra.mxu0 %v8126_v44 }
  0xaa   : > { %985 = vrot.lane.b32.xlu0 %v8100_v32, %s9280_s19  ;;  %1038 = vrot.lane.b32.xlu1 %v8101_v38, %s9282_s14 }
  0xab   : > { %1498 = vmatprep.subr.bf16.mxu0 %v8127_v45 }
  0xad   : > { %1499 = vmatpush1.bf16.msra.mxu0 %v8129_v47  ;;  %v9671_v47 = vld [vmem:[%s9519_s21 + $0xb8] sm:$0xff]  }
  0xae   : > { %881 = vrot.lane.b32.xlu0 %v8099_v31, %s9279_s30  ;;  %934 = vrot.lane.b32.xlu1 %v8100_v32, %s9281_s18 }
  0xaf   : > { %1500 = vmatprep.subr.bf16.mxu0 %v8131_v48 }
  0xb1   : > { %1501 = vmatpush1.bf16.msra.mxu0 %v8133_v49 }
  0xb2   : > { %987 = vrot.lane.b32.xlu0 %v8101_v38, %s9280_s19  ;;  %1040 = vrot.lane.b32.xlu1 %v8102_v43, %s9282_s14 }
  0xb3   : > { %1502 = vmatprep.subr.bf16.mxu0 %v8134_v50  ;;  %v9025_v50 = vld [vmem:[%s9519_s21 + $0x28] sm:$0xff]  }
  0xb5   : > { %1503 = vmatpush1.bf16.msra.mxu0 %v8137_v51 }
  0xb6   : > { %883 = vrot.lane.b32.xlu0 %v8100_v32, %s9279_s30  ;;  %936 = vrot.lane.b32.xlu1 %v8101_v38, %s9281_s18 }
  0xb7   : > { %7272 = vmatprep.subr.msk.bf16.mxu0 %vm1481_vm0, %v8139_v52 }
  0xb9   : > { %1519 = vmatpush2.bf16.msra.mxu0 %v1483_v55 }
  0xba   : > { %989 = vrot.lane.b32.xlu0 %v8102_v43, %s9280_s19  ;;  %1042 = vrot.lane.b32.xlu1 %v8103_v46, %s9282_s14 }
  0xbe   : > { %885 = vrot.lane.b32.xlu0 %v8101_v38, %s9279_s30  ;;  %938 = vrot.lane.b32.xlu1 %v8102_v43, %s9281_s18 }
  0xc2   : > { %991 = vrot.lane.b32.xlu0 %v8103_v46, %s9280_s19  ;;  %1044 = vrot.lane.b32.xlu1 %v8104_v54, %s9282_s14 }
  0xc6   : > { %887 = vrot.lane.b32.xlu0 %v8102_v43, %s9279_s30  ;;  %940 = vrot.lane.b32.xlu1 %v8103_v46, %s9281_s18 }
  0xca   : > { %993 = vrot.lane.b32.xlu0 %v8104_v54, %s9280_s19  ;;  %1046 = vrot.lane.b32.xlu1 %v8105_v56, %s9282_s14 }
  0xce   : > { %889 = vrot.lane.b32.xlu0 %v8103_v46, %s9279_s30  ;;  %942 = vrot.lane.b32.xlu1 %v8104_v54, %s9281_s18 }
  0xd2   : > { %995 = vrot.lane.b32.xlu0 %v8105_v56, %s9280_s19  ;;  %1048 = vrot.lane.b32.xlu1 %v8106_v57, %s9282_s14 }
  0xd6   : > { %891 = vrot.lane.b32.xlu0 %v8104_v54, %s9279_s30  ;;  %944 = vrot.lane.b32.xlu1 %v8105_v56, %s9281_s18 }
  0xda   : > { %997 = vrot.lane.b32.xlu0 %v8106_v57, %s9280_s19  ;;  %1050 = vrot.lane.b32.xlu1 %v8107_v58, %s9282_s14 }
  0xde   : > { %893 = vrot.lane.b32.xlu0 %v8105_v56, %s9279_s30  ;;  %946 = vrot.lane.b32.xlu1 %v8106_v57, %s9281_s18 }
  0xe2   : > { %999 = vrot.lane.b32.xlu0 %v8107_v58, %s9280_s19  ;;  %1052 = vrot.lane.b32.xlu1 %v8108_v59, %s9282_s14 }
  0xe6   : > { %895 = vrot.lane.b32.xlu0 %v8106_v57, %s9279_s30  ;;  %948 = vrot.lane.b32.xlu1 %v8107_v58, %s9281_s18  ;;  %v9685_v57 = vld [vmem:[%s9519_s21 + $0xc0] sm:$0xff]  }
  0xea   : > { %1001 = vrot.lane.b32.xlu0 %v8108_v59, %s9280_s19  ;;  %1054 = vrot.lane.b32.xlu1 %v8109_v60, %s9282_s14 }
  0xee   : > { %897 = vrot.lane.b32.xlu0 %v8107_v58, %s9279_s30  ;;  %950 = vrot.lane.b32.xlu1 %v8108_v59, %s9281_s18 }
  0xf2   : > { %1003 = vrot.lane.b32.xlu0 %v8109_v60, %s9280_s19  ;;  %1056 = vrot.lane.b32.xlu1 %v8116_v61, %s9282_s14 }
  0xf6   : > { %899 = vrot.lane.b32.xlu0 %v8108_v59, %s9279_s30  ;;  %952 = vrot.lane.b32.xlu1 %v8109_v60, %s9281_s18 }
  0xfa   : > { %1005 = vrot.lane.b32.xlu0 %v8116_v61, %s9280_s19  ;;  %1058 = vrot.lane.b32.xlu1 %v8123_v62, %s9282_s14 }
  0xfe   : > { %901 = vrot.lane.b32.xlu0 %v8109_v60, %s9279_s30  ;;  %954 = vrot.lane.b32.xlu1 %v8116_v61, %s9281_s18  ;;  %v8151_v60 = vld [vmem:[%s10469_s3 + $0x74] ss:$8 sps:$4 sm:$0xff]  }
  0xff   : > { %2248 = vmatprep.subr.bf16.mxu1 %v8151_v60 }
 0x102   : > { %1007 = vrot.lane.b32.xlu0 %v8123_v62, %s9280_s19  ;;  %1060 = vrot.lane.b32.xlu1 %v8130_v63, %s9282_s14 }
 0x106   : > { %903 = vrot.lane.b32.xlu0 %v8116_v61, %s9279_s30  ;;  %956 = vrot.lane.b32.xlu1 %v8123_v62, %s9281_s18  ;;  %v8153_v61 = vld [vmem:[%s10469_s3 + $0x70] ss:$8 sps:$4 sm:$0xff]  }
 0x107   : > { %2249 = vmatpush1.bf16.msra.mxu1 %v8153_v61  ;;  %v8180_v61 = vld [vmem:[%s10469_s3 + $0xe0] ss:$8 sps:$4 sm:$0xff]  }
 0x108   : > { %v876_v2 = vpop.permute.xlu0 %875  ;;  %v982_v3 = vpop.permute.xlu1 %981 }
 0x109   : > { %v1085_v4 = vsel %vm1082_vm1, %v8136_v1, %v876_v2 }
 0x10a   : > { %1009 = vrot.lane.b32.xlu0 %v8130_v63, %s9280_s19  ;;  %1062 = vrot.lane.b32.xlu1 %v8138_v0, %s9282_s14 }
 0x10c   : > { %v929_v5 = vpop.permute.xlu0 %928  ;;  %v1035_v7 = vpop.permute.xlu1 %1034 }
 0x10d   : > { %v1157_v6 = vsel %vm1155_vm2, %v1085_v4, %v929_v5  ;;  %7273 = vmatprep.mubr.msk.bf16.mxu0 %vm1432_vm3, %v1035_v7  ;;  %v8157_v4 = vld [vmem:[%s10469_s3 + $0x54] ss:$8 sps:$4 sm:$0xff]  }
 0x10e   : > { %905 = vrot.lane.b32.xlu0 %v8123_v62, %s9279_s30  ;;  %v1206_v9 = vsel %vm1204_vm4, %v1157_v6, %v982_v3  ;;  %958 = vrot.lane.b32.xlu1 %v8130_v63, %s9281_s18  ;;  %v8154_v62 = vld [vmem:[%s10469_s3 + $0x64] ss:$8 sps:$4 sm:$0xff]   ;;  %v8156_v3 = vld [vmem:[%s10469_s3 + $0x60] ss:$8 sps:$4 sm:$0xff]  }
 0x10f   : > { %v1255_v10 = vsel %vm1253_vm5, %v1206_v9, %v1035_v7  ;;  %2250 = vmatprep.subr.bf16.mxu1 %v8154_v62  ;;  %v8159_v9 = vld [vmem:[%s10469_s3 + $0x50] ss:$8 sps:$4 sm:$0xff]  }
 0x110   : > { %v878_v11 = vpop.permute.xlu0 %877  ;;  %1521 = vmatmul.mubr.bf16.vlgmr.msra.gmra.mxu0 %v1255_v10  ;;  %v931_v13 = vpop.permute.xlu1 %930  ;;  %2251 = vmatpush1.bf16.msra.mxu1 %v8156_v3 }
 0x111   : > { %v1088_v12 = vsel %vm1082_vm1, %v9538_v28, %v878_v11  ;;  %v8160_v11 = vld [vmem:[%s10469_s3 + $0x44] ss:$8 sps:$4 sm:$0xff]   ;;  %2252 = vmatprep.subr.bf16.mxu1 %v8157_v4  ;;  %v8183_v4 = vld [vmem:[%s10469_s3 + $0xd0] ss:$8 sps:$4 sm:$0xff]  }
 0x112   : > { %v1159_v14 = vsel %vm1155_vm2, %v1088_v12, %v931_v13  ;;  %1011 = vrot.lane.b32.xlu0 %v8138_v0, %s9280_s19  ;;  %1064 = vrot.lane.b32.xlu1 %v8142_v8, %s9282_s14  ;;  %v9027_v13 = vld [vmem:[%s9519_s21 + $0x38] sm:$0xff]  }
 0x114   : > { %v984_v15 = vpop.permute.xlu0 %983  ;;  %v1037_v17 = vpop.permute.xlu1 %1036  ;;  %2253 = vmatpush1.bf16.msra.mxu1 %v8159_v9 }
 0x115   : > { %v1208_v16 = vsel %vm1204_vm4, %v1159_v14, %v984_v15  ;;  %7274 = vmatprep.mubr.msk.bf16.mxu0 %vm1432_vm3, %v1037_v17  ;;  %2254 = vmatprep.subr.bf16.mxu1 %v8160_v11 }
 0x116   : > { %907 = vrot.lane.b32.xlu0 %v8130_v63, %s9279_s30  ;;  %v1258_v19 = vsel %vm1253_vm5, %v1208_v16, %v1037_v17  ;;  %960 = vrot.lane.b32.xlu1 %v8138_v0, %s9281_s18  ;;  %v9026_v63 = vld [vmem:[%s9519_s21 + $0x30] sm:$0xff]   ;;  %v8162_v16 = vld [vmem:[%s10469_s3 + $0x40] ss:$8 sps:$4 sm:$0xff]  }
 0x118   : > { %v880_v20 = vpop.permute.xlu0 %879  ;;  %1531 = vmatmul.mubr.bf16.gmra.mxu0 %v1258_v19  ;;  %v933_v22 = vpop.permute.xlu1 %932  ;;  %2255 = vmatpush1.bf16.msra.mxu1 %v8162_v16 }
 0x119   : > { %v1091_v21 = vsel %vm1082_vm1, %v9544_v30, %v880_v20  ;;  %v9023_v30 = vld [vmem:[%s9519_s21 + $0x18] sm:$0xff]  }
 0x11a   : > { %v1161_v23 = vsel %vm1155_vm2, %v1091_v21, %v933_v22  ;;  %1013 = vrot.lane.b32.xlu0 %v8142_v8, %s9280_s19  ;;  %1066 = vrot.lane.b32.xlu1 %v8143_v18, %s9282_s14  ;;  %v8149_v22 = vld [vmem:[%s9519_s21 + $0xd0] sm:$0xff]  }
 0x11c   : > { %v986_v24 = vpop.permute.xlu0 %985  ;;  %v1039_v26 = vpop.permute.xlu1 %1038 }
 0x11d   : > { %v1210_v25 = vsel %vm1204_vm4, %v1161_v23, %v986_v24  ;;  %7275 = vmatprep.mubr.msk.bf16.mxu0 %vm1432_vm3, %v1039_v26  ;;  %v8165_v23 = vld [vmem:[%s10469_s3 + $0x30] ss:$8 sps:$4 sm:$0xff]  }
 0x11e   : > { %909 = vrot.lane.b32.xlu0 %v8138_v0, %s9279_s30  ;;  %v1261_v28 = vsel %vm1253_vm5, %v1210_v25, %v1039_v26  ;;  %962 = vrot.lane.b32.xlu1 %v8142_v8, %s9281_s18  ;;  %v8166_v25 = vld [vmem:[%s10469_s3 + $0x24] ss:$8 sps:$4 sm:$0xff]  }
 0x120   : > { %v882_v29 = vpop.permute.xlu0 %881  ;;  %1541 = vmatmul.mubr.bf16.gmra.mxu0 %v1261_v28  ;;  %v935_v32 = vpop.permute.xlu1 %934 }
 0x121   : > { %v1094_v31 = vsel %vm1082_vm1, %v9023_v30, %v882_v29  ;;  %v8168_v30 = vld [vmem:[%s10469_s3 + $0x20] ss:$8 sps:$4 sm:$0xff]  }
 0x122   : > { %v1163_v33 = vsel %vm1155_vm2, %v1094_v31, %v935_v32  ;;  %1015 = vrot.lane.b32.xlu0 %v8143_v18, %s9280_s19  ;;  %1068 = vrot.lane.b32.xlu1 %v8144_v27, %s9282_s14 }
 0x124   : > { %v988_v34 = vpop.permute.xlu0 %987  ;;  %v1041_v36 = vpop.permute.xlu1 %1040 }
 0x125   : > { %v1212_v35 = vsel %vm1204_vm4, %v1163_v33, %v988_v34  ;;  %7276 = vmatprep.mubr.msk.bf16.mxu0 %vm1432_vm3, %v1041_v36 }
 0x126   : > { %911 = vrot.lane.b32.xlu0 %v8142_v8, %s9279_s30  ;;  %v1264_v38 = vsel %vm1253_vm5, %v1212_v35, %v1041_v36  ;;  %964 = vrot.lane.b32.xlu1 %v8143_v18, %s9281_s18  ;;  %v8148_v8 = vld [vmem:[%s9519_s21 + $0xc8] sm:$0xff]   ;;  %v8150_v35 = vld [vmem:[%s9519_s21 + $0xd8] sm:$0xff]  }
 0x128   : > { %v884_v39 = vpop.permute.xlu0 %883  ;;  %1551 = vmatmul.mubr.bf16.gmra.mxu0 %v1264_v38  ;;  %v937_v42 = vpop.permute.xlu1 %936  ;;  %v8169_v38 = vld [vmem:[%s10469_s3 + $0x14] ss:$8 sps:$4 sm:$0xff]  }
 0x129   : > { %v1097_v41 = vsel %vm1082_vm1, %v9024_v40, %v884_v39  ;;  %v9029_v39 = vld [vmem:[%s9519_s21 + $0x48] sm:$0xff]  }
 0x12a   : > { %v1165_v43 = vsel %vm1155_vm2, %v1097_v41, %v937_v42  ;;  %1017 = vrot.lane.b32.xlu0 %v8144_v27, %s9280_s19  ;;  %1070 = vrot.lane.b32.xlu1 %v8145_v37, %s9282_s14  ;;  %v8171_v42 = vld [vmem:[%s10469_s3 + $0x10] ss:$8 sps:$4 sm:$0xff]  }
 0x12c   : > { %v990_v44 = vpop.permute.xlu0 %989  ;;  %v1043_v46 = vpop.permute.xlu1 %1042 }
 0x12d   : > { %v1214_v45 = vsel %vm1204_vm4, %v1165_v43, %v990_v44  ;;  %7277 = vmatprep.mubr.msk.bf16.mxu0 %vm1432_vm3, %v1043_v46 }
 0x12e   : > { %913 = vrot.lane.b32.xlu0 %v8143_v18, %s9279_s30  ;;  %v1267_v48 = vsel %vm1253_vm5, %v1214_v45, %v1043_v46  ;;  %966 = vrot.lane.b32.xlu1 %v8144_v27, %s9281_s18  ;;  %v8163_v18 = vld [vmem:[%s10469_s3 + $0x34] ss:$8 sps:$4 sm:$0xff]   ;;  %v8172_v45 = vld [vmem:[%s10469_s3 + $0x4] ss:$8 sps:$4 sm:$0xff]  }
 0x12f   : > { %2256 = vmatprep.subr.bf16.mxu1 %v8163_v18 }
 0x130   : > { %v886_v49 = vpop.permute.xlu0 %885  ;;  %1561 = vmatmul.mubr.bf16.gmra.mxu0 %v1267_v48  ;;  %v939_v52 = vpop.permute.xlu1 %938  ;;  %2257 = vmatpush1.bf16.msra.mxu1 %v8165_v23  ;;  %v8174_v48 = vld [vmem:[%s10469_s3] ss:$8 sps:$4 sm:$0xff]  }
 0x131   : > { %v1100_v51 = vsel %vm1082_vm1, %v9025_v50, %v886_v49  ;;  %2258 = vmatprep.subr.bf16.mxu1 %v8166_v25  ;;  %v8192_v23 = vld [vmem:[%s10469_s3 + $0xa0] ss:$8 sps:$4 sm:$0xff]  }
 0x132   : > { %v1167_v53 = vsel %vm1155_vm2, %v1100_v51, %v939_v52  ;;  %1019 = vrot.lane.b32.xlu0 %v8145_v37, %s9280_s19  ;;  %1072 = vrot.lane.b32.xlu1 %v9671_v47, %s9282_s14  ;;  %v8175_v51 = vld [vmem:[%s10469_s3 + $0xf4] ss:$8 sps:$4 sm:$0xff]  }
 0x133   : > { %v9030_v52 = vld [vmem:[%s9519_s21 + $0x50] sm:$0xff]  }
 0x134   : > { %v992_v54 = vpop.permute.xlu0 %991  ;;  %v1045_v56 = vpop.permute.xlu1 %1044  ;;  %2259 = vmatpush1.bf16.msra.mxu1 %v8168_v30  ;;  %v8195_v30 = vld [vmem:[%s10469_s3 + $0x90] ss:$8 sps:$4 sm:$0xff]  }
 0x135   : > { %v1216_v55 = vsel %vm1204_vm4, %v1167_v53, %v992_v54  ;;  %7278 = vmatprep.mubr.msk.bf16.mxu0 %vm1432_vm3, %v1045_v56  ;;  %2260 = vmatprep.subr.bf16.mxu1 %v8169_v38 }
 0x136   : > { %915 = vrot.lane.b32.xlu0 %v8144_v27, %s9279_s30  ;;  %v1270_v58 = vsel %vm1253_vm5, %v1216_v55, %v1045_v56  ;;  %968 = vrot.lane.b32.xlu1 %v8145_v37, %s9281_s18  ;;  %v9028_v27 = vld [vmem:[%s9519_s21 + $0x40] sm:$0xff]   ;;  %v8177_v55 = vld [vmem:[%s10469_s3 + $0xf0] ss:$8 sps:$4 sm:$0xff]  }
 0x138   : > { %v888_v59 = vpop.permute.xlu0 %887  ;;  %1571 = vmatmul.mubr.bf16.gmra.mxu0 %v1270_v58  ;;  %v941_v1 = vpop.permute.xlu1 %940  ;;  %2261 = vmatpush1.bf16.msra.mxu1 %v8171_v42  ;;  %v8178_v58 = vld [vmem:[%s10469_s3 + $0xe4] ss:$8 sps:$4 sm:$0xff]  }
 0x139   : > { %v1103_v0 = vsel %vm1082_vm1, %v9026_v63, %v888_v59  ;;  %2262 = vmatprep.subr.bf16.mxu1 %v8172_v45 }
 0x13a   : > { %v1169_v2 = vsel %vm1155_vm2, %v1103_v0, %v941_v1  ;;  %1021 = vrot.lane.b32.xlu0 %v9671_v47, %s9280_s19  ;;  %1074 = vrot.lane.b32.xlu1 %v9685_v57, %s9282_s14  ;;  %v8181_v0 = vld [vmem:[%s10469_s3 + $0xd4] ss:$8 sps:$4 sm:$0xff]  }
 0x13b   : > { %v9031_v1 = vld [vmem:[%s9519_s21 + $0x58] sm:$0xff]  }
 0x13c   : > { %v994_v5 = vpop.permute.xlu0 %993  ;;  %v1047_v7 = vpop.permute.xlu1 %1046  ;;  %2263 = vmatpush1.bf16.msra.mxu1 %v8174_v48  ;;  %v9035_v48 = vld [vmem:[%s9519_s21 + $0x78] sm:$0xff]  }
 0x13d   : > { %v1218_v6 = vsel %vm1204_vm4, %v1169_v2, %v994_v5  ;;  %7279 = vmatprep.mubr.msk.bf16.mxu0 %vm1432_vm3, %v1047_v7  ;;  %2264 = vmatprep.subr.bf16.mxu1 %v8175_v51 }
 0x13e   : > { %917 = vrot.lane.b32.xlu0 %v8145_v37, %s9279_s30  ;;  %v1273_v10 = vsel %vm1253_vm5, %v1218_v6, %v1047_v7  ;;  %970 = vrot.lane.b32.xlu1 %v9671_v47, %s9281_s18  ;;  %v8184_v7 = vld [vmem:[%s10469_s3 + $0xc4] ss:$8 sps:$4 sm:$0xff]  }
 0x140   : > { %v890_v12 = vpop.permute.xlu0 %889  ;;  %1581 = vmatmul.mubr.bf16.gmra.mxu0 %v1273_v10  ;;  %v943_v15 = vpop.permute.xlu1 %942  ;;  %2265 = vmatpush2.bf16.msra.mxu1 %v8177_v55  ;;  %v8186_v10 = vld [vmem:[%s10469_s3 + $0xc0] ss:$8 sps:$4 sm:$0xff]  }
 0x141   : > { %v1106_v14 = vsel %vm1082_vm1, %v9027_v13, %v890_v12  ;;  %2266 = vmatprep.subr.bf16.mxu1 %v8178_v58  ;;  %v8187_v13 = vld [vmem:[%s10469_s3 + $0xb4] ss:$8 sps:$4 sm:$0xff]  }
 0x142   : > { %v1171_v17 = vsel %vm1155_vm2, %v1106_v14, %v943_v15  ;;  %1023 = vrot.lane.b32.xlu0 %v9685_v57, %s9280_s19  ;;  %1076 = vrot.lane.b32.xlu1 %v8148_v8, %s9282_s14  ;;  %v9032_v14 = vld [vmem:[%s9519_s21 + $0x60] sm:$0xff]  }
 0x144   : > { %v996_v19 = vpop.permute.xlu0 %995  ;;  %v1049_v21 = vpop.permute.xlu1 %1048  ;;  %2267 = vmatpush2.bf16.msra.mxu1 %v8180_v61 }
 0x145   : > { %v1220_v20 = vsel %vm1204_vm4, %v1171_v17, %v996_v19  ;;  %7280 = vmatprep.mubr.msk.bf16.mxu0 %vm1432_vm3, %v1049_v21  ;;  %2268 = vmatprep.subr.bf16.mxu1 %v8181_v0  ;;  %v8189_v17 = vld [vmem:[%s10469_s3 + $0xb0] ss:$8 sps:$4 sm:$0xff]  }
 0x146   : > { %v1276_v24 = vsel %vm1253_vm5, %v1220_v20, %v1049_v21  ;;  %919 = vrot.lane.b32.xlu0 %v9671_v47, %s9279_s30  ;;  %972 = vrot.lane.b32.xlu1 %v9685_v57, %s9281_s18  ;;  %v8190_v20 = vld [vmem:[%s10469_s3 + $0xa4] ss:$8 sps:$4 sm:$0xff]  }
 0x148   : > { %v892_v26 = vpop.permute.xlu0 %891  ;;  %1591 = vmatmul.mubr.bf16.gmra.mxu0 %v1276_v24  ;;  %v945_v29 = vpop.permute.xlu1 %944  ;;  %2269 = vmatpush2.bf16.msra.mxu1 %v8183_v4 }
 0x149   : > { %v1109_v28 = vsel %vm1082_vm1, %v9028_v27, %v892_v26  ;;  %2270 = vmatprep.subr.bf16.mxu1 %v8184_v7  ;;  %v8193_v26 = vld [vmem:[%s10469_s3 + $0x94] ss:$8 sps:$4 sm:$0xff]   ;;  %v9033_v27 = vld [vmem:[%s9519_s21 + $0x68] sm:$0xff]  }
 0x14a   : > { %v1173_v31 = vsel %vm1155_vm2, %v1109_v28, %v945_v29  ;;  %1025 = vrot.lane.b32.xlu0 %v8148_v8, %s9280_s19  ;;  %1078 = vrot.lane.b32.xlu1 %v8149_v22, %s9282_s14 }
 0x14c   : > { %v998_v32 = vpop.permute.xlu0 %997  ;;  %v1051_v34 = vpop.permute.xlu1 %1050  ;;  %2271 = vmatpush2.bf16.msra.mxu1 %v8186_v10 }
 0x14d   : > { %v1222_v33 = vsel %vm1204_vm4, %v1173_v31, %v998_v32  ;;  %7281 = vmatprep.mubr.msk.bf16.mxu0 %vm1432_vm3, %v1051_v34  ;;  %2272 = vmatprep.subr.bf16.mxu1 %v8187_v13 }
 0x14e   : > { %v1279_v36 = vsel %vm1253_vm5, %v1222_v33, %v1051_v34  ;;  %921 = vrot.lane.b32.xlu0 %v9685_v57, %s9279_s30  ;;  %974 = vrot.lane.b32.xlu1 %v8148_v8, %s9281_s18  ;;  %v8196_v33 = vld [vmem:[%s10469_s3 + $0x84] ss:$8 sps:$4 sm:$0xff]  }
 0x150   : > { %v894_v37 = vpop.permute.xlu0 %893  ;;  %1601 = vmatmul.mubr.bf16.gmra.mxu0 %v1279_v36  ;;  %v947_v41 = vpop.permute.xlu1 %946  ;;  %2273 = vmatpush2.bf16.msra.mxu1 %v8189_v17  ;;  %v8198_v36 = vld [vmem:[%s10469_s3 + $0x80] ss:$8 sps:$4 sm:$0xff]  }
 0x151   : > { %v1112_v40 = vsel %vm1082_vm1, %v9029_v39, %v894_v37  ;;  %2274 = vmatprep.subr.bf16.mxu1 %v8190_v20  ;;  %v9034_v39 = vld [vmem:[%s9519_s21 + $0x70] sm:$0xff]   ;;  %v9039_v20 = vld [vmem:[%s9519_s21 + $0x98] sm:$0xff]  }
 0x152   : > { %v1175_v43 = vsel %vm1155_vm2, %v1112_v40, %v947_v41  ;;  %1027 = vrot.lane.b32.xlu0 %v8149_v22, %s9280_s19  ;;  %1080 = vrot.lane.b32.xlu1 %v8150_v35, %s9282_s14  ;;  %s7225_s19 = sshll.u32 %s10531_s22, 3 }
 0x153   : > { %s691_s28 = scalar_lea.vmem %s10475_s9, %s7225_s19 }
 0x154   : > { %v1000_v44 = vpop.permute.xlu0 %999  ;;  %v1053_v47 = vpop.permute.xlu1 %1052  ;;  %2275 = vmatpush2.bf16.msra.mxu1 %v8192_v23 }
 0x155   : > { %v1224_v46 = vsel %vm1204_vm4, %v1175_v43, %v1000_v44  ;;  %7282 = vmatprep.mubr.msk.bf16.mxu0 %vm1432_vm3, %v1053_v47  ;;  %2276 = vmatprep.subr.bf16.mxu1 %v8193_v26 }
 0x156   : > { %v1282_v49 = vsel %vm1253_vm5, %v1224_v46, %v1053_v47 }
 0x158   : > { %v896_v50 = vpop.permute.xlu0 %895  ;;  %1611 = vmatmul.mubr.bf16.gmra.mxu0 %v1282_v49  ;;  %v949_v54 = vpop.permute.xlu1 %948  ;;  %2277 = vmatpush2.bf16.msra.mxu1 %v8195_v30 }
 0x159   : > { %v1115_v53 = vsel %vm1082_vm1, %v9030_v52, %v896_v50  ;;  %2278 = vmatprep.subr.bf16.mxu1 %v8196_v33 }
 0x15a   : > { %v1177_v56 = vsel %vm1155_vm2, %v1115_v53, %v949_v54 }
 0x15c   : > { %v1002_v57 = vpop.permute.xlu0 %1001  ;;  %v1055_v60 = vpop.permute.xlu1 %1054  ;;  %2279 = vmatpush2.bf16.msra.mxu1 %v8198_v36 }
 0x15d   : > { %v1226_v59 = vsel %vm1204_vm4, %v1177_v56, %v1002_v57  ;;  %7283 = vmatprep.mubr.msk.bf16.mxu0 %vm1432_vm3, %v1055_v60  ;;  %v9036_v57 = vld [vmem:[%s9519_s21 + $0x80] sm:$0xff]  }
 0x15e   : > { %v1285_v62 = vsel %vm1253_vm5, %v1226_v59, %v1055_v60 }
 0x160   : > { %v898_v63 = vpop.permute.xlu0 %897  ;;  %1621 = vmatmul.mubr.bf16.gmra.mxu0 %v1285_v62  ;;  %v951_v3 = vpop.permute.xlu1 %950 }
 0x161   : > { %v1118_v2 = vsel %vm1082_vm1, %v9031_v1, %v898_v63 }
 0x162   : > { %v1179_v5 = vsel %vm1155_vm2, %v1118_v2, %v951_v3  ;;  %v9037_v2 = vld [vmem:[%s9519_s21 + $0x88] sm:$0xff]  }
 0x164   : > { %v1004_v6 = vpop.permute.xlu0 %1003  ;;  %v1057_v9 = vpop.permute.xlu1 %1056 }
 0x165   : > { %v1228_v8 = vsel %vm1204_vm4, %v1179_v5, %v1004_v6  ;;  %7284 = vmatprep.mubr.msk.bf16.mxu0 %vm1432_vm3, %v1057_v9 }
 0x166   : > { %v1288_v11 = vsel %vm1253_vm5, %v1228_v8, %v1057_v9 }
 0x168   : > { %v900_v12 = vpop.permute.xlu0 %899  ;;  %1631 = vmatmul.mubr.bf16.gmra.mxu0 %v1288_v11  ;;  %v953_v16 = vpop.permute.xlu1 %952  ;;  %v9038_v11 = vld [vmem:[%s9519_s21 + $0x90] sm:$0xff]  }
 0x169   : > { %v1121_v15 = vsel %vm1082_vm1, %v9032_v14, %v900_v12 }
 0x16a   : > { %v1181_v18 = vsel %vm1155_vm2, %v1121_v15, %v953_v16 }
 0x16c   : > { %v1006_v19 = vpop.permute.xlu0 %1005  ;;  %v1059_v22 = vpop.permute.xlu1 %1058 }
 0x16d   : > { %v1230_v21 = vsel %vm1204_vm4, %v1181_v18, %v1006_v19  ;;  %7285 = vmatprep.mubr.msk.bf16.mxu0 %vm1432_vm3, %v1059_v22 }
 0x16e   : > { %v1291_v24 = vsel %vm1253_vm5, %v1230_v21, %v1059_v22 }
 0x170   : > { %v902_v25 = vpop.permute.xlu0 %901  ;;  %1641 = vmatmul.mubr.bf16.gmra.mxu0 %v1291_v24  ;;  %v955_v29 = vpop.permute.xlu1 %954 }
 0x171   : > { %v1124_v28 = vsel %vm1082_vm1, %v9033_v27, %v902_v25 }
 0x172   : > { %v1183_v31 = vsel %vm1155_vm2, %v1124_v28, %v955_v29  ;;  %v9040_v29 = vld [vmem:[%s9519_s21 + $0xa0] sm:$0xff]  }
 0x174   : > { %v1008_v32 = vpop.permute.xlu0 %1007  ;;  %v1061_v35 = vpop.permute.xlu1 %1060 }
 0x175   : > { %v1232_v34 = vsel %vm1204_vm4, %v1183_v31, %v1008_v32  ;;  %7286 = vmatprep.mubr.msk.bf16.mxu0 %vm1432_vm3, %v1061_v35 }
 0x176   : > { %v1294_v37 = vsel %vm1253_vm5, %v1232_v34, %v1061_v35 }
 0x178   : > { %v904_v38 = vpop.permute.xlu0 %903  ;;  %1651 = vmatmul.mubr.bf16.gmra.mxu0 %v1294_v37  ;;  %v957_v41 = vpop.permute.xlu1 %956 }
 0x179   : > { %v1127_v40 = vsel %vm1082_vm1, %v9034_v39, %v904_v38  ;;  %v9041_v38 = vld [vmem:[%s9519_s21 + $0xa8] sm:$0xff]  }
 0x17a   : > { %v1185_v42 = vsel %vm1155_vm2, %v1127_v40, %v957_v41 }
 0x17c   : > { %v1010_v43 = vpop.permute.xlu0 %1009  ;;  %v1063_v45 = vpop.permute.xlu1 %1062 }
 0x17d   : > { %v1234_v44 = vsel %vm1204_vm4, %v1185_v42, %v1010_v43  ;;  %7287 = vmatprep.mubr.msk.bf16.mxu0 %vm1432_vm3, %v1063_v45 }
 0x17e   : > { %v1297_v46 = vsel %vm1253_vm5, %v1234_v44, %v1063_v45 }
 0x180   : > { %v906_v47 = vpop.permute.xlu0 %905  ;;  %1661 = vmatmul.mubr.bf16.gmra.mxu0 %v1297_v46  ;;  %v959_v50 = vpop.permute.xlu1 %958 }
 0x181   : > { %v1130_v49 = vsel %vm1082_vm1, %v9035_v48, %v906_v47  ;;  %v9042_v47 = vld [vmem:[%s9519_s21 + $0xb0] sm:$0xff]  }
 0x182   : > { %v1187_v51 = vsel %vm1155_vm2, %v1130_v49, %v959_v50 }
 0x184   : > { %v1012_v52 = vpop.permute.xlu0 %1011  ;;  %v1065_v54 = vpop.permute.xlu1 %1064 }
 0x185   : > { %v1236_v53 = vsel %vm1204_vm4, %v1187_v51, %v1012_v52  ;;  %7288 = vmatprep.mubr.msk.bf16.mxu0 %vm1432_vm3, %v1065_v54 }
 0x186   : > { %v1300_v55 = vsel %vm1253_vm5, %v1236_v53, %v1065_v54 }
 0x188   : > { %v908_v56 = vpop.permute.xlu0 %907  ;;  %1671 = vmatmul.mubr.bf16.gmra.mxu0 %v1300_v55  ;;  %v961_v59 = vpop.permute.xlu1 %960 }
 0x189   : > { %v1133_v58 = vsel %vm1082_vm1, %v9036_v57, %v908_v56  ;;  %v9043_v56 = vld [vmem:[%s9519_s21 + $0xb8] sm:$0xff]  }
 0x18a   : > { %v1189_v60 = vsel %vm1155_vm2, %v1133_v58, %v961_v59 }
 0x18c   : > { %v1014_v61 = vpop.permute.xlu0 %1013  ;;  %v1067_v63 = vpop.permute.xlu1 %1066 }
 0x18d   : > { %v1238_v62 = vsel %vm1204_vm4, %v1189_v60, %v1014_v61  ;;  %7289 = vmatprep.mubr.msk.bf16.mxu0 %vm1432_vm3, %v1067_v63 }
 0x18e   : > { %v1303_v0 = vsel %vm1253_vm5, %v1238_v62, %v1067_v63  ;;  %v8201_v63 = vld [vmem:[%s10469_s3 + $0x174] ss:$8 sps:$4 sm:$0xff]  }
 0x18f   : > { %2381 = vmatprep.subr.bf16.mxu1 %v8201_v63 }
 0x190   : > { %v910_v1 = vpop.permute.xlu0 %909  ;;  %1681 = vmatmul.mubr.bf16.gmra.mxu0 %v1303_v0  ;;  %v963_v4 = vpop.permute.xlu1 %962 }
 0x191   : > { %v1136_v3 = vsel %vm1082_vm1, %v9037_v2, %v910_v1 }
 0x192   : > { %v1191_v5 = vsel %vm1155_vm2, %v1136_v3, %v963_v4 }
 0x194   : > { %v1016_v6 = vpop.permute.xlu0 %1015  ;;  %v1069_v8 = vpop.permute.xlu1 %1068 }
 0x195   : > { %v1240_v7 = vsel %vm1204_vm4, %v1191_v5, %v1016_v6  ;;  %7290 = vmatprep.mubr.msk.bf16.mxu0 %vm1432_vm3, %v1069_v8 }
 0x196   : > { %v1306_v9 = vsel %vm1253_vm5, %v1240_v7, %v1069_v8 }
 0x198   : > { %v912_v10 = vpop.permute.xlu0 %911  ;;  %1691 = vmatmul.mubr.bf16.gmra.mxu0 %v1306_v9  ;;  %v965_v13 = vpop.permute.xlu1 %964 }
 0x199   : > { %v1139_v12 = vsel %vm1082_vm1, %v9038_v11, %v912_v10 }
 0x19a   : > { %v1193_v14 = vsel %vm1155_vm2, %v1139_v12, %v965_v13 }
 0x19c   : > { %v1018_v15 = vpop.permute.xlu0 %1017  ;;  %v1071_v17 = vpop.permute.xlu1 %1070 }
 0x19d   : > { %v1242_v16 = vsel %vm1204_vm4, %v1193_v14, %v1018_v15  ;;  %7291 = vmatprep.mubr.msk.bf16.mxu0 %vm1432_vm3, %v1071_v17 }
 0x19e   : > { %v1309_v18 = vsel %vm1253_vm5, %v1242_v16, %v1071_v17 }
 0x1a0   : > { %v914_v19 = vpop.permute.xlu0 %913  ;;  %1701 = vmatmul.mubr.bf16.gmra.mxu0 %v1309_v18  ;;  %v967_v22 = vpop.permute.xlu1 %966  ;;  %v9922_v18 = vld [vmem:[#allocation5] ss:$0 sm:$0xff] }
 0x1a1   : > { %v1142_v21 = vsel %vm1082_vm1, %v9039_v20, %v914_v19 }
 0x1a2   : > { %v1195_v23 = vsel %vm1155_vm2, %v1142_v21, %v967_v22 }
 0x1a4   : > { %v1020_v24 = vpop.permute.xlu0 %1019  ;;  %v1073_v26 = vpop.permute.xlu1 %1072 }
 0x1a5   : > { %v1244_v25 = vsel %vm1204_vm4, %v1195_v23, %v1020_v24  ;;  %7292 = vmatprep.mubr.msk.bf16.mxu0 %vm1432_vm3, %v1073_v26 }
 0x1a6   : > { %v1312_v27 = vsel %vm1253_vm5, %v1244_v25, %v1073_v26 }
 0x1a8   : > { %v916_v28 = vpop.permute.xlu0 %915  ;;  %1711 = vmatmul.mubr.bf16.gmra.mxu0 %v1312_v27  ;;  %v969_v31 = vpop.permute.xlu1 %968 }
 0x1a9   : > { %v1145_v30 = vsel %vm1082_vm1, %v9040_v29, %v916_v28 }
 0x1aa   : > { %v1197_v32 = vsel %vm1155_vm2, %v1145_v30, %v969_v31 }
 0x1ac   : > { %v1022_v33 = vpop.permute.xlu0 %1021  ;;  %v1075_v35 = vpop.permute.xlu1 %1074 }
 0x1ad   : > { %v1246_v34 = vsel %vm1204_vm4, %v1197_v32, %v1022_v33  ;;  %7293 = vmatprep.mubr.msk.bf16.mxu0 %vm1432_vm3, %v1075_v35 }
 0x1ae   : > { %v1315_v36 = vsel %vm1253_vm5, %v1246_v34, %v1075_v35 }
 0x1b0   : > { %v918_v37 = vpop.permute.xlu0 %917  ;;  %1721 = vmatmul.mubr.bf16.gmra.mxu0 %v1315_v36  ;;  %v971_v40 = vpop.permute.xlu1 %970 }
 0x1b1   : > { %v1148_v39 = vsel %vm1082_vm1, %v9041_v38, %v918_v37 }
 0x1b2   : > { %v1199_v41 = vsel %vm1155_vm2, %v1148_v39, %v971_v40 }
 0x1b4   : > { %v1024_v42 = vpop.permute.xlu0 %1023  ;;  %v1077_v44 = vpop.permute.xlu1 %1076 }
 0x1b5   : > { %v1248_v43 = vsel %vm1204_vm4, %v1199_v41, %v1024_v42  ;;  %7294 = vmatprep.mubr.msk.bf16.mxu0 %vm1432_vm3, %v1077_v44 }
 0x1b6   : > { %v1318_v45 = vsel %vm1253_vm5, %v1248_v43, %v1077_v44 }
 0x1b8   : > { %1731 = vmatmul.mubr.bf16.gmra.mxu0 %v1318_v45  ;;  %v920_v46 = vpop.permute.xlu0 %919  ;;  %v973_v49 = vpop.permute.xlu1 %972 }
 0x1b9   : > { %v1151_v48 = vsel %vm1082_vm1, %v9042_v47, %v920_v46 }
 0x1ba   : > { %v1201_v50 = vsel %vm1155_vm2, %v1151_v48, %v973_v49 }
 0x1bc   : > { %v1026_v51 = vpop.permute.xlu0 %1025  ;;  %v1079_v53 = vpop.permute.xlu1 %1078 }
 0x1bd   : > { %v1250_v52 = vsel %vm1204_vm4, %v1201_v50, %v1026_v51  ;;  %7295 = vmatprep.mubr.msk.bf16.mxu0 %vm1432_vm3, %v1079_v53  ;;  %v8199_v51 = vld [vmem:[%s10469_s3 + $0x170] ss:$8 sps:$4 sm:$0xff]  }
 0x1be   : > { %v1321_v54 = vsel %vm1253_vm5, %v1250_v52, %v1079_v53 }
 0x1c0   : > { %1741 = vmatmul.mubr.bf16.gmra.mxu0 %v1321_v54  ;;  %v922_v55 = vpop.permute.xlu0 %921  ;;  %v975_v58 = vpop.permute.xlu1 %974  ;;  %v8204_v54 = vld [vmem:[%s10469_s3 + $0x164] ss:$8 sps:$4 sm:$0xff]  }
 0x1c1   : > { %v1154_v57 = vsel %vm1082_vm1, %v9043_v56, %v922_v55 }
 0x1c2   : > { %v1203_v59 = vsel %vm1155_vm2, %v1154_v57, %v975_v58 }
 0x1c4   : > { %v1028_v60 = vpop.permute.xlu0 %1027  ;;  %v1081_v62 = vpop.permute.xlu1 %1080 }
 0x1c5   : > { %v1252_v61 = vsel %vm1204_vm4, %v1203_v59, %v1028_v60  ;;  %7296 = vmatprep.mubr.msk.bf16.mxu0 %vm1432_vm3, %v1081_v62  ;;  %v8202_v59 = vld [vmem:[%s10469_s3 + $0x160] ss:$8 sps:$4 sm:$0xff]  }
 0x1c6   : > { %v1324_v0 = vsel %vm1253_vm5, %v1252_v61, %v1081_v62  ;;  %v8207_v61 = vld [vmem:[%s10469_s3 + $0x154] ss:$8 sps:$4 sm:$0xff]  }
 0x1c8   : > { %1751 = vmatmul.mubr.bf16.gmra.mxu0 %v1324_v0 }
 0x1d0   : > { %v1522_v1 = vpop.f32.mrf.mxu0 }
 0x1d2   : > { %v1524_v2 = vpop.f32.mrf.mxu0 }
 0x1d3   : > { %v1761_v22 = vmax.f32 %v1522_v1, %v1524_v2 }
 0x1d4   : > { %v1526_v3 = vpop.f32.mrf.mxu0 }
 0x1d5   : > { %v1816_v32 = vadd.f32 %v9922_v18, %v1761_v22  ;;  %v8216_v22 = vld [vmem:[%s10469_s3 + $0x124] ss:$8 sps:$4 sm:$0xff]  }
 0x1d6   : > { %v1528_v4 = vpop.f32.mrf.mxu0 }
 0x1d7   : > { %v1762_v15 = vmax.f32 %v1526_v3, %v1528_v4  ;;  %v1864_v43 = vmax.f32 %v1816_v32, 0.0  ;;  %v8205_v3 = vld [vmem:[%s10469_s3 + $0x150] ss:$8 sps:$4 sm:$0xff]  }
 0x1d8   : > { %v1532_v5 = vpop.f32.mrf.mxu0 }
 0x1d9   : > { %v1817_v26 = vadd.f32 %v9922_v18, %v1762_v15 }
 0x1da   : > { %v1534_v6 = vpop.f32.mrf.mxu0 }
 0x1db   : > { %v1763_v16 = vmax.f32 %v1532_v5, %v1534_v6  ;;  %v1865_v37 = vmax.f32 %v1817_v26, 0.0  ;;  %v8210_v5 = vld [vmem:[%s10469_s3 + $0x144] ss:$8 sps:$4 sm:$0xff]  }
 0x1dc   : > { %v1536_v7 = vpop.f32.mrf.mxu0 }
 0x1dd   : > { %v1818_v27 = vadd.f32 %v9922_v18, %v1763_v16 }
 0x1de   : > { %v1538_v8 = vpop.f32.mrf.mxu0 }
 0x1df   : > { %v1764_v13 = vmax.f32 %v1536_v7, %v1538_v8  ;;  %v1866_v38 = vmax.f32 %v1818_v27, 0.0  ;;  %v8214_v27 = vld [vmem:[%s10469_s3 + $0x120] ss:$8 sps:$4 sm:$0xff]  }
 0x1e0   : > { %v1542_v9 = vpop.f32.mrf.mxu0 }
 0x1e1   : > { %v1819_v23 = vadd.f32 %v9922_v18, %v1764_v13  ;;  %v1912_v48 = vmax.f32 %v1864_v43, %v1866_v38 }
 0x1e2   : > { %v1544_v10 = vpop.f32.mrf.mxu0 }
 0x1e3   : > { %v1765_v19 = vmax.f32 %v1542_v9, %v1544_v10  ;;  %v1867_v33 = vmax.f32 %v1819_v23, 0.0 }
 0x1e4   : > { %v1546_v11 = vpop.f32.mrf.mxu0 }
 0x1e5   : > { %v1820_v29 = vadd.f32 %v9922_v18, %v1765_v19  ;;  %v1913_v45 = vmax.f32 %v1865_v37, %v1867_v33  ;;  %v8222_v37 = vld [vmem:[%s10469_s3 + $0x104] ss:$8 sps:$4 sm:$0xff]  }
 0x1e6   : > { %v1548_v12 = vpop.f32.mrf.mxu0 }
 0x1e7   : > { %v1766_v20 = vmax.f32 %v1546_v11, %v1548_v12  ;;  %v1868_v40 = vmax.f32 %v1820_v29, 0.0  ;;  %v1936_v53 = vpack.c.bf16 %v1913_v45, %v1912_v48  ;;  %v8208_v12 = vld [vmem:[%s10469_s3 + $0x140] ss:$8 sps:$4 sm:$0xff]   ;;  %v8219_v29 = vld [vmem:[%s10469_s3 + $0x114] ss:$8 sps:$4 sm:$0xff]  }
 0x1e8   : > { %v1552_v14 = vpop.f32.mrf.mxu0 }
 0x1e9   : > { %v1821_v30 = vadd.f32 %v9922_v18, %v1766_v20  ;;  %v8211_v20 = vld [vmem:[%s10469_s3 + $0x130] ss:$8 sps:$4 sm:$0xff]  }
 0x1ea   : > { %v1554_v17 = vpop.f32.mrf.mxu0 }
 0x1eb   : > { %v1767_v21 = vmax.f32 %v1552_v14, %v1554_v17  ;;  %v1869_v41 = vmax.f32 %v1821_v30, 0.0  ;;  %v8213_v14 = vld [vmem:[%s10469_s3 + $0x134] ss:$8 sps:$4 sm:$0xff]  }
 0x1ec   : > { %v1556_v24 = vpop.f32.mrf.mxu0 }
 0x1ed   : > { %v1822_v25 = vadd.f32 %v9922_v18, %v1767_v21 }
 0x1ee   : > { %v1558_v28 = vpop.f32.mrf.mxu0 }
 0x1ef   : > { %v1768_v31 = vmax.f32 %v1556_v24, %v1558_v28  ;;  %v1870_v35 = vmax.f32 %v1822_v25, 0.0 }
 0x1f0   : > { %v1562_v34 = vpop.f32.mrf.mxu0 }
 0x1f1   : > { %v1823_v36 = vadd.f32 %v9922_v18, %v1768_v31  ;;  %v1914_v46 = vmax.f32 %v1868_v40, %v1870_v35  ;;  %v8217_v35 = vld [vmem:[%s10469_s3 + $0x110] ss:$8 sps:$4 sm:$0xff]  }
 0x1f2   : > { %v1564_v39 = vpop.f32.mrf.mxu0 }
 0x1f3   : > { %v1871_v42 = vmax.f32 %v1823_v36, 0.0  ;;  %v1769_v56 = vmax.f32 %v1562_v34, %v1564_v39 }
 0x1f4   : > { %v1566_v44 = vpop.f32.mrf.mxu0 }
 0x1f5   : > { %v1915_v47 = vmax.f32 %v1869_v41, %v1871_v42  ;;  %v1824_v0 = vadd.f32 %v9922_v18, %v1769_v56 }
 0x1f6   : > { %v1568_v49 = vpop.f32.mrf.mxu0 }
 0x1f7   : > { %v1937_v50 = vpack.c.bf16 %v1915_v47, %v1914_v46  ;;  %v1770_v57 = vmax.f32 %v1566_v44, %v1568_v49  ;;  %v1872_v9 = vmax.f32 %v1824_v0, 0.0  ;;  %v8220_v44 = vld [vmem:[%s10469_s3 + $0x100] ss:$8 sps:$4 sm:$0xff]  }
 0x1f8   : > { %v1572_v52 = vpop.f32.mrf.mxu0 }
 0x1f9   : > { %2280 = vmatprep.mubr.bf16.mxu1 %v1937_v50  ;;  %v1825_v1 = vadd.f32 %v9922_v18, %v1770_v57 }
 0x1fa   : > { %v1574_v55 = vpop.f32.mrf.mxu0  ;;  %2281 = vmatmul.mubr.bf16.vlgmr.msra.gmra.mxu1 %v1936_v53 }
 0x1fb   : > { %v1771_v58 = vmax.f32 %v1572_v52, %v1574_v55  ;;  %2382 = vmatpush1.bf16.msra.mxu1 %v8199_v51  ;;  %v1873_v10 = vmax.f32 %v1825_v1, 0.0 }
 0x1fc   : > { %v1576_v60 = vpop.f32.mrf.mxu0  ;;  %2383 = vmatprep.subr.bf16.mxu1 %v8204_v54 }
 0x1fd   : > { %v1826_v62 = vadd.f32 %v9922_v18, %v1771_v58 }
 0x1fe   : > { %v1578_v63 = vpop.f32.mrf.mxu0 }
 0x1ff   : > { %v1772_v2 = vmax.f32 %v1576_v60, %v1578_v63  ;;  %2384 = vmatpush1.bf16.msra.mxu1 %v8202_v59  ;;  %v1874_v6 = vmax.f32 %v1826_v62, 0.0 }
 0x200   : > { %v1582_v4 = vpop.f32.mrf.mxu0  ;;  %2385 = vmatprep.subr.bf16.mxu1 %v8207_v61 }
 0x201   : > { %v1827_v7 = vadd.f32 %v9922_v18, %v1772_v2  ;;  %v1916_v15 = vmax.f32 %v1872_v9, %v1874_v6 }
 0x202   : > { %v1584_v8 = vpop.f32.mrf.mxu0 }
 0x203   : > { %v1875_v11 = vmax.f32 %v1827_v7, 0.0  ;;  %2386 = vmatpush1.bf16.msra.mxu1 %v8205_v3  ;;  %v1773_v24 = vmax.f32 %v1582_v4, %v1584_v8  ;;  %v8223_v4 = vld [vmem:[#allocation8 + $0x278] ss:$16 sps:$4 sm:$0xff]  }
 0x204   : > { %v1586_v13 = vpop.f32.mrf.mxu0  ;;  %2387 = vmatprep.subr.bf16.mxu1 %v8210_v5  ;;  %v8225_v5 = vld [vmem:[#allocation8 + $0x27c] ss:$16 sps:$4 sm:$0xff]  }
 0x205   : > { %v1917_v16 = vmax.f32 %v1873_v10, %v1875_v11  ;;  %v1828_v32 = vadd.f32 %v9922_v18, %v1773_v24  ;;  %2985 = vmatprep.subr.bf16.mxu0 %v8225_v5 }
 0x206   : > { %v1588_v17 = vpop.f32.mrf.mxu0  ;;  %2986 = vmatpush1.bf16.msra.mxu0 %v8223_v4 }
 0x207   : > { %v9960_v19 = vpack.c.bf16 %v1917_v16, %v1916_v15  ;;  %2388 = vmatpush1.bf16.msra.mxu1 %v8208_v12  ;;  %v1774_v25 = vmax.f32 %v1586_v13, %v1588_v17  ;;  %v1876_v41 = vmax.f32 %v1828_v32, 0.0 }
 0x208   : > { %v1592_v21 = vpop.f32.mrf.mxu0  ;;  %2389 = vmatprep.subr.bf16.mxu1 %v8213_v14 }
 0x209   : > { %2290 = vmatprep.mubr.bf16.mxu1 %v9960_v19  ;;  %v1829_v33 = vadd.f32 %v9922_v18, %v1774_v25 }
 0x20a   : > { %v1594_v23 = vpop.f32.mrf.mxu0  ;;  %2291 = vmatmul.mubr.bf16.gmra.mxu1 %v1937_v50 }
 0x20b   : > { %v1775_v26 = vmax.f32 %v1592_v21, %v1594_v23  ;;  %2390 = vmatpush1.bf16.msra.mxu1 %v8211_v20  ;;  %v1877_v42 = vmax.f32 %v1829_v33, 0.0 }
 0x20c   : > { %v1596_v28 = vpop.f32.mrf.mxu0  ;;  %2391 = vmatprep.subr.bf16.mxu1 %v8216_v22 }
 0x20d   : > { %v1830_v30 = vadd.f32 %v9922_v18, %v1775_v26 }
 0x20e   : > { %v1598_v31 = vpop.f32.mrf.mxu0 }
 0x20f   : > { %v1776_v34 = vmax.f32 %v1596_v28, %v1598_v31  ;;  %2392 = vmatpush1.bf16.msra.mxu1 %v8214_v27  ;;  %v1878_v38 = vmax.f32 %v1830_v30, 0.0  ;;  %v8226_v28 = vld [vmem:[#allocation8 + $0x258] ss:$16 sps:$4 sm:$0xff]  }
 0x210   : > { %v1602_v36 = vpop.f32.mrf.mxu0  ;;  %2393 = vmatprep.subr.bf16.mxu1 %v8219_v29  ;;  %v8228_v29 = vld [vmem:[#allocation8 + $0x25c] ss:$16 sps:$4 sm:$0xff]  }
 0x211   : > { %v1831_v39 = vadd.f32 %v9922_v18, %v1776_v34  ;;  %v1918_v46 = vmax.f32 %v1876_v41, %v1878_v38  ;;  %2987 = vmatprep.subr.bf16.mxu0 %v8228_v29 }
 0x212   : > { %v1604_v40 = vpop.f32.mrf.mxu0  ;;  %2988 = vmatpush1.bf16.msra.mxu0 %v8226_v28 }
 0x213   : > { %v1879_v43 = vmax.f32 %v1831_v39, 0.0  ;;  %2394 = vmatpush1.bf16.msra.mxu1 %v8217_v35  ;;  %v1777_v51 = vmax.f32 %v1602_v36, %v1604_v40 }
 0x214   : > { %v1606_v45 = vpop.f32.mrf.mxu0  ;;  %2395 = vmatprep.subr.bf16.mxu1 %v8222_v37 }
 0x215   : > { %v1919_v47 = vmax.f32 %v1877_v42, %v1879_v43  ;;  %v1832_v57 = vadd.f32 %v9922_v18, %v1777_v51 }
 0x216   : > { %v1608_v48 = vpop.f32.mrf.mxu0 }
 0x217   : > { %v9988_v49 = vpack.c.bf16 %v1919_v47, %v1918_v46  ;;  %2396 = vmatpush1.bf16.msra.mxu1 %v8220_v44  ;;  %v1778_v53 = vmax.f32 %v1606_v45, %v1608_v48  ;;  %v1880_v0 = vmax.f32 %v1832_v57, 0.0 }
 0x218   : > { %v1612_v50 = vpop.f32.mrf.mxu0 }
 0x219   : > { %2300 = vmatprep.mubr.bf16.mxu1 %v9988_v49  ;;  %v1833_v59 = vadd.f32 %v9922_v18, %v1778_v53 }
 0x21a   : > { %v1614_v52 = vpop.f32.mrf.mxu0  ;;  %2301 = vmatmul.mubr.bf16.gmra.mxu1 %v9960_v19 }
 0x21b   : > { %v1779_v54 = vmax.f32 %v1612_v50, %v1614_v52  ;;  %v1881_v2 = vmax.f32 %v1833_v59, 0.0 }
 0x21c   : > { %v1616_v55 = vpop.f32.mrf.mxu0 }
 0x21d   : > { %v1834_v56 = vadd.f32 %v9922_v18, %v1779_v54  ;;  %v8229_v54 = vld [vmem:[#allocation8 + $0x238] ss:$16 sps:$4 sm:$0xff]  }
 0x21e   : > { %v1618_v58 = vpop.f32.mrf.mxu0 }
 0x21f   : > { %v1780_v60 = vmax.f32 %v1616_v55, %v1618_v58  ;;  %v1882_v62 = vmax.f32 %v1834_v56, 0.0  ;;  %v8231_v55 = vld [vmem:[#allocation8 + $0x23c] ss:$16 sps:$4 sm:$0xff]  }
 0x220   : > { %v1622_v61 = vpop.f32.mrf.mxu0  ;;  %2989 = vmatprep.subr.bf16.mxu0 %v8231_v55 }
 0x221   : > { %v1835_v63 = vadd.f32 %v9922_v18, %v1780_v60  ;;  %v1920_v7 = vmax.f32 %v1880_v0, %v1882_v62  ;;  %2990 = vmatpush1.bf16.msra.mxu0 %v8229_v54 }
 0x222   : > { %v1624_v1 = vpop.f32.mrf.mxu0 }
 0x223   : > { %v1883_v3 = vmax.f32 %v1835_v63, 0.0  ;;  %v1781_v13 = vmax.f32 %v1622_v61, %v1624_v1 }
 0x224   : > { %v1626_v6 = vpop.f32.mrf.mxu0 }
 0x225   : > { %v1921_v8 = vmax.f32 %v1881_v2, %v1883_v3  ;;  %v1836_v21 = vadd.f32 %v9922_v18, %v1781_v13 }
 0x226   : > { %v1628_v9 = vpop.f32.mrf.mxu0 }
 0x227   : > { %v9996_v10 = vpack.c.bf16 %v1921_v8, %v1920_v7  ;;  %v1782_v14 = vmax.f32 %v1626_v6, %v1628_v9  ;;  %v1884_v30 = vmax.f32 %v1836_v21, 0.0 }
 0x228   : > { %v1632_v11 = vpop.f32.mrf.mxu0 }
 0x229   : > { %2310 = vmatprep.mubr.bf16.mxu1 %v9996_v10  ;;  %v1837_v22 = vadd.f32 %v9922_v18, %v1782_v14 }
 0x22a   : > { %v1634_v12 = vpop.f32.mrf.mxu0  ;;  %2311 = vmatmul.mubr.bf16.gmra.mxu1 %v9988_v49 }
 0x22b   : > { %v1783_v15 = vmax.f32 %v1632_v11, %v1634_v12  ;;  %v1885_v31 = vmax.f32 %v1837_v22, 0.0 }
 0x22c   : > { %v1636_v16 = vpop.f32.mrf.mxu0 }
 0x22d   : > { %v1838_v17 = vadd.f32 %v9922_v18, %v1783_v15 }
 0x22e   : > { %v1638_v20 = vpop.f32.mrf.mxu0 }
 0x22f   : > { %v1784_v23 = vmax.f32 %v1636_v16, %v1638_v20  ;;  %v1886_v25 = vmax.f32 %v1838_v17, 0.0  ;;  %v8232_v16 = vld [vmem:[#allocation8 + $0x218] ss:$16 sps:$4 sm:$0xff]   ;;  %v8234_v17 = vld [vmem:[#allocation8 + $0x21c] ss:$16 sps:$4 sm:$0xff]  }
 0x230   : > { %v1642_v24 = vpop.f32.mrf.mxu0  ;;  %2991 = vmatprep.subr.bf16.mxu0 %v8234_v17 }
 0x231   : > { %v1839_v26 = vadd.f32 %v9922_v18, %v1784_v23  ;;  %v1922_v34 = vmax.f32 %v1884_v30, %v1886_v25  ;;  %2992 = vmatpush1.bf16.msra.mxu0 %v8232_v16 }
 0x232   : > { %v1644_v27 = vpop.f32.mrf.mxu0 }
 0x233   : > { %v1887_v32 = vmax.f32 %v1839_v26, 0.0  ;;  %v1785_v40 = vmax.f32 %v1642_v24, %v1644_v27 }
 0x234   : > { %v1646_v33 = vpop.f32.mrf.mxu0 }
 0x235   : > { %v1923_v35 = vmax.f32 %v1885_v31, %v1887_v32  ;;  %v1840_v46 = vadd.f32 %v9922_v18, %v1785_v40 }
 0x236   : > { %v1648_v36 = vpop.f32.mrf.mxu0 }
 0x237   : > { %v10004_v37 = vpack.c.bf16 %v1923_v35, %v1922_v34  ;;  %v1786_v41 = vmax.f32 %v1646_v33, %v1648_v36  ;;  %v1888_v56 = vmax.f32 %v1840_v46, 0.0 }
 0x238   : > { %v1652_v38 = vpop.f32.mrf.mxu0 }
 0x239   : > { %2320 = vmatprep.mubr.bf16.mxu1 %v10004_v37  ;;  %v1841_v47 = vadd.f32 %v9922_v18, %v1786_v41 }
 0x23a   : > { %v1654_v39 = vpop.f32.mrf.mxu0  ;;  %2321 = vmatmul.mubr.bf16.gmra.mxu1 %v9996_v10 }
 0x23b   : > { %v1787_v42 = vmax.f32 %v1652_v38, %v1654_v39  ;;  %v1889_v57 = vmax.f32 %v1841_v47, 0.0 }
 0x23c   : > { %v1656_v43 = vpop.f32.mrf.mxu0 }
 0x23d   : > { %v1842_v44 = vadd.f32 %v9922_v18, %v1787_v42 }
 0x23e   : > { %v1658_v45 = vpop.f32.mrf.mxu0 }
 0x23f   : > { %v1788_v48 = vmax.f32 %v1656_v43, %v1658_v45  ;;  %v1890_v51 = vmax.f32 %v1842_v44, 0.0  ;;  %v8235_v43 = vld [vmem:[#allocation8 + $0x1f8] ss:$16 sps:$4 sm:$0xff]   ;;  %v8237_v44 = vld [vmem:[#allocation8 + $0x1fc] ss:$16 sps:$4 sm:$0xff]  }
 0x240   : > { %v1662_v50 = vpop.f32.mrf.mxu0  ;;  %2993 = vmatprep.subr.bf16.mxu0 %v8237_v44  ;;  %v8244_v44 = vld [vmem:[#allocation8 + $0x198] ss:$16 sps:$4 sm:$0xff]  }
 0x241   : > { %v1843_v52 = vadd.f32 %v9922_v18, %v1788_v48  ;;  %v1924_v60 = vmax.f32 %v1888_v56, %v1890_v51  ;;  %2994 = vmatpush1.bf16.msra.mxu0 %v8235_v43  ;;  %v9283_v43 = vmov 0  }
 0x242   : > { %v1664_v53 = vpop.f32.mrf.mxu0 }
 0x243   : > { %v1891_v58 = vmax.f32 %v1843_v52, 0.0  ;;  %v1789_v2 = vmax.f32 %v1662_v50, %v1664_v53 }
 0x244   : > { %v1666_v59 = vpop.f32.mrf.mxu0 }
 0x245   : > { %v1925_v61 = vmax.f32 %v1889_v57, %v1891_v58  ;;  %v1844_v8 = vadd.f32 %v9922_v18, %v1789_v2 }
 0x246   : > { %v1668_v62 = vpop.f32.mrf.mxu0 }
 0x247   : > { %v10012_v63 = vpack.c.bf16 %v1925_v61, %v1924_v60  ;;  %v1790_v3 = vmax.f32 %v1666_v59, %v1668_v62  ;;  %v1892_v20 = vmax.f32 %v1844_v8, 0.0 }
 0x248   : > { %v1672_v0 = vpop.f32.mrf.mxu0 }
 0x249   : > { %2330 = vmatprep.mubr.bf16.mxu1 %v10012_v63  ;;  %v1845_v9 = vadd.f32 %v9922_v18, %v1790_v3 }
 0x24a   : > { %v1674_v1 = vpop.f32.mrf.mxu0  ;;  %2331 = vmatmul.mubr.bf16.gmra.mxu1 %v10004_v37 }
 0x24b   : > { %v1791_v4 = vmax.f32 %v1672_v0, %v1674_v1  ;;  %v1893_v21 = vmax.f32 %v1845_v9, 0.0 }
 0x24c   : > { %v1676_v5 = vpop.f32.mrf.mxu0 }
 0x24d   : > { %v1846_v6 = vadd.f32 %v9922_v18, %v1791_v4 }
 0x24e   : > { %v1678_v7 = vpop.f32.mrf.mxu0 }
 0x24f   : > { %v1792_v11 = vmax.f32 %v1676_v5, %v1678_v7  ;;  %v1894_v13 = vmax.f32 %v1846_v6, 0.0  ;;  %v8238_v6 = vld [vmem:[#allocation8 + $0x1d8] ss:$16 sps:$4 sm:$0xff]   ;;  %v8240_v7 = vld [vmem:[#allocation8 + $0x1dc] ss:$16 sps:$4 sm:$0xff]  }
 0x250   : > { %v1682_v12 = vpop.f32.mrf.mxu0  ;;  %2995 = vmatprep.subr.bf16.mxu0 %v8240_v7  ;;  %v8273_v7 = vld [vmem:[#allocation8 + $0x2d8] ss:$16 sps:$4 sm:$0xff]  }
 0x251   : > { %v1847_v14 = vadd.f32 %v9922_v18, %v1792_v11  ;;  %v1926_v24 = vmax.f32 %v1892_v20, %v1894_v13  ;;  %2996 = vmatpush1.bf16.msra.mxu0 %v8238_v6  ;;  %v8272_v6 = vld [vmem:[#allocation8 + $0x1b4] ss:$16 sps:$4 sm:$0xff]  }
 0x252   : > { %v1684_v15 = vpop.f32.mrf.mxu0 }
 0x253   : > { %v1895_v22 = vmax.f32 %v1847_v14, 0.0  ;;  %v1793_v30 = vmax.f32 %v1682_v12, %v1684_v15 }
 0x254   : > { %v1686_v23 = vpop.f32.mrf.mxu0 }
 0x255   : > { %v1927_v25 = vmax.f32 %v1893_v21, %v1895_v22  ;;  %v1848_v36 = vadd.f32 %v9922_v18, %v1793_v30 }
 0x256   : > { %v1688_v26 = vpop.f32.mrf.mxu0 }
 0x257   : > { %v10020_v27 = vpack.c.bf16 %v1927_v25, %v1926_v24  ;;  %v1794_v31 = vmax.f32 %v1686_v23, %v1688_v26  ;;  %v1896_v46 = vmax.f32 %v1848_v36, 0.0 }
 0x258   : > { %v1692_v28 = vpop.f32.mrf.mxu0 }
 0x259   : > { %2340 = vmatprep.mubr.bf16.mxu1 %v10020_v27  ;;  %v1849_v38 = vadd.f32 %v9922_v18, %v1794_v31 }
 0x25a   : > { %v1694_v29 = vpop.f32.mrf.mxu0  ;;  %2341 = vmatmul.mubr.bf16.gmra.mxu1 %v10012_v63 }
 0x25b   : > { %v1795_v32 = vmax.f32 %v1692_v28, %v1694_v29  ;;  %v1897_v47 = vmax.f32 %v1849_v38, 0.0 }
 0x25c   : > { %v1696_v33 = vpop.f32.mrf.mxu0 }
 0x25d   : > { %v1850_v34 = vadd.f32 %v9922_v18, %v1795_v32 }
 0x25e   : > { %v1698_v35 = vpop.f32.mrf.mxu0 }
 0x25f   : > { %v1796_v39 = vmax.f32 %v1696_v33, %v1698_v35  ;;  %v1898_v41 = vmax.f32 %v1850_v34, 0.0  ;;  %v8241_v34 = vld [vmem:[#allocation8 + $0x1b8] ss:$16 sps:$4 sm:$0xff]   ;;  %v8243_v35 = vld [vmem:[#allocation8 + $0x1bc] ss:$16 sps:$4 sm:$0xff]  }
 0x260   : > { %v1702_v40 = vpop.f32.mrf.mxu0  ;;  %2997 = vmatprep.subr.bf16.mxu0 %v8243_v35 }
 0x261   : > { %v1851_v42 = vadd.f32 %v9922_v18, %v1796_v39  ;;  %v1928_v51 = vmax.f32 %v1896_v46, %v1898_v41  ;;  %2998 = vmatpush1.bf16.msra.mxu0 %v8241_v34  ;;  %v8247_v46 = vld [vmem:[#allocation8 + $0x270] ss:$16 sps:$4 sm:$0xff]   ;;  %v8286_v34 = vld [vmem:[#allocation8 + $0x2f4] ss:$16 sps:$4 sm:$0xff]  }
 0x262   : > { %v1704_v45 = vpop.f32.mrf.mxu0 }
 0x263   : > { %v1899_v48 = vmax.f32 %v1851_v42, 0.0  ;;  %v1797_v57 = vmax.f32 %v1702_v40, %v1704_v45  ;;  %v8246_v45 = vld [vmem:[#allocation8 + $0x19c] ss:$16 sps:$4 sm:$0xff]  }
 0x264   : > { %v1706_v50 = vpop.f32.mrf.mxu0  ;;  %2999 = vmatprep.subr.bf16.mxu0 %v8246_v45 }
 0x265   : > { %v1929_v52 = vmax.f32 %v1897_v47, %v1899_v48  ;;  %v1852_v0 = vadd.f32 %v9922_v18, %v1797_v57  ;;  %v8249_v47 = vld [vmem:[#allocation8 + $0x274] ss:$16 sps:$4 sm:$0xff]   ;;  %3000 = vmatpush1.bf16.msra.mxu0 %v8244_v44  ;;  %v8250_v48 = vld [vmem:[#allocation8 + $0x250] ss:$16 sps:$4 sm:$0xff]  }
 0x266   : > { %v1708_v53 = vpop.f32.mrf.mxu0  ;;  %2942 = vmatprep.subr.bf16.mxu1 %v8249_v47  ;;  %v8292_v47 = vld [vmem:[#allocation8 + $0x2b4] ss:$16 sps:$4 sm:$0xff]  }
 0x267   : > { %v10028_v54 = vpack.c.bf16 %v1929_v52, %v1928_v51  ;;  %v1798_v58 = vmax.f32 %v1706_v50, %v1708_v53  ;;  %v1900_v9 = vmax.f32 %v1852_v0, 0.0  ;;  %v8252_v50 = vld [vmem:[#allocation8 + $0x254] ss:$16 sps:$4 sm:$0xff]   ;;  %v2674_v51 = vld [vmem:[#allocation8 + $0x318] sm:$0xff] }
 0x268   : > { %v1712_v55 = vpop.f32.mrf.mxu0  ;;  %v8257_v52 = vld [vmem:[#allocation8 + $0x234] ss:$16 sps:$4 sm:$0xff]   ;;  %v7396_v53 = vcombine.low %v2674_v51, %v2674_v51 }
 0x269   : > { %2350 = vmatprep.mubr.bf16.mxu1 %v10028_v54  ;;  %v1853_v1 = vadd.f32 %v9922_v18, %v1798_v58  ;;  %v8260_v58 = vld [vmem:[#allocation8 + $0x214] ss:$16 sps:$4 sm:$0xff]  }
 0x26a   : > { %v1714_v56 = vpop.f32.mrf.mxu0  ;;  %2351 = vmatmul.mubr.bf16.gmra.mxu1 %v10020_v27  ;;  %v8266_v0 = vld [vmem:[#allocation8 + $0x1f4] ss:$16 sps:$4 sm:$0xff]  }
 0x26b   : > { %v1799_v59 = vmax.f32 %v1712_v55, %v1714_v56  ;;  %v1901_v11 = vmax.f32 %v1853_v1, 0.0  ;;  %v8255_v55 = vld [vmem:[#allocation8 + $0x230] ss:$16 sps:$4 sm:$0xff]   ;;  %v8269_v1 = vld [vmem:[#allocation8 + $0x1d4] ss:$16 sps:$4 sm:$0xff]  }
 0x26c   : > { %v1716_v60 = vpop.f32.mrf.mxu0 }
 0x26d   : > { %v1854_v61 = vadd.f32 %v9922_v18, %v1799_v59 }
 0x26e   : > { %v1718_v62 = vpop.f32.mrf.mxu0 }
 0x26f   : > { %v1800_v2 = vmax.f32 %v1716_v60, %v1718_v62  ;;  %v1902_v4 = vmax.f32 %v1854_v61, 0.0  ;;  %v8261_v60 = vld [vmem:[#allocation8 + $0x2f8] ss:$16 sps:$4 sm:$0xff]   ;;  %v8263_v61 = vld [vmem:[#allocation8 + $0x2fc] ss:$16 sps:$4 sm:$0xff]  }
 0x270   : > { %v1722_v3 = vpop.f32.mrf.mxu0  ;;  %v8264_v62 = vld [vmem:[#allocation8 + $0x1f0] ss:$16 sps:$4 sm:$0xff]  }
 0x271   : > { %v1855_v5 = vadd.f32 %v9922_v18, %v1800_v2  ;;  %v1930_v14 = vmax.f32 %v1900_v9, %v1902_v4  ;;  %v8267_v2 = vld [vmem:[#allocation8 + $0x1d0] ss:$16 sps:$4 sm:$0xff]  }
 0x272   : > { %v1724_v8 = vpop.f32.mrf.mxu0  ;;  %v8276_v9 = vld [vmem:[#allocation8 + $0x190] ss:$16 sps:$4 sm:$0xff]  }
 0x273   : > { %v1903_v12 = vmax.f32 %v1855_v5, 0.0  ;;  %v1801_v22 = vmax.f32 %v1722_v3, %v1724_v8  ;;  %v8270_v5 = vld [vmem:[#allocation8 + $0x1b0] ss:$16 sps:$4 sm:$0xff]  }
 0x274   : > { %v1726_v13 = vpop.f32.mrf.mxu0 }
 0x275   : > { %v1931_v15 = vmax.f32 %v1901_v11, %v1903_v12  ;;  %v1856_v29 = vadd.f32 %v9922_v18, %v1801_v22  ;;  %v8278_v11 = vld [vmem:[#allocation8 + $0x194] ss:$16 sps:$4 sm:$0xff]  }
 0x276   : > { %v1728_v16 = vpop.f32.mrf.mxu0  ;;  %v2673_v12 = vld [vmem:[#allocation8 + $0x310] sm:$0xff] }
 0x277   : > { %v10036_v17 = vpack.c.bf16 %v1931_v15, %v1930_v14  ;;  %v1802_v23 = vmax.f32 %v1726_v13, %v1728_v16  ;;  %v1904_v36 = vmax.f32 %v1856_v29, 0.0  ;;  %v7395_v13 = vcombine.high %v2673_v12, %v2673_v12  ;;  %v8283_v29 = vld [vmem:[#allocation8 + $0x2bc] ss:$16 sps:$4 sm:$0xff]  }
 0x278   : > { %v1732_v20 = vpop.f32.mrf.mxu0 }
 0x279   : > { %2360 = vmatprep.mubr.bf16.mxu1 %v10036_v17  ;;  %v1857_v30 = vadd.f32 %v9922_v18, %v1802_v23 }
 0x27a   : > { %v1734_v21 = vpop.f32.mrf.mxu0  ;;  %2361 = vmatmul.mubr.bf16.gmra.mxu1 %v10028_v54 }
 0x27b   : > { %v1803_v24 = vmax.f32 %v1732_v20, %v1734_v21  ;;  %v1905_v38 = vmax.f32 %v1857_v30, 0.0 }
 0x27c   : > { %v1736_v25 = vpop.f32.mrf.mxu0 }
 0x27d   : > { %v1858_v26 = vadd.f32 %v9922_v18, %v1803_v24  ;;  %v7394_v24 = vcombine.low %v2673_v12, %v2673_v12 }
 0x27e   : > { %v1738_v28 = vpop.f32.mrf.mxu0 }
 0x27f   : > { %v1804_v31 = vmax.f32 %v1736_v25, %v1738_v28  ;;  %v1906_v32 = vmax.f32 %v1858_v26, 0.0  ;;  %v2931_v26 = vsel %vm2929_vm6, %v7394_v24, 0  ;;  %v8281_v28 = vld [vmem:[#allocation8 + $0x2b8] ss:$16 sps:$4 sm:$0xff]  }
 0x280   : > { %v1742_v56 = vpop.f32.mrf.mxu0 }
 0x281   : > { %v1859_v33 = vadd.f32 %v9922_v18, %v1804_v31  ;;  %v1932_v40 = vmax.f32 %v1904_v36, %v1906_v32 }
 0x282   : > { %v1744_v57 = vpop.f32.mrf.mxu0 }
 0x283   : > { %v1907_v39 = vmax.f32 %v1859_v33, 0.0  ;;  %v1805_v14 = vmax.f32 %v1742_v56, %v1744_v57 }
 0x284   : > { %v1746_v59 = vpop.f32.mrf.mxu0 }
 0x285   : > { %v1933_v41 = vmax.f32 %v1905_v38, %v1907_v39  ;;  %v1860_v21 = vadd.f32 %v9922_v18, %v1805_v14 }
 0x287   : > { %v10044_v42 = vpack.c.bf16 %v1933_v41, %v1932_v40  ;;  %v1908_v30 = vmax.f32 %v1860_v21, 0.0  ;;  %v8287_v40 = vld [vmem:[#allocation8 + $0x2d0] ss:$16 sps:$4 sm:$0xff]   ;;  %v8289_v41 = vld [vmem:[#allocation8 + $0x2d4] ss:$16 sps:$4 sm:$0xff]  }
 0x289   : > { %2370 = vmatprep.mubr.bf16.mxu1 %v10044_v42 }
 0x28a   : > { %2371 = vmatmul.mubr.bf16.gmra.mxu1 %v10036_v17 }
 0x28b   : > { %2413 = vmatprep.mubr.bf16.mxu1 %v9283_v43 }
 0x292   : > { %2414 = vmatmul.mubr.bf16.vlgmr.msra.gmra.mxu1 %v9960_v19  ;;  %v7397_v19 = vcombine.high %v2674_v51, %v2674_v51 }
 0x293   : > { %2423 = vmatprep.mubr.bf16.mxu1 %v9283_v43  ;;  %2943 = vmatpush1.bf16.msra.mxu1 %v8247_v46  ;;  %v8290_v46 = vld [vmem:[#allocation8 + $0x2b0] ss:$16 sps:$4 sm:$0xff]  }
 0x294   : > { %2944 = vmatprep.subr.bf16.mxu1 %v8252_v50  ;;  %7400 = vmatprep.subr.msk.bf16.mxu0 %vm2929_vm6, %v7397_v19  ;;  %v8301_v19 = vld [vmem:[#allocation8 + $0xe4] ss:$16 sps:$4 sm:$0xff]  }
 0x297   : > { %2945 = vmatpush1.bf16.msra.mxu1 %v8250_v48  ;;  %v8293_v48 = vld [vmem:[#allocation8 + $0x298] ss:$16 sps:$4 sm:$0xff]  }
 0x298   : > { %2946 = vmatprep.subr.bf16.mxu1 %v8257_v52  ;;  %v8296_v52 = vld [vmem:[#allocation8 + $0x290] ss:$16 sps:$4 sm:$0xff]  }
 0x29a   : > { %2424 = vmatmul.mubr.bf16.gmra.mxu1 %v9988_v49  ;;  %v2937_v49 = vsel %vm2929_vm6, %v7396_v53, 0  ;;  %v8304_v53 = vld [vmem:[#allocation8 + $0xec] ss:$16 sps:$4 sm:$0xff]  }
 0x29b   : > { %2433 = vmatprep.mubr.bf16.mxu1 %v9283_v43  ;;  %3008 = vmatpush2.bf16.msra.mxu0 %v2937_v49 }
 0x29c   : > { %2947 = vmatpush1.bf16.msra.mxu1 %v8255_v55  ;;  %3009 = vmatprep.subr.bf16.mxu0 %v8263_v61 }
 0x29d   : > { %2948 = vmatprep.subr.bf16.mxu1 %v8260_v58 }
 0x29f   : > { %3010 = vmatpush2.bf16.msra.mxu0 %v8261_v60 }
 0x2a2   : > { %2434 = vmatmul.mubr.bf16.gmra.mxu1 %v9996_v10  ;;  %v8258_v10 = vld [vmem:[#allocation8 + $0x210] ss:$16 sps:$4 sm:$0xff]  }
 0x2a3   : > { %2443 = vmatprep.mubr.bf16.mxu1 %v9283_v43  ;;  %2949 = vmatpush1.bf16.msra.mxu1 %v8258_v10 }
 0x2a4   : > { %2950 = vmatprep.subr.bf16.mxu1 %v8266_v0 }
 0x2a7   : > { %2951 = vmatpush1.bf16.msra.mxu1 %v8264_v62 }
 0x2a8   : > { %2952 = vmatprep.subr.bf16.mxu1 %v8269_v1 }
 0x2aa   : > { %2444 = vmatmul.mubr.bf16.gmra.mxu1 %v10004_v37  ;;  %v1748_v37 = vpop.f32.mrf.mxu0 }
 0x2ab   : > { %2453 = vmatprep.mubr.bf16.mxu1 %v9283_v43  ;;  %2953 = vmatpush1.bf16.msra.mxu1 %v8267_v2  ;;  %v1806_v15 = vmax.f32 %v1746_v59, %v1748_v37 }
 0x2ac   : > { %v1752_v3 = vpop.f32.mrf.mxu0  ;;  %2954 = vmatprep.subr.bf16.mxu1 %v8272_v6 }
 0x2ad   : > { %v1861_v22 = vadd.f32 %v9922_v18, %v1806_v15  ;;  %v1998_v15 = vlaneseq }
 0x2ae   : > { %v1754_v4 = vpop.f32.mrf.mxu0 }
 0x2af   : > { %2955 = vmatpush1.bf16.msra.mxu1 %v8270_v5  ;;  %v1807_v16 = vmax.f32 %v1752_v3, %v1754_v4  ;;  %v1909_v31 = vmax.f32 %v1861_v22, 0.0 }
 0x2b0   : > { %v1756_v8 = vpop.f32.mrf.mxu0  ;;  %2956 = vmatprep.subr.bf16.mxu1 %v8278_v11 }
 0x2b2   : > { %2454 = vmatmul.mubr.bf16.gmra.mxu1 %v10012_v63  ;;  %v8275_v63 = vld [vmem:[#allocation8 + $0x2dc] ss:$16 sps:$4 sm:$0xff]  }
 0x2b3   : > { %2463 = vmatprep.mubr.bf16.mxu1 %v9283_v43  ;;  %3011 = vmatprep.subr.bf16.mxu0 %v8275_v63 }
 0x2b4   : > { %3012 = vmatpush2.bf16.msra.mxu0 %v8273_v7  ;;  %2957 = vmatpush1.bf16.msra.mxu1 %v8276_v9 }
 0x2b5   : > { %7398 = vmatprep.subr.msk.bf16.mxu1 %vm2929_vm6, %v7395_v13  ;;  %3013 = vmatprep.subr.bf16.mxu0 %v8283_v29 }
 0x2b8   : > { %2965 = vmatpush2.bf16.msra.mxu1 %v2931_v26  ;;  %3014 = vmatpush2.bf16.msra.mxu0 %v8281_v28 }
 0x2b9   : > { %2966 = vmatprep.subr.bf16.mxu1 %v8286_v34 }
 0x2ba   : > { %2464 = vmatmul.mubr.bf16.gmra.mxu1 %v10020_v27  ;;  %v1758_v27 = vpop.f32.mrf.mxu0  ;;  %v10072_v25 = vpop.f32.mrf.mxu1 }
 0x2bb   : > { %2473 = vmatprep.mubr.bf16.mxu1 %v9283_v43  ;;  %v1808_v20 = vmax.f32 %v1756_v8, %v1758_v27 }
 0x2bc   : > { %v10075_v35 = vpop.f32.mrf.mxu1 }
 0x2bd   : > { %v1863_v23 = vadd.f32 %v9922_v18, %v1808_v20  ;;  %v10143_v20 = vshrl.u32 %v1998_v15, 7 }
 0x2be   : > { %v10079_v38 = vpop.f32.mrf.mxu1 }
 0x2bf   : > { %v1911_v33 = vmax.f32 %v1863_v23, 0.0  ;;  %10492 = vst [vmem:[#allocation18_spill] sm:$0xff] %v10143_v20  ;;  %v10481_v22 = vsub.s32 0, %v10143_v20 }
 0x2c0   : > { %v10081_v44 = vpop.f32.mrf.mxu1 }
 0x2c1   : > { %v1935_v36 = vmax.f32 %v1909_v31, %v1911_v33 }
 0x2c2   : > { %2474 = vmatmul.mubr.bf16.gmra.mxu1 %v10028_v54  ;;  %v1862_v54 = vadd.f32 %v9922_v18, %v1807_v16 }
 0x2c3   : > { %2483 = vmatprep.mubr.bf16.mxu1 %v9283_v43 }
 0x2c4   : > { %v1910_v32 = vmax.f32 %v1862_v54, 0.0  ;;  %v1996_v54 = vld [vmem:[#allocation7] sm:$0x3] }
 0x2c5   : > { %v10154_v26 = vrot.slane %v1996_v54, %v10481_v22 }
 0x2c6   : > { %v1934_v18 = vmax.f32 %v1908_v30, %v1910_v32 }
 0x2c7   : > { %v2283_v30 = vadd.f32 %v10072_v25, %v10154_v26 }
 0x2c8   : > { %v1947_v39 = vpack.c.bf16 %v1935_v36, %v1934_v18  ;;  %v10480_v18 = vsub.s32 1, %v10143_v20 }
 0x2ca   : > { %2484 = vmatmul.mubr.bf16.gmra.mxu1 %v10036_v17  ;;  %v8284_v17 = vld [vmem:[#allocation8 + $0x2f0] ss:$16 sps:$4 sm:$0xff]   ;;  %v10083_v45 = vpop.f32.mrf.mxu1 }
 0x2cb   : > { %2493 = vmatprep.mubr.bf16.mxu1 %v9283_v43  ;;  %2967 = vmatpush2.bf16.msra.mxu1 %v8284_v17  ;;  %v2287_v17 = vadd.f32 %v10079_v38, %v10154_v26  ;;  %v2293_v25 = vadd.f32 %v10083_v45, %v10154_v26 }
 0x2cc   : > { %2968 = vmatprep.subr.bf16.mxu1 %v8289_v41  ;;  %v10085_v50 = vpop.f32.mrf.mxu1 }
 0x2ce   : > { %v10087_v51 = vpop.f32.mrf.mxu1 }
 0x2cf   : > { %2969 = vmatpush2.bf16.msra.mxu1 %v8287_v40 }
 0x2d0   : > { %2970 = vmatprep.subr.bf16.mxu1 %v8292_v47  ;;  %v2298_v55 = vpop.f32.mrf.mxu1  ;;  %v10167_v47 = vrot.slane %v1996_v54, %v10480_v18 }
 0x2d2   : > { %2494 = vmatmul.mubr.bf16.gmra.mxu1 %v10044_v42  ;;  %v8295_v42 = vld [vmem:[#allocation8 + $0x29c] ss:$16 sps:$4 sm:$0xff]   ;;  %v2295_v38 = vadd.f32 %v10085_v50, %v10167_v47  ;;  %v2299_v15 = vadd.f32 %v2298_v55, %v10167_v47  ;;  %v2285_v45 = vadd.f32 %v10075_v35, %v10167_v47 }
 0x2d3   : > { %2503 = vmatprep.mubr.bf16.mxu1 %v9283_v43  ;;  %3015 = vmatprep.subr.bf16.mxu0 %v8295_v42  ;;  %v8298_v43 = vld [vmem:[#allocation8 + $0x294] ss:$16 sps:$4 sm:$0xff]  }
 0x2d4   : > { %2971 = vmatpush2.bf16.msra.mxu1 %v8290_v46  ;;  %3016 = vmatpush2.bf16.msra.mxu0 %v8293_v48 }
 0x2d5   : > { %2972 = vmatprep.subr.bf16.mxu1 %v8298_v43  ;;  %3336 = vmatprep.subr.bf16.mxu0 %v8304_v53  ;;  %v2297_v43 = vadd.f32 %v10087_v51, %v10154_v26 }
 0x2d8   : > { %2973 = vmatpush2.bf16.msra.mxu1 %v8296_v52 }
 0x2d9   : > { %3293 = vmatprep.subr.bf16.mxu1 %v8301_v19  ;;  %v2289_v19 = vadd.f32 %v10081_v44, %v10167_v47 }
 0x2da   : > { %2504 = vmatmul.mubr.bf16.gmra.mxu1 %v1947_v39  ;;  %v10089_v49 = vpop.f32.mrf.mxu1 }
 0x2db   : > { %v2303_v51 = vadd.f32 %v10089_v49, %v10154_v26  ;;  %v8307_v49 = vld [vmem:[#allocation8 + $0xc4] ss:$16 sps:$4 sm:$0xff]  }
 0x2dc   : > { %v10091_v56 = vpop.f32.mrf.mxu1 }
 0x2de   : > { %v10093_v57 = vpop.f32.mrf.mxu1 }
 0x2df   : > { %v2307_v35 = vadd.f32 %v10093_v57, %v10154_v26 }
 0x2e0   : > { %v10095_v10 = vpop.f32.mrf.mxu1 }
 0x2ea   : > { %v10097_v58 = vpop.f32.mrf.mxu1 }
 0x2ec   : > { %v10099_v59 = vpop.f32.mrf.mxu1 }
 0x2ee   : > { %v10101_v60 = vpop.f32.mrf.mxu1 }
 0x2f0   : > { %v10103_v61 = vpop.f32.mrf.mxu1 }
 0x2fa   : > { %v10105_v62 = vpop.f32.mrf.mxu1 }
 0x2fc   : > { %v10107_v0 = vpop.f32.mrf.mxu1 }
 0x2fe   : > { %v10109_v1 = vpop.f32.mrf.mxu1 }
 0x300   : > { %v10111_v37 = vpop.f32.mrf.mxu1 }
 0x30a   : > { %v10113_v2 = vpop.f32.mrf.mxu1 }
 0x30c   : > { %v10115_v3 = vpop.f32.mrf.mxu1 }
 0x30e   : > { %v10117_v4 = vpop.f32.mrf.mxu1 }
 0x310   : > { %v10119_v5 = vpop.f32.mrf.mxu1 }
 0x31a   : > { %v10121_v6 = vpop.f32.mrf.mxu1 }
 0x31c   : > { %v10123_v7 = vpop.f32.mrf.mxu1 }
 0x31e   : > { %v10125_v63 = vpop.f32.mrf.mxu1 }
 0x320   : > { %v10127_v8 = vpop.f32.mrf.mxu1 }
 0x32a   : > { %v10129_v9 = vpop.f32.mrf.mxu1 }
 0x32c   : > { %v10131_v11 = vpop.f32.mrf.mxu1 }
 0x32e   : > { %v10133_v12 = vpop.f32.mrf.mxu1 }
 0x330   : > { %v10135_v13 = vpop.f32.mrf.mxu1 }
 0x33a   : > { %v10137_v27 = vpop.f32.mrf.mxu1 }
 0x33c   : > { %v10139_v14 = vpop.f32.mrf.mxu1 }
 0x33e   : > { %v10141_v16 = vpop.f32.mrf.mxu1 }
 0x340   : > { %v10145_v21 = vpop.f32.mrf.mxu1 }
 0x34a   : > { %v10148_v23 = vpop.f32.mrf.mxu1 }
 0x34c   : > { %v10150_v24 = vpop.f32.mrf.mxu1 }
 0x34e   : > { %v10156_v28 = vpop.f32.mrf.mxu1 }
 0x350   : > { %v10158_v29 = vpop.f32.mrf.mxu1 }
 0x352   : > { %v2415_v31 = vpop.f32.mrf.mxu1 }
 0x353   : > { %v2416_v32 = vadd.f32 %v2415_v31, %v2283_v30 }
 0x354   : > { %v2417_v33 = vpop.f32.mrf.mxu1 }
 0x355   : > { %v2514_v40 = vmax.f32 %v2416_v32, 0.0 }
 0x356   : > { %v2419_v34 = vpop.f32.mrf.mxu1 }
 0x357   : > { %v2420_v36 = vadd.f32 %v2419_v34, %v2287_v17 }
 0x358   : > { %v2421_v39 = vpop.f32.mrf.mxu1 }
 0x359   : > { %v2516_v41 = vmax.f32 %v2420_v36, 0.0  ;;  %v2422_v31 = vadd.f32 %v2421_v39, %v2289_v19  ;;  %v2418_v36 = vadd.f32 %v2417_v33, %v2285_v45  ;;  %v8305_v45 = vld [vmem:[#allocation8 + $0xc0] ss:$16 sps:$4 sm:$0xff]  }
 0x35a   : > { %v2425_v46 = vpop.f32.mrf.mxu1 }
 0x35b   : > { %v10171_v48 = vpack.c.bf16 %v2516_v41, %v2514_v40  ;;  %v2426_v52 = vadd.f32 %v2425_v46, %v2293_v25  ;;  %v2517_v25 = vmax.f32 %v2422_v31, 0.0  ;;  %v8308_v31 = vld [vmem:[#allocation8 + $0xc8] ss:$16 sps:$4 sm:$0xff]  }
 0x35c   : > { %v2427_v42 = vpop.f32.mrf.mxu1 }
 0x35d   : > { %v2428_v54 = vadd.f32 %v2427_v42, %v2295_v38  ;;  %v2518_v17 = vmax.f32 %v2426_v52, 0.0  ;;  %v8299_v38 = vld [vmem:[#allocation8 + $0xe0] ss:$16 sps:$4 sm:$0xff]   ;;  %v2515_v52 = vmax.f32 %v2418_v36, 0.0 }
 0x35e   : > { %v2429_v53 = vpop.f32.mrf.mxu1 }
 0x35f   : > { %v2430_v30 = vadd.f32 %v2429_v53, %v2297_v43  ;;  %v2519_v41 = vmax.f32 %v2428_v54, 0.0  ;;  %v8302_v43 = vld [vmem:[#allocation8 + $0xe8] ss:$16 sps:$4 sm:$0xff]   ;;  %v8310_v53 = vld [vmem:[#allocation8 + $0xcc] ss:$16 sps:$4 sm:$0xff]  }
 0x360   : > { %v2431_v32 = vpop.f32.mrf.mxu1 }
 0x361   : > { %v2520_v34 = vmax.f32 %v2430_v30, 0.0  ;;  %v2432_v50 = vadd.f32 %v2431_v32, %v2299_v15  ;;  %v2555_v15 = vpack.c.bf16 %v2517_v25, %v2515_v52  ;;  %v8314_v25 = vld [vmem:[#allocation8 + $0xa8] ss:$16 sps:$4 sm:$0xff]  }
 0x362   : > { %v2435_v40 = vpop.f32.mrf.mxu1 }
 0x363   : > { %v2556_v44 = vpack.c.bf16 %v2520_v34, %v2518_v17  ;;  %v2521_v46 = vmax.f32 %v2432_v50, 0.0  ;;  %v2436_v42 = vadd.f32 %v2435_v40, %v2303_v51  ;;  %v8313_v17 = vld [vmem:[#allocation8 + $0xa4] ss:$16 sps:$4 sm:$0xff]   ;;  %v8316_v34 = vld [vmem:[#allocation8 + $0xac] ss:$16 sps:$4 sm:$0xff]   ;;  %v2313_v50 = vadd.f32 %v10097_v58, %v10154_v26 }
 0x364   : > { %v10184_v55 = vpop.f32.mrf.mxu1  ;;  %v2315_v51 = vadd.f32 %v10099_v59, %v10167_v47  ;;  %v8319_v58 = vld [vmem:[#allocation8 + $0x84] ss:$16 sps:$4 sm:$0xff]  }
 0x365   : > { %v2557_v39 = vpack.c.bf16 %v2521_v46, %v2519_v41  ;;  %v2522_v30 = vmax.f32 %v2436_v42, 0.0  ;;  %v2317_v41 = vadd.f32 %v10101_v60, %v10154_v26  ;;  %v8311_v46 = vld [vmem:[#allocation8 + $0xa0] ss:$16 sps:$4 sm:$0xff]   ;;  %v2319_v42 = vadd.f32 %v10103_v61, %v10167_v47 }
 0x366   : > { %v2439_v33 = vpop.f32.mrf.mxu1  ;;  %v8317_v60 = vld [vmem:[#allocation8 + $0x80] ss:$16 sps:$4 sm:$0xff]  }
 0x367   : > { %v2440_v19 = vadd.f32 %v2439_v33, %v2307_v35  ;;  %7399 = vmatprep.mubr.msk.bf16.mxu1 %vm2925_vm7, %v2557_v39  ;;  %7401 = vmatprep.mubr.msk.bf16.mxu0 %vm2925_vm7, %v2557_v39  ;;  %v8322_v39 = vld [vmem:[#allocation8 + $0x8c] ss:$16 sps:$4 sm:$0xff]  }
 0x368   : > { %v10190_v54 = vpop.f32.mrf.mxu1  ;;  %2975 = vmatmul.mubr.bf16.vlgmr.msra.gmra.mxu1 %v2556_v44  ;;  %3018 = vmatmul.mubr.bf16.vlgmr.msra.gmra.mxu0 %v2556_v44 }
 0x369   : > { %v2524_v57 = vmax.f32 %v2440_v19, 0.0  ;;  %3294 = vmatpush1.bf16.msra.mxu1 %v8299_v38  ;;  %3337 = vmatpush1.bf16.msra.mxu0 %v8302_v43 }
 0x36a   : > { %7455 = vmatprep.mubr.msk.bf16.mxu1 %vm2925_vm7, %v2555_v15  ;;  %7457 = vmatprep.mubr.msk.bf16.mxu0 %vm2925_vm7, %v2555_v15  ;;  %v2445_v32 = vpop.f32.mrf.mxu1  ;;  %v8325_v15 = vld [vmem:[#allocation8 + $0x64] ss:$16 sps:$4 sm:$0xff]  }
 0x36b   : > { %v10196_v36 = vpack.c.bf16 %v2524_v57, %v2522_v30  ;;  %3295 = vmatprep.subr.bf16.mxu1 %v8307_v49  ;;  %3338 = vmatprep.subr.bf16.mxu0 %v8310_v53  ;;  %v2446_v44 = vadd.f32 %v2445_v32, %v2313_v50  ;;  %v8320_v49 = vld [vmem:[#allocation8 + $0x88] ss:$16 sps:$4 sm:$0xff]   ;;  %v8328_v30 = vld [vmem:[#allocation8 + $0x6c] ss:$16 sps:$4 sm:$0xff]   ;;  %v2323_v57 = vadd.f32 %v10105_v62, %v10154_v26  ;;  %v8331_v62 = vld [vmem:[#allocation8 + $0x44] ss:$16 sps:$4 sm:$0xff]  }
 0x36c   : > { %v2447_v40 = vpop.f32.mrf.mxu1  ;;  %v2325_v32 = vadd.f32 %v10107_v0, %v10167_v47 }
 0x36d   : > { %3296 = vmatpush1.bf16.msra.mxu1 %v8305_v45  ;;  %3339 = vmatpush1.bf16.msra.mxu0 %v8308_v31  ;;  %v2448_v38 = vadd.f32 %v2447_v40, %v2315_v51  ;;  %v2526_v59 = vmax.f32 %v2446_v44, 0.0  ;;  %v8323_v51 = vld [vmem:[#allocation8 + $0x60] ss:$16 sps:$4 sm:$0xff]  }
 0x36e   : > { %v2449_v35 = vpop.f32.mrf.mxu1  ;;  %3297 = vmatprep.subr.bf16.mxu1 %v8313_v17  ;;  %3340 = vmatprep.subr.bf16.mxu0 %v8316_v34  ;;  %v2327_v34 = vadd.f32 %v10109_v1, %v10154_v26 }
 0x36f   : > { %v2450_v43 = vadd.f32 %v2449_v35, %v2317_v41  ;;  %v2527_v45 = vmax.f32 %v2448_v38, 0.0  ;;  %v8326_v41 = vld [vmem:[#allocation8 + $0x68] ss:$16 sps:$4 sm:$0xff]   ;;  %v8329_v38 = vld [vmem:[#allocation8 + $0x40] ss:$16 sps:$4 sm:$0xff]  }
 0x370   : > { %v2451_v52 = vpop.f32.mrf.mxu1 }
 0x371   : > { %v2528_v33 = vmax.f32 %v2450_v43, 0.0  ;;  %v2452_v19 = vadd.f32 %v2451_v52, %v2319_v42  ;;  %3298 = vmatpush1.bf16.msra.mxu1 %v8311_v46  ;;  %3341 = vmatpush1.bf16.msra.mxu0 %v8314_v25  ;;  %v8334_v46 = vld [vmem:[#allocation8 + $0x4c] ss:$16 sps:$4 sm:$0xff]   ;;  %v2329_v25 = vadd.f32 %v10111_v37, %v10167_v47  ;;  %v8332_v43 = vld [vmem:[#allocation8 + $0x48] ss:$16 sps:$4 sm:$0xff]  }
 0x372   : > { %v2455_v53 = vpop.f32.mrf.mxu1  ;;  %3299 = vmatprep.subr.bf16.mxu1 %v8319_v58  ;;  %3342 = vmatprep.subr.bf16.mxu0 %v8322_v39 }
 0x373   : > { %v10206_v61 = vpack.c.bf16 %v2528_v33, %v2526_v59  ;;  %v2529_v31 = vmax.f32 %v2452_v19, 0.0  ;;  %v2456_v40 = vadd.f32 %v2455_v53, %v2323_v57  ;;  %v8337_v59 = vld [vmem:[#allocation8 + $0x24] ss:$16 sps:$4 sm:$0xff]   ;;  %v8340_v33 = vld [vmem:[#allocation8 + $0x2c] ss:$16 sps:$4 sm:$0xff]   ;;  %v2333_v19 = vadd.f32 %v10113_v2, %v10154_v26 }
 0x374   : > { %v2457_v17 = vpop.f32.mrf.mxu1  ;;  %v2335_v53 = vadd.f32 %v10115_v3, %v10167_v47  ;;  %v8343_v2 = vld [vmem:[#allocation8 + $0x4] ss:$16 sps:$4 sm:$0xff]   ;;  %v2339_v3 = vadd.f32 %v10119_v5, %v10167_v47  ;;  %v2343_v5 = vadd.f32 %v10121_v6, %v10154_v26 }
 0x375   : > { %v10212_v50 = vpack.c.bf16 %v2529_v31, %v2527_v45  ;;  %3300 = vmatpush1.bf16.msra.mxu1 %v8317_v60  ;;  %3343 = vmatpush1.bf16.msra.mxu0 %v8320_v49  ;;  %v2458_v0 = vadd.f32 %v2457_v17, %v2325_v32  ;;  %v2530_v39 = vmax.f32 %v2456_v40, 0.0  ;;  %v8335_v31 = vld [vmem:[#allocation8 + $0x20] ss:$16 sps:$4 sm:$0xff]   ;;  %v8338_v32 = vld [vmem:[#allocation8 + $0x28] ss:$16 sps:$4 sm:$0xff]  }
 0x376   : > { %v2459_v44 = vpop.f32.mrf.mxu1  ;;  %3301 = vmatprep.subr.bf16.mxu1 %v8325_v15  ;;  %3344 = vmatprep.subr.bf16.mxu0 %v8328_v30  ;;  %v2337_v30 = vadd.f32 %v10117_v4, %v10154_v26  ;;  %v2622_v40 = vld [vmem:[#allocation8 + $0x180] sm:$0xff] }
 0x377   : > { %v2460_v35 = vadd.f32 %v2459_v44, %v2327_v34  ;;  %v2531_v60 = vmax.f32 %v2458_v0, 0.0  ;;  %v8346_v34 = vld [vmem:[#allocation8 + $0xc] ss:$16 sps:$4 sm:$0xff]   ;;  %v8341_v0 = vld [vmem:[#allocation8] ss:$16 sps:$4 sm:$0xff]  }
 0x378   : > { %v2461_v58 = vpop.f32.mrf.mxu1  ;;  %v2623_v44 = vld [vmem:[#allocation8 + $0x188] sm:$0xff] }
 0x379   : > { %v2532_v1 = vmax.f32 %v2460_v35, 0.0  ;;  %v2462_v42 = vadd.f32 %v2461_v58, %v2329_v25  ;;  %3302 = vmatpush1.bf16.msra.mxu1 %v8323_v51  ;;  %3345 = vmatpush1.bf16.msra.mxu0 %v8326_v41  ;;  %v8344_v35 = vld [vmem:[#allocation8 + $0x8] ss:$16 sps:$4 sm:$0xff]   ;;  %v7451_v58 = vcombine.high %v2622_v40, %v2622_v40 }
 0x37a   : > { %v2465_v52 = vpop.f32.mrf.mxu1  ;;  %3303 = vmatprep.subr.bf16.mxu1 %v8331_v62  ;;  %3346 = vmatprep.subr.bf16.mxu0 %v8334_v46 }
 0x37b   : > { %v10218_v37 = vpack.c.bf16 %v2532_v1, %v2530_v39  ;;  %v2533_v49 = vmax.f32 %v2462_v42, 0.0  ;;  %v2466_v45 = vadd.f32 %v2465_v52, %v2333_v19  ;;  %v7453_v1 = vcombine.high %v2623_v44, %v2623_v44 }
 0x37c   : > { %v2467_v15 = vpop.f32.mrf.mxu1  ;;  %v7450_v42 = vcombine.low %v2622_v40, %v2622_v40 }
 0x37d   : > { %v10224_v57 = vpack.c.bf16 %v2533_v49, %v2531_v60  ;;  %3304 = vmatpush1.bf16.msra.mxu1 %v8329_v38  ;;  %3347 = vmatpush1.bf16.msra.mxu0 %v8332_v43  ;;  %v2468_v51 = vadd.f32 %v2467_v15, %v2335_v53  ;;  %v2534_v62 = vmax.f32 %v2466_v45, 0.0  ;;  %v7452_v38 = vcombine.low %v2623_v44, %v2623_v44  ;;  %v8353_v45 = vld [vmem:[#allocation8 + $0x164] ss:$16 sps:$4 sm:$0xff]  }
 0x37e   : > { %v2469_v17 = vpop.f32.mrf.mxu1  ;;  %3305 = vmatprep.subr.bf16.mxu1 %v8337_v59  ;;  %3348 = vmatprep.subr.bf16.mxu0 %v8340_v33  ;;  %v2345_v33 = vadd.f32 %v10123_v7, %v10167_v47  ;;  %v2347_v60 = vadd.f32 %v10125_v63, %v10154_v26  ;;  %v3282_v6 = vsel %vm2929_vm6, %v7450_v42, 0  ;;  %v8356_v7 = vld [vmem:[#allocation8 + $0x16c] ss:$16 sps:$4 sm:$0xff]   ;;  %v8359_v44 = vld [vmem:[#allocation8 + $0x144] ss:$16 sps:$4 sm:$0xff]  }
 0x37f   : > { %v2470_v41 = vadd.f32 %v2469_v17, %v2337_v30  ;;  %v2535_v43 = vmax.f32 %v2468_v51, 0.0  ;;  %v3288_v30 = vsel %vm2929_vm6, %v7452_v38, 0  ;;  %v8354_v51 = vld [vmem:[#allocation8 + $0x168] ss:$16 sps:$4 sm:$0xff]   ;;  %v8357_v42 = vld [vmem:[#allocation8 + $0x140] ss:$16 sps:$4 sm:$0xff]  }
 0x380   : > { %v2471_v4 = vpop.f32.mrf.mxu1  ;;  %v8360_v38 = vld [vmem:[#allocation8 + $0x148] ss:$16 sps:$4 sm:$0xff]  }
 0x381   : > { %v2536_v46 = vmax.f32 %v2470_v41, 0.0  ;;  %v2472_v25 = vadd.f32 %v2471_v4, %v2339_v3  ;;  %3306 = vmatpush1.bf16.msra.mxu1 %v8335_v31  ;;  %3349 = vmatpush1.bf16.msra.mxu0 %v8338_v32  ;;  %v2349_v31 = vadd.f32 %v10127_v8, %v10167_v47  ;;  %v8351_v3 = vld [vmem:[#allocation8 + $0x160] ss:$16 sps:$4 sm:$0xff]   ;;  %v8362_v4 = vld [vmem:[#allocation8 + $0x14c] ss:$16 sps:$4 sm:$0xff]  }
 0x382   : > { %v2475_v39 = vpop.f32.mrf.mxu1  ;;  %3307 = vmatprep.subr.bf16.mxu1 %v8343_v2  ;;  %3350 = vmatprep.subr.bf16.mxu0 %v8346_v34 }
 0x383   : > { %v10230_v52 = vpack.c.bf16 %v2536_v46, %v2534_v62  ;;  %v2537_v59 = vmax.f32 %v2472_v25, 0.0  ;;  %v2476_v53 = vadd.f32 %v2475_v39, %v2343_v5  ;;  %v2353_v62 = vadd.f32 %v10129_v9, %v10154_v26  ;;  %v8365_v9 = vld [vmem:[#allocation8 + $0x124] ss:$16 sps:$4 sm:$0xff]  }
 0x384   : > { %v2477_v19 = vpop.f32.mrf.mxu1 }
 0x385   : > { %v10236_v49 = vpack.c.bf16 %v2537_v59, %v2535_v43  ;;  %3308 = vmatpush1.bf16.msra.mxu1 %v8341_v0  ;;  %3351 = vmatpush1.bf16.msra.mxu0 %v8344_v35  ;;  %v2478_v63 = vadd.f32 %v2477_v19, %v2345_v33  ;;  %v2538_v2 = vmax.f32 %v2476_v53, 0.0  ;;  %v2355_v0 = vadd.f32 %v10131_v11, %v10167_v47  ;;  %v8368_v43 = vld [vmem:[#allocation8 + $0x12c] ss:$16 sps:$4 sm:$0xff]  }
 0x386   : > { %v2479_v15 = vpop.f32.mrf.mxu1  ;;  %7454 = vmatprep.subr.msk.bf16.mxu1 %vm2929_vm6, %v7451_v58  ;;  %7456 = vmatprep.subr.msk.bf16.mxu0 %vm2929_vm6, %v7453_v1  ;;  %v2357_v58 = vadd.f32 %v10133_v12, %v10154_v26  ;;  %v2359_v59 = vadd.f32 %v10135_v13, %v10167_v47  ;;  %v2309_v12 = vadd.f32 %v10095_v10, %v10167_v47 }
 0x387   : > { %v2480_v32 = vadd.f32 %v2479_v15, %v2347_v60  ;;  %v2539_v46 = vmax.f32 %v2478_v63, 0.0  ;;  %v8374_v63 = vld [vmem:[#allocation8 + $0x10c] ss:$16 sps:$4 sm:$0xff]  }
 0x388   : > { %v2481_v17 = vpop.f32.mrf.mxu1  ;;  %v2442_v10 = vadd.f32 %v10190_v54, %v2309_v12  ;;  %v8372_v54 = vld [vmem:[#allocation8 + $0x108] ss:$16 sps:$4 sm:$0xff]   ;;  %v2375_v12 = vadd.f32 %v10150_v24, %v10167_v47 }
 0x389   : > { %v2540_v34 = vmax.f32 %v2480_v32, 0.0  ;;  %v2482_v40 = vadd.f32 %v2481_v17, %v2349_v31  ;;  %3316 = vmatpush2.bf16.msra.mxu1 %v3282_v6  ;;  %3359 = vmatpush2.bf16.msra.mxu0 %v3288_v30  ;;  %v8363_v6 = vld [vmem:[#allocation8 + $0x120] ss:$16 sps:$4 sm:$0xff]   ;;  %v8366_v30 = vld [vmem:[#allocation8 + $0x128] ss:$16 sps:$4 sm:$0xff]  }
 0x38a   : > { %v2485_v41 = vpop.f32.mrf.mxu1  ;;  %3317 = vmatprep.subr.bf16.mxu1 %v8353_v45  ;;  %3360 = vmatprep.subr.bf16.mxu0 %v8356_v7  ;;  %v2305_v45 = vadd.f32 %v10091_v56, %v10167_v47  ;;  %v2363_v7 = vadd.f32 %v10137_v27, %v10154_v26  ;;  %v8371_v31 = vld [vmem:[#allocation8 + $0x104] ss:$16 sps:$4 sm:$0xff]   ;;  %v2367_v56 = vadd.f32 %v10141_v16, %v10154_v26  ;;  %v8384_v24 = vld [vmem:[#allocation8 + $0x3e8] ss:$16 sps:$4 sm:$0xff]  }
 0x38b   : > { %v10246_v8 = vpack.c.bf16 %v2540_v34, %v2538_v2  ;;  %v2541_v25 = vmax.f32 %v2482_v40, 0.0  ;;  %v2486_v1 = vadd.f32 %v2485_v41, %v2353_v62  ;;  %v2365_v34 = vadd.f32 %v10139_v14, %v10167_v47  ;;  %v8369_v41 = vld [vmem:[#allocation8 + $0x100] ss:$16 sps:$4 sm:$0xff]   ;;  %v8380_v62 = vld [vmem:[#allocation8 + $0x40c] ss:$16 sps:$4 sm:$0xff]  }
 0x38c   : > { %v2487_v35 = vpop.f32.mrf.mxu1  ;;  %v2438_v27 = vadd.f32 %v10184_v55, %v2305_v45  ;;  %v2369_v14 = vadd.f32 %v10145_v21, %v10167_v47  ;;  %v8389_v45 = vld [vmem:[#allocation8 + $0x3c4] ss:$16 sps:$4 sm:$0xff]  }
 0x38d   : > { %v10252_v39 = vpack.c.bf16 %v2541_v25, %v2539_v46  ;;  %3318 = vmatpush2.bf16.msra.mxu1 %v8351_v3  ;;  %3361 = vmatpush2.bf16.msra.mxu0 %v8354_v51  ;;  %v2488_v11 = vadd.f32 %v2487_v35, %v2355_v0  ;;  %v2542_v60 = vmax.f32 %v2486_v1, 0.0  ;;  %v2525_v46 = vmax.f32 %v2442_v10, 0.0 }
 0x38e   : > { %v2489_v5 = vpop.f32.mrf.mxu1  ;;  %3319 = vmatprep.subr.bf16.mxu1 %v8359_v44  ;;  %3362 = vmatprep.subr.bf16.mxu0 %v8362_v4  ;;  %v8377_v4 = vld [vmem:[#allocation8 + $0x404] ss:$16 sps:$4 sm:$0xff]   ;;  %v2523_v55 = vmax.f32 %v2438_v27, 0.0 }
 0x38f   : > { %v2490_v33 = vadd.f32 %v2489_v5, %v2357_v58  ;;  %v2543_v32 = vmax.f32 %v2488_v11, 0.0 }
 0x390   : > { %v2491_v19 = vpop.f32.mrf.mxu1 }
 0x391   : > { %v2544_v53 = vmax.f32 %v2490_v33, 0.0  ;;  %v2492_v15 = vadd.f32 %v2491_v19, %v2359_v59  ;;  %3320 = vmatpush2.bf16.msra.mxu1 %v8357_v42  ;;  %3363 = vmatpush2.bf16.msra.mxu0 %v8360_v38  ;;  %v8375_v42 = vld [vmem:[#allocation8 + $0x400] ss:$16 sps:$4 sm:$0xff]   ;;  %v2373_v38 = vadd.f32 %v10148_v23, %v10154_v26  ;;  %v8383_v33 = vld [vmem:[#allocation8 + $0x3e4] ss:$16 sps:$4 sm:$0xff]   ;;  %v2377_v23 = vadd.f32 %v10156_v28, %v10154_v26 }
 0x392   : > { %v2495_v13 = vpop.f32.mrf.mxu1  ;;  %3321 = vmatprep.subr.bf16.mxu1 %v8365_v9  ;;  %3364 = vmatprep.subr.bf16.mxu0 %v8368_v43  ;;  %v8378_v9 = vld [vmem:[#allocation8 + $0x408] ss:$16 sps:$4 sm:$0xff]   ;;  %v2559_v43 = vpack.c.bf16 %v2525_v46, %v2523_v55  ;;  %v8386_v19 = vld [vmem:[#allocation8 + $0x3ec] ss:$16 sps:$4 sm:$0xff]  }
 0x393   : > { %v10263_v17 = vpack.c.bf16 %v2544_v53, %v2542_v60  ;;  %v2545_v2 = vmax.f32 %v2492_v15, 0.0  ;;  %v2496_v51 = vadd.f32 %v2495_v13, %v2363_v7  ;;  %v8392_v26 = vld [vmem:[#allocation8 + $0x3cc] ss:$16 sps:$4 sm:$0xff]  }
 0x394   : > { %v2497_v40 = vpop.f32.mrf.mxu1  ;;  %v8410_v46 = vld [vmem:[#allocation8 + $0x36c] ss:$16 sps:$4 sm:$0xff]  }
 0x395   : > { %v10270_v3 = vpack.c.bf16 %v2545_v2, %v2543_v32  ;;  %3322 = vmatpush2.bf16.msra.mxu1 %v8363_v6  ;;  %3365 = vmatpush2.bf16.msra.mxu0 %v8366_v30  ;;  %v2498_v16 = vadd.f32 %v2497_v40, %v2365_v34  ;;  %v2546_v35 = vmax.f32 %v2496_v51, 0.0  ;;  %v8381_v6 = vld [vmem:[#allocation8 + $0x3e0] ss:$16 sps:$4 sm:$0xff]   ;;  %v8390_v2 = vld [vmem:[#allocation8 + $0x3c8] ss:$16 sps:$4 sm:$0xff]  }
 0x396   : > { %v2499_v44 = vpop.f32.mrf.mxu1  ;;  %3323 = vmatprep.subr.bf16.mxu1 %v8371_v31  ;;  %3366 = vmatprep.subr.bf16.mxu0 %v8374_v63  ;;  %v8387_v32 = vld [vmem:[#allocation8 + $0x3c0] ss:$16 sps:$4 sm:$0xff]   ;;  %v8395_v34 = vld [vmem:[#allocation8 + $0x3a4] ss:$16 sps:$4 sm:$0xff]   ;;  %v8416_v55 = vld [vmem:[#allocation8 + $0x34c] ss:$16 sps:$4 sm:$0xff]  }
 0x397   : > { %v2500_v25 = vadd.f32 %v2499_v44, %v2367_v56  ;;  %v2547_v21 = vmax.f32 %v2498_v16, 0.0  ;;  %v8393_v51 = vld [vmem:[#allocation8 + $0x3a0] ss:$16 sps:$4 sm:$0xff]   ;;  %v8404_v44 = vld [vmem:[#allocation8 + $0x38c] ss:$16 sps:$4 sm:$0xff]  }
 0x398   : > { %v2501_v0 = vpop.f32.mrf.mxu1  ;;  %v8405_v16 = vld [vmem:[#allocation8 + $0x360] ss:$16 sps:$4 sm:$0xff]  }
 0x399   : > { %v2548_v58 = vmax.f32 %v2500_v25, 0.0  ;;  %v2502_v1 = vadd.f32 %v2501_v0, %v2369_v14  ;;  %3324 = vmatpush2.bf16.msra.mxu1 %v8369_v41  ;;  %3367 = vmatpush2.bf16.msra.mxu0 %v8372_v54  ;;  %v8396_v41 = vld [vmem:[#allocation8 + $0x3a8] ss:$16 sps:$4 sm:$0xff]   ;;  %v8401_v54 = vld [vmem:[#allocation8 + $0x384] ss:$16 sps:$4 sm:$0xff]  }
 0x39a   : > { %v2505_v5 = vpop.f32.mrf.mxu1  ;;  %3695 = vmatprep.subr.bf16.mxu1 %v8377_v4  ;;  %3738 = vmatprep.subr.bf16.mxu0 %v8380_v62  ;;  %v8399_v4 = vld [vmem:[#allocation8 + $0x380] ss:$16 sps:$4 sm:$0xff]   ;;  %v8402_v62 = vld [vmem:[#allocation8 + $0x388] ss:$16 sps:$4 sm:$0xff]   ;;  %v8407_v14 = vld [vmem:[#allocation8 + $0x364] ss:$16 sps:$4 sm:$0xff]  }
 0x39b   : > { %v10276_v59 = vpack.c.bf16 %v2548_v58, %v2546_v35  ;;  %v2549_v11 = vmax.f32 %v2502_v1, 0.0  ;;  %v2506_v15 = vadd.f32 %v2505_v5, %v2373_v38  ;;  %v8408_v25 = vld [vmem:[#allocation8 + $0x368] ss:$16 sps:$4 sm:$0xff]   ;;  %v8413_v0 = vld [vmem:[#allocation8 + $0x344] ss:$16 sps:$4 sm:$0xff]  }
 0x39c   : > { %3326 = vmatmul.mubr.bf16.vlgmr.msra.gmra.mxu1 %v10171_v48  ;;  %3369 = vmatmul.mubr.bf16.vlgmr.msra.gmra.mxu0 %v10171_v48  ;;  %v2507_v60 = vpop.f32.mrf.mxu1  ;;  %v2379_v48 = vadd.f32 %v10158_v29, %v10167_v47  ;;  %v8398_v29 = vld [vmem:[#allocation8 + $0x3ac] ss:$16 sps:$4 sm:$0xff]   ;;  %v8411_v35 = vld [vmem:[#allocation8 + $0x340] ss:$16 sps:$4 sm:$0xff]   ;;  %v8414_v58 = vld [vmem:[#allocation8 + $0x348] ss:$16 sps:$4 sm:$0xff]  }
 0x39d   : > { %v10284_v53 = vpack.c.bf16 %v2549_v11, %v2547_v21  ;;  %3696 = vmatpush1.bf16.msra.mxu1 %v8375_v42  ;;  %7511 = vmatprep.mubr.msk.bf16.mxu1 %vm2925_vm7, %v2559_v43  ;;  %v2508_v7 = vadd.f32 %v2507_v60, %v2375_v12  ;;  %v2550_v31 = vmax.f32 %v2506_v15, 0.0  ;;  %v8419_v1 = vld [vmem:[#allocation8 + $0x324] ss:$16 sps:$4 sm:$0xff]   ;;  %v8422_v42 = vld [vmem:[#allocation8 + $0x32c] ss:$16 sps:$4 sm:$0xff]  }
 0x39e   : > { %3739 = vmatpush1.bf16.msra.mxu0 %v8378_v9  ;;  %7513 = vmatprep.mubr.msk.bf16.mxu0 %vm2925_vm7, %v2559_v43  ;;  %v2509_v30 = vpop.f32.mrf.mxu1  ;;  %v3428_v38 = vld [vmem:[#allocation8 + $0x4a0] sm:$0xff]  ;;  %v3429_v5 = vld [vmem:[#allocation8 + $0x4a8] sm:$0xff] }
 0x39f   : > { %v2510_v13 = vadd.f32 %v2509_v30, %v2377_v23  ;;  %3697 = vmatprep.subr.bf16.mxu1 %v8383_v33  ;;  %3740 = vmatprep.subr.bf16.mxu0 %v8386_v19  ;;  %v2551_v56 = vmax.f32 %v2508_v7, 0.0  ;;  %v8417_v9 = vld [vmem:[#allocation8 + $0x320] ss:$16 sps:$4 sm:$0xff]   ;;  %v8420_v43 = vld [vmem:[#allocation8 + $0x328] ss:$16 sps:$4 sm:$0xff]   ;;  %v7507_v21 = vcombine.high %v3428_v38, %v3428_v38  ;;  %v7506_v11 = vcombine.low %v3428_v38, %v3428_v38 }
 0x3a0   : > { %v2511_v28 = vpop.f32.mrf.mxu1  ;;  %v7509_v33 = vcombine.high %v3429_v5, %v3429_v5  ;;  %v7508_v19 = vcombine.low %v3429_v5, %v3429_v5  ;;  %v8429_v60 = vld [vmem:[#allocation8 + $0x484] ss:$16 sps:$4 sm:$0xff]   ;;  %v8432_v15 = vld [vmem:[#allocation8 + $0x48c] ss:$16 sps:$4 sm:$0xff]   ;;  %v8430_v30 = vld [vmem:[#allocation8 + $0x488] ss:$16 sps:$4 sm:$0xff]  }
 0x3a1   : > { %v2552_v63 = vmax.f32 %v2510_v13, 0.0  ;;  %v2512_v10 = vadd.f32 %v2511_v28, %v2379_v48  ;;  %3698 = vmatpush1.bf16.msra.mxu1 %v8381_v6  ;;  %v3684_v12 = vsel %vm2929_vm6, %v7506_v11, 0  ;;  %v8427_v6 = vld [vmem:[#allocation8 + $0x480] ss:$16 sps:$4 sm:$0xff]   ;;  %v8436_v7 = vld [vmem:[#allocation8 + $0x468] ss:$16 sps:$4 sm:$0xff]  }
 0x3a2   : > { %3741 = vmatpush1.bf16.msra.mxu0 %v8384_v24  ;;  %3699 = vmatprep.subr.bf16.mxu1 %v8389_v45  ;;  %v3690_v23 = vsel %vm2929_vm6, %v7508_v19, 0  ;;  %v8435_v24 = vld [vmem:[#allocation8 + $0x464] ss:$16 sps:$4 sm:$0xff]   ;;  %v8438_v45 = vld [vmem:[#allocation8 + $0x46c] ss:$16 sps:$4 sm:$0xff]  }
 0x3a3   : > { %v10290_v40 = vpack.c.bf16 %v2552_v63, %v2550_v31  ;;  %v2553_v27 = vmax.f32 %v2512_v10, 0.0  ;;  %3742 = vmatprep.subr.bf16.mxu0 %v8392_v26  ;;  %v8433_v48 = vld [vmem:[#allocation8 + $0x460] ss:$16 sps:$4 sm:$0xff]   ;;  %v8441_v13 = vld [vmem:[#allocation8 + $0x444] ss:$16 sps:$4 sm:$0xff]  }
 0x3a4   : > { %v8444_v26 = vld [vmem:[#allocation8 + $0x44c] ss:$16 sps:$4 sm:$0xff]   ;;  %v8439_v28 = vld [vmem:[#allocation8 + $0x440] ss:$16 sps:$4 sm:$0xff]   ;;  %v8442_v31 = vld [vmem:[#allocation8 + $0x448] ss:$16 sps:$4 sm:$0xff]  }
 0x3a5   : > { %v10292_v47 = vpack.c.bf16 %v2553_v27, %v2551_v56  ;;  %3700 = vmatpush1.bf16.msra.mxu1 %v8387_v32  ;;  %v8447_v63 = vld [vmem:[#allocation8 + $0x424] ss:$16 sps:$4 sm:$0xff]   ;;  %v8450_v10 = vld [vmem:[#allocation8 + $0x42c] ss:$16 sps:$4 sm:$0xff]   ;;  %v8445_v32 = vld [vmem:[#allocation8 + $0x420] ss:$16 sps:$4 sm:$0xff]  }
 0x3a6   : > { %3743 = vmatpush1.bf16.msra.mxu0 %v8390_v2  ;;  %3701 = vmatprep.subr.bf16.mxu1 %v8395_v34  ;;  %v8448_v2 = vld [vmem:[#allocation8 + $0x428] ss:$16 sps:$4 sm:$0xff]   ;;  %v8453_v34 = vld [vmem:[#allocation8 + $0x594] ss:$16 sps:$4 sm:$0xff]   ;;  %v8456_v56 = vld [vmem:[#allocation8 + $0x59c] ss:$16 sps:$4 sm:$0xff]  }
 0x3a7   : > { %3744 = vmatprep.subr.bf16.mxu0 %v8398_v29  ;;  %v8451_v27 = vld [vmem:[#allocation8 + $0x590] ss:$16 sps:$4 sm:$0xff]   ;;  %v8454_v29 = vld [vmem:[#allocation8 + $0x598] ss:$16 sps:$4 sm:$0xff]   ;;  %v8498_v19 = vld [vmem:[#allocation8 + $0x4bc] ss:$16 sps:$4 sm:$0xff]  }
 0x3a8   : > { %v8481_v38 = vld [vmem:[#allocation8 + $0x4f0] ss:$16 sps:$4 sm:$0xff]   ;;  %v8484_v5 = vld [vmem:[#allocation8 + $0x4f8] ss:$16 sps:$4 sm:$0xff]  }
 0x3a9   : > { %3702 = vmatpush1.bf16.msra.mxu1 %v8393_v51  ;;  %v8459_v51 = vld [vmem:[#allocation8 + $0x574] ss:$16 sps:$4 sm:$0xff]   ;;  %v8490_v11 = vld [vmem:[#allocation8 + $0x4d8] ss:$16 sps:$4 sm:$0xff]  }
 0x3aa   : > { %3745 = vmatpush1.bf16.msra.mxu0 %v8396_v41  ;;  %3703 = vmatprep.subr.bf16.mxu1 %v8401_v54  ;;  %v8462_v41 = vld [vmem:[#allocation8 + $0x57c] ss:$16 sps:$4 sm:$0xff]   ;;  %v8457_v54 = vld [vmem:[#allocation8 + $0x570] ss:$16 sps:$4 sm:$0xff]  }
 0x3ab   : > { %3746 = vmatprep.subr.bf16.mxu0 %v8404_v44  ;;  %v8460_v44 = vld [vmem:[#allocation8 + $0x578] ss:$16 sps:$4 sm:$0xff]  }
 0x3ad   : > { %3704 = vmatpush1.bf16.msra.mxu1 %v8399_v4  ;;  %v8465_v4 = vld [vmem:[#allocation8 + $0x554] ss:$16 sps:$4 sm:$0xff]  }
 0x3ae   : > { %3747 = vmatpush1.bf16.msra.mxu0 %v8402_v62  ;;  %3705 = vmatprep.subr.bf16.mxu1 %v8407_v14  ;;  %v8468_v62 = vld [vmem:[#allocation8 + $0x55c] ss:$16 sps:$4 sm:$0xff]   ;;  %v8463_v14 = vld [vmem:[#allocation8 + $0x550] ss:$16 sps:$4 sm:$0xff]  }
 0x3af   : > { %3748 = vmatprep.subr.bf16.mxu0 %v8410_v46  ;;  %v8466_v46 = vld [vmem:[#allocation8 + $0x558] ss:$16 sps:$4 sm:$0xff]  }
 0x3b1   : > { %3706 = vmatpush1.bf16.msra.mxu1 %v8405_v16  ;;  %v8474_v16 = vld [vmem:[#allocation8 + $0x53c] ss:$16 sps:$4 sm:$0xff]  }
 0x3b2   : > { %3749 = vmatpush1.bf16.msra.mxu0 %v8408_v25  ;;  %3707 = vmatprep.subr.bf16.mxu1 %v8413_v0  ;;  %v8469_v25 = vld [vmem:[#allocation8 + $0x530] ss:$16 sps:$4 sm:$0xff]   ;;  %v8472_v0 = vld [vmem:[#allocation8 + $0x538] ss:$16 sps:$4 sm:$0xff]  }
 0x3b3   : > { %3750 = vmatprep.subr.bf16.mxu0 %v8416_v55  ;;  %v8477_v55 = vld [vmem:[#allocation8 + $0x514] ss:$16 sps:$4 sm:$0xff]  }
 0x3b5   : > { %3708 = vmatpush1.bf16.msra.mxu1 %v8411_v35  ;;  %v8480_v35 = vld [vmem:[#allocation8 + $0x51c] ss:$16 sps:$4 sm:$0xff]  }
 0x3b6   : > { %3751 = vmatpush1.bf16.msra.mxu0 %v8414_v58  ;;  %3709 = vmatprep.subr.bf16.mxu1 %v8419_v1  ;;  %v8478_v58 = vld [vmem:[#allocation8 + $0x518] ss:$16 sps:$4 sm:$0xff]   ;;  %v8483_v1 = vld [vmem:[#allocation8 + $0x4f4] ss:$16 sps:$4 sm:$0xff]  }
 0x3b7   : > { %3752 = vmatprep.subr.bf16.mxu0 %v8422_v42  ;;  %v8486_v42 = vld [vmem:[#allocation8 + $0x4fc] ss:$16 sps:$4 sm:$0xff]  }
 0x3b9   : > { %3710 = vmatpush1.bf16.msra.mxu1 %v8417_v9  ;;  %v8489_v9 = vld [vmem:[#allocation8 + $0x4d4] ss:$16 sps:$4 sm:$0xff]  }
 0x3ba   : > { %3753 = vmatpush1.bf16.msra.mxu0 %v8420_v43  ;;  %7510 = vmatprep.subr.msk.bf16.mxu1 %vm2929_vm6, %v7507_v21  ;;  %v8492_v43 = vld [vmem:[#allocation8 + $0x4dc] ss:$16 sps:$4 sm:$0xff]   ;;  %v8487_v21 = vld [vmem:[#allocation8 + $0x4d0] ss:$16 sps:$4 sm:$0xff]  }
 0x3bb   : > { %7512 = vmatprep.subr.msk.bf16.mxu0 %vm2929_vm6, %v7509_v33  ;;  %v8495_v33 = vld [vmem:[#allocation8 + $0x4b4] ss:$16 sps:$4 sm:$0xff]  }
 0x3bd   : > { %3718 = vmatpush2.bf16.msra.mxu1 %v3684_v12  ;;  %v3838_v12 = vld [vmem:[#allocation8 + $0x630] sm:$0xff] }
 0x3be   : > { %3761 = vmatpush2.bf16.msra.mxu0 %v3690_v23  ;;  %3719 = vmatprep.subr.bf16.mxu1 %v8429_v60  ;;  %v3839_v60 = vld [vmem:[#allocation8 + $0x638] sm:$0xff]  ;;  %v8493_v23 = vld [vmem:[#allocation8 + $0x4b0] ss:$16 sps:$4 sm:$0xff]  }
 0x3bf   : > { %3762 = vmatprep.subr.bf16.mxu0 %v8432_v15  ;;  %v8496_v15 = vld [vmem:[#allocation8 + $0x4b8] ss:$16 sps:$4 sm:$0xff]  }
 0x3c1   : > { %3720 = vmatpush2.bf16.msra.mxu1 %v8427_v6  ;;  %v7563_v6 = vcombine.high %v3838_v12, %v3838_v12 }
 0x3c2   : > { %3763 = vmatpush2.bf16.msra.mxu0 %v8430_v30  ;;  %3721 = vmatprep.subr.bf16.mxu1 %v8435_v24  ;;  %v7562_v30 = vcombine.low %v3838_v12, %v3838_v12  ;;  %v7565_v24 = vcombine.high %v3839_v60, %v3839_v60  ;;  %v8565_v12 = vld [vmem:[#allocation8 + $0x664] ss:$16 sps:$4 sm:$0xff]  }
 0x3c3   : > { %3764 = vmatprep.subr.bf16.mxu0 %v8438_v45  ;;  %v7564_v45 = vcombine.low %v3839_v60, %v3839_v60  ;;  %v8568_v60 = vld [vmem:[#allocation8 + $0x66c] ss:$16 sps:$4 sm:$0xff]  }
 0x3c5   : > { %3722 = vmatpush2.bf16.msra.mxu1 %v8433_v48  ;;  %v4094_v48 = vsel %vm2929_vm6, %v7562_v30, 0  ;;  %v8574_v30 = vld [vmem:[#allocation8 + $0x64c] ss:$16 sps:$4 sm:$0xff]  }
 0x3c6   : > { %3765 = vmatpush2.bf16.msra.mxu0 %v8436_v7  ;;  %3723 = vmatprep.subr.bf16.mxu1 %v8441_v13  ;;  %v8505_v7 = vld [vmem:[#allocation8 + $0x614] ss:$16 sps:$4 sm:$0xff]   ;;  %v4100_v13 = vsel %vm2929_vm6, %v7564_v45, 0  ;;  %v4249_v45 = vld [vmem:[#allocation8 + $0x7c8] sm:$0xff] }
 0x3c7   : > { %3766 = vmatprep.subr.bf16.mxu0 %v8444_v26  ;;  %v8508_v26 = vld [vmem:[#allocation8 + $0x61c] ss:$16 sps:$4 sm:$0xff]  }
 0x3c9   : > { %3724 = vmatpush2.bf16.msra.mxu1 %v8439_v28  ;;  %v8503_v28 = vld [vmem:[#allocation8 + $0x610] ss:$16 sps:$4 sm:$0xff]  }
 0x3ca   : > { %3767 = vmatpush2.bf16.msra.mxu0 %v8442_v31  ;;  %3725 = vmatprep.subr.bf16.mxu1 %v8447_v63  ;;  %v8506_v31 = vld [vmem:[#allocation8 + $0x618] ss:$16 sps:$4 sm:$0xff]   ;;  %v8511_v63 = vld [vmem:[#allocation8 + $0x5f4] ss:$16 sps:$4 sm:$0xff]  }
 0x3cb   : > { %3768 = vmatprep.subr.bf16.mxu0 %v8450_v10  ;;  %v8514_v10 = vld [vmem:[#allocation8 + $0x5fc] ss:$16 sps:$4 sm:$0xff]  }
 0x3cd   : > { %3726 = vmatpush2.bf16.msra.mxu1 %v8445_v32  ;;  %v8509_v32 = vld [vmem:[#allocation8 + $0x5f0] ss:$16 sps:$4 sm:$0xff]  }
 0x3ce   : > { %3769 = vmatpush2.bf16.msra.mxu0 %v8448_v2  ;;  %4105 = vmatprep.subr.bf16.mxu1 %v8453_v34  ;;  %v8512_v2 = vld [vmem:[#allocation8 + $0x5f8] ss:$16 sps:$4 sm:$0xff]   ;;  %v8517_v34 = vld [vmem:[#allocation8 + $0x5d4] ss:$16 sps:$4 sm:$0xff]  }
 0x3cf   : > { %4148 = vmatprep.subr.bf16.mxu0 %v8456_v56  ;;  %v8520_v56 = vld [vmem:[#allocation8 + $0x5dc] ss:$16 sps:$4 sm:$0xff]  }
 0x3d0   : > { %3728 = vmatmul.mubr.bf16.vlgmr.msra.gmra.mxu1 %v10196_v36 }
 0x3d1   : > { %3771 = vmatmul.mubr.bf16.vlgmr.msra.gmra.mxu0 %v10196_v36  ;;  %4106 = vmatpush1.bf16.msra.mxu1 %v8451_v27  ;;  %v8471_v36 = vld [vmem:[#allocation8 + $0x534] ss:$16 sps:$4 sm:$0xff]   ;;  %v8515_v27 = vld [vmem:[#allocation8 + $0x5d0] ss:$16 sps:$4 sm:$0xff]  }
 0x3d2   : > { %7567 = vmatprep.mubr.msk.bf16.mxu1 %vm2925_vm7, %v10212_v50  ;;  %4149 = vmatpush1.bf16.msra.mxu0 %v8454_v29  ;;  %v8518_v29 = vld [vmem:[#allocation8 + $0x5d8] ss:$16 sps:$4 sm:$0xff]  }
 0x3d3   : > { %7569 = vmatprep.mubr.msk.bf16.mxu0 %vm2925_vm7, %v10212_v50  ;;  %4107 = vmatprep.subr.bf16.mxu1 %v8459_v51  ;;  %v8475_v50 = vld [vmem:[#allocation8 + $0x510] ss:$16 sps:$4 sm:$0xff]   ;;  %v8523_v51 = vld [vmem:[#allocation8 + $0x5b4] ss:$16 sps:$4 sm:$0xff]  }
 0x3d4   : > { %4150 = vmatprep.subr.bf16.mxu0 %v8462_v41  ;;  %v8526_v41 = vld [vmem:[#allocation8 + $0x5bc] ss:$16 sps:$4 sm:$0xff]  }
 0x3d5   : > { %4108 = vmatpush1.bf16.msra.mxu1 %v8457_v54  ;;  %v8521_v54 = vld [vmem:[#allocation8 + $0x5b0] ss:$16 sps:$4 sm:$0xff]  }
 0x3d6   : > { %4151 = vmatpush1.bf16.msra.mxu0 %v8460_v44  ;;  %4109 = vmatprep.subr.bf16.mxu1 %v8465_v4  ;;  %v8524_v44 = vld [vmem:[#allocation8 + $0x5b8] ss:$16 sps:$4 sm:$0xff]   ;;  %v8529_v4 = vld [vmem:[#allocation8 + $0x724] ss:$16 sps:$4 sm:$0xff]  }
 0x3d7   : > { %4152 = vmatprep.subr.bf16.mxu0 %v8468_v62  ;;  %v8532_v62 = vld [vmem:[#allocation8 + $0x72c] ss:$16 sps:$4 sm:$0xff]  }
 0x3d9   : > { %4110 = vmatpush1.bf16.msra.mxu1 %v8463_v14  ;;  %v8527_v14 = vld [vmem:[#allocation8 + $0x720] ss:$16 sps:$4 sm:$0xff]  }
 0x3da   : > { %4153 = vmatpush1.bf16.msra.mxu0 %v8466_v46  ;;  %4111 = vmatprep.subr.bf16.mxu1 %v8471_v36  ;;  %v8530_v46 = vld [vmem:[#allocation8 + $0x728] ss:$16 sps:$4 sm:$0xff]   ;;  %v8535_v36 = vld [vmem:[#allocation8 + $0x704] ss:$16 sps:$4 sm:$0xff]  }
 0x3db   : > { %4154 = vmatprep.subr.bf16.mxu0 %v8474_v16  ;;  %v8538_v16 = vld [vmem:[#allocation8 + $0x70c] ss:$16 sps:$4 sm:$0xff]  }
 0x3dd   : > { %4112 = vmatpush1.bf16.msra.mxu1 %v8469_v25  ;;  %v8533_v25 = vld [vmem:[#allocation8 + $0x700] ss:$16 sps:$4 sm:$0xff]  }
 0x3de   : > { %4155 = vmatpush1.bf16.msra.mxu0 %v8472_v0  ;;  %4113 = vmatprep.subr.bf16.mxu1 %v8477_v55  ;;  %v8536_v0 = vld [vmem:[#allocation8 + $0x708] ss:$16 sps:$4 sm:$0xff]   ;;  %v8541_v55 = vld [vmem:[#allocation8 + $0x6e4] ss:$16 sps:$4 sm:$0xff]  }
 0x3df   : > { %4156 = vmatprep.subr.bf16.mxu0 %v8480_v35  ;;  %v8544_v35 = vld [vmem:[#allocation8 + $0x6ec] ss:$16 sps:$4 sm:$0xff]  }
 0x3e1   : > { %4114 = vmatpush1.bf16.msra.mxu1 %v8475_v50  ;;  %v8539_v50 = vld [vmem:[#allocation8 + $0x6e0] ss:$16 sps:$4 sm:$0xff]  }
 0x3e2   : > { %4157 = vmatpush1.bf16.msra.mxu0 %v8478_v58  ;;  %4115 = vmatprep.subr.bf16.mxu1 %v8483_v1  ;;  %v8542_v58 = vld [vmem:[#allocation8 + $0x6e8] ss:$16 sps:$4 sm:$0xff]   ;;  %v8550_v1 = vld [vmem:[#allocation8 + $0x6cc] ss:$16 sps:$4 sm:$0xff]  }
 0x3e3   : > { %4158 = vmatprep.subr.bf16.mxu0 %v8486_v42  ;;  %v8545_v42 = vld [vmem:[#allocation8 + $0x6c0] ss:$16 sps:$4 sm:$0xff]  }
 0x3e5   : > { %4116 = vmatpush1.bf16.msra.mxu1 %v8481_v38  ;;  %v8548_v38 = vld [vmem:[#allocation8 + $0x6c8] ss:$16 sps:$4 sm:$0xff]  }
 0x3e6   : > { %4159 = vmatpush1.bf16.msra.mxu0 %v8484_v5  ;;  %4117 = vmatprep.subr.bf16.mxu1 %v8489_v9  ;;  %v8553_v5 = vld [vmem:[#allocation8 + $0x6a4] ss:$16 sps:$4 sm:$0xff]   ;;  %v8556_v9 = vld [vmem:[#allocation8 + $0x6ac] ss:$16 sps:$4 sm:$0xff]  }
 0x3e7   : > { %4160 = vmatprep.subr.bf16.mxu0 %v8492_v43  ;;  %v8554_v43 = vld [vmem:[#allocation8 + $0x6a8] ss:$16 sps:$4 sm:$0xff]  }
 0x3e9   : > { %4118 = vmatpush1.bf16.msra.mxu1 %v8487_v21  ;;  %v8559_v21 = vld [vmem:[#allocation8 + $0x684] ss:$16 sps:$4 sm:$0xff]  }
 0x3ea   : > { %4161 = vmatpush1.bf16.msra.mxu0 %v8490_v11  ;;  %4119 = vmatprep.subr.bf16.mxu1 %v8495_v33  ;;  %v8562_v11 = vld [vmem:[#allocation8 + $0x68c] ss:$16 sps:$4 sm:$0xff]   ;;  %v8557_v33 = vld [vmem:[#allocation8 + $0x680] ss:$16 sps:$4 sm:$0xff]  }
 0x3eb   : > { %4162 = vmatprep.subr.bf16.mxu0 %v8498_v19  ;;  %v8560_v19 = vld [vmem:[#allocation8 + $0x688] ss:$16 sps:$4 sm:$0xff]  }
 0x3ed   : > { %4120 = vmatpush1.bf16.msra.mxu1 %v8493_v23  ;;  %v8563_v23 = vld [vmem:[#allocation8 + $0x660] ss:$16 sps:$4 sm:$0xff]  }
 0x3ee   : > { %4163 = vmatpush1.bf16.msra.mxu0 %v8496_v15  ;;  %7566 = vmatprep.subr.msk.bf16.mxu1 %vm2929_vm6, %v7563_v6  ;;  %v8566_v15 = vld [vmem:[#allocation8 + $0x668] ss:$16 sps:$4 sm:$0xff]   ;;  %v8571_v6 = vld [vmem:[#allocation8 + $0x644] ss:$16 sps:$4 sm:$0xff]  }
 0x3ef   : > { %7568 = vmatprep.subr.msk.bf16.mxu0 %vm2929_vm6, %v7565_v24  ;;  %v4248_v24 = vld [vmem:[#allocation8 + $0x7c0] sm:$0xff] }
 0x3f1   : > { %4128 = vmatpush2.bf16.msra.mxu1 %v4094_v48  ;;  %v8569_v48 = vld [vmem:[#allocation8 + $0x640] ss:$16 sps:$4 sm:$0xff]  }
 0x3f2   : > { %4171 = vmatpush2.bf16.msra.mxu0 %v4100_v13  ;;  %4129 = vmatprep.subr.bf16.mxu1 %v8505_v7  ;;  %v8572_v7 = vld [vmem:[#allocation8 + $0x648] ss:$16 sps:$4 sm:$0xff]   ;;  %v7619_v13 = vcombine.high %v4248_v24, %v4248_v24 }
 0x3f3   : > { %4172 = vmatprep.subr.bf16.mxu0 %v8508_v26  ;;  %v7618_v26 = vcombine.low %v4248_v24, %v4248_v24  ;;  %v8639_v24 = vld [vmem:[#allocation8 + $0x7f0] ss:$16 sps:$4 sm:$0xff]  }
 0x3f5   : > { %4130 = vmatpush2.bf16.msra.mxu1 %v8503_v28  ;;  %v7621_v28 = vcombine.high %v4249_v45, %v4249_v45 }
 0x3f6   : > { %4173 = vmatpush2.bf16.msra.mxu0 %v8506_v31  ;;  %4131 = vmatprep.subr.bf16.mxu1 %v8511_v63  ;;  %v7620_v31 = vcombine.low %v4249_v45, %v4249_v45  ;;  %v4504_v63 = vsel %vm2929_vm6, %v7618_v26, 0  ;;  %v8642_v45 = vld [vmem:[#allocation8 + $0x7f8] ss:$16 sps:$4 sm:$0xff]  }
 0x3f7   : > { %4174 = vmatprep.subr.bf16.mxu0 %v8514_v10  ;;  %v8581_v10 = vld [vmem:[#allocation8 + $0x7a4] ss:$16 sps:$4 sm:$0xff]   ;;  %v4659_v26 = vld [vmem:[#allocation8 + $0x958] sm:$0xff] }
 0x3f9   : > { %4132 = vmatpush2.bf16.msra.mxu1 %v8509_v32  ;;  %v4510_v32 = vsel %vm2929_vm6, %v7620_v31, 0  ;;  %v8648_v31 = vld [vmem:[#allocation8 + $0x7d8] ss:$16 sps:$4 sm:$0xff]  }
 0x3fa   : > { %4175 = vmatpush2.bf16.msra.mxu0 %v8512_v2  ;;  %4133 = vmatprep.subr.bf16.mxu1 %v8517_v34  ;;  %v8584_v2 = vld [vmem:[#allocation8 + $0x7ac] ss:$16 sps:$4 sm:$0xff]   ;;  %v8579_v34 = vld [vmem:[#allocation8 + $0x7a0] ss:$16 sps:$4 sm:$0xff]  }
 0x3fb   : > { %4176 = vmatprep.subr.bf16.mxu0 %v8520_v56  ;;  %v8582_v56 = vld [vmem:[#allocation8 + $0x7a8] ss:$16 sps:$4 sm:$0xff]  }
 0x3fd   : > { %4134 = vmatpush2.bf16.msra.mxu1 %v8515_v27  ;;  %v8587_v27 = vld [vmem:[#allocation8 + $0x784] ss:$16 sps:$4 sm:$0xff]  }
 0x3fe   : > { %4177 = vmatpush2.bf16.msra.mxu0 %v8518_v29  ;;  %4135 = vmatprep.subr.bf16.mxu1 %v8523_v51  ;;  %v8590_v29 = vld [vmem:[#allocation8 + $0x78c] ss:$16 sps:$4 sm:$0xff]   ;;  %v8585_v51 = vld [vmem:[#allocation8 + $0x780] ss:$16 sps:$4 sm:$0xff]  }
 0x3ff   : > { %4178 = vmatprep.subr.bf16.mxu0 %v8526_v41  ;;  %v8588_v41 = vld [vmem:[#allocation8 + $0x788] ss:$16 sps:$4 sm:$0xff]  }
 0x401   : > { %4136 = vmatpush2.bf16.msra.mxu1 %v8521_v54  ;;  %v8593_v54 = vld [vmem:[#allocation8 + $0x764] ss:$16 sps:$4 sm:$0xff]  }
 0x402   : > { %4179 = vmatpush2.bf16.msra.mxu0 %v8524_v44  ;;  %4515 = vmatprep.subr.bf16.mxu1 %v8529_v4  ;;  %v8596_v44 = vld [vmem:[#allocation8 + $0x76c] ss:$16 sps:$4 sm:$0xff]   ;;  %v8591_v4 = vld [vmem:[#allocation8 + $0x760] ss:$16 sps:$4 sm:$0xff]  }
 0x403   : > { %4558 = vmatprep.subr.bf16.mxu0 %v8532_v62  ;;  %v8594_v62 = vld [vmem:[#allocation8 + $0x768] ss:$16 sps:$4 sm:$0xff]  }
 0x404   : > { %4138 = vmatmul.mubr.bf16.vlgmr.msra.gmra.mxu1 %v10206_v61 }
 0x405   : > { %4181 = vmatmul.mubr.bf16.vlgmr.msra.gmra.mxu0 %v10206_v61  ;;  %4516 = vmatpush1.bf16.msra.mxu1 %v8527_v14  ;;  %v8547_v61 = vld [vmem:[#allocation8 + $0x6c4] ss:$16 sps:$4 sm:$0xff]  }
 0x406   : > { %7623 = vmatprep.mubr.msk.bf16.mxu1 %vm2925_vm7, %v10224_v57  ;;  %4559 = vmatpush1.bf16.msra.mxu0 %v8530_v46  ;;  %v8599_v14 = vld [vmem:[#allocation8 + $0x744] ss:$16 sps:$4 sm:$0xff]   ;;  %v8602_v46 = vld [vmem:[#allocation8 + $0x74c] ss:$16 sps:$4 sm:$0xff]  }
 0x407   : > { %7625 = vmatprep.mubr.msk.bf16.mxu0 %vm2925_vm7, %v10224_v57  ;;  %4517 = vmatprep.subr.bf16.mxu1 %v8535_v36  ;;  %v8551_v57 = vld [vmem:[#allocation8 + $0x6a0] ss:$16 sps:$4 sm:$0xff]  }
 0x408   : > { %4560 = vmatprep.subr.bf16.mxu0 %v8538_v16  ;;  %v8597_v36 = vld [vmem:[#allocation8 + $0x740] ss:$16 sps:$4 sm:$0xff]   ;;  %v8600_v16 = vld [vmem:[#allocation8 + $0x748] ss:$16 sps:$4 sm:$0xff]  }
 0x409   : > { %4518 = vmatpush1.bf16.msra.mxu1 %v8533_v25  ;;  %v8605_v25 = vld [vmem:[#allocation8 + $0x8b4] ss:$16 sps:$4 sm:$0xff]  }
 0x40a   : > { %4561 = vmatpush1.bf16.msra.mxu0 %v8536_v0  ;;  %4519 = vmatprep.subr.bf16.mxu1 %v8541_v55  ;;  %v8608_v0 = vld [vmem:[#allocation8 + $0x8bc] ss:$16 sps:$4 sm:$0xff]   ;;  %v8603_v55 = vld [vmem:[#allocation8 + $0x8b0] ss:$16 sps:$4 sm:$0xff]  }
 0x40b   : > { %4562 = vmatprep.subr.bf16.mxu0 %v8544_v35  ;;  %v8606_v35 = vld [vmem:[#allocation8 + $0x8b8] ss:$16 sps:$4 sm:$0xff]  }
 0x40d   : > { %4520 = vmatpush1.bf16.msra.mxu1 %v8539_v50  ;;  %v8611_v50 = vld [vmem:[#allocation8 + $0x894] ss:$16 sps:$4 sm:$0xff]  }
 0x40e   : > { %4563 = vmatpush1.bf16.msra.mxu0 %v8542_v58  ;;  %4521 = vmatprep.subr.bf16.mxu1 %v8547_v61  ;;  %v8614_v58 = vld [vmem:[#allocation8 + $0x89c] ss:$16 sps:$4 sm:$0xff]   ;;  %v8609_v61 = vld [vmem:[#allocation8 + $0x890] ss:$16 sps:$4 sm:$0xff]  }
 0x40f   : > { %4564 = vmatprep.subr.bf16.mxu0 %v8550_v1  ;;  %v8612_v1 = vld [vmem:[#allocation8 + $0x898] ss:$16 sps:$4 sm:$0xff]  }
 0x411   : > { %4522 = vmatpush1.bf16.msra.mxu1 %v8545_v42  ;;  %v8617_v42 = vld [vmem:[#allocation8 + $0x874] ss:$16 sps:$4 sm:$0xff]  }
 0x412   : > { %4565 = vmatpush1.bf16.msra.mxu0 %v8548_v38  ;;  %4523 = vmatprep.subr.bf16.mxu1 %v8553_v5  ;;  %v8620_v38 = vld [vmem:[#allocation8 + $0x87c] ss:$16 sps:$4 sm:$0xff]   ;;  %v8615_v5 = vld [vmem:[#allocation8 + $0x870] ss:$16 sps:$4 sm:$0xff]  }
 0x413   : > { %4566 = vmatprep.subr.bf16.mxu0 %v8556_v9  ;;  %v8618_v9 = vld [vmem:[#allocation8 + $0x878] ss:$16 sps:$4 sm:$0xff]  }
 0x415   : > { %4524 = vmatpush1.bf16.msra.mxu1 %v8551_v57  ;;  %v8626_v57 = vld [vmem:[#allocation8 + $0x85c] ss:$16 sps:$4 sm:$0xff]  }
 0x416   : > { %4567 = vmatpush1.bf16.msra.mxu0 %v8554_v43  ;;  %4525 = vmatprep.subr.bf16.mxu1 %v8559_v21  ;;  %v8621_v43 = vld [vmem:[#allocation8 + $0x850] ss:$16 sps:$4 sm:$0xff]   ;;  %v8624_v21 = vld [vmem:[#allocation8 + $0x858] ss:$16 sps:$4 sm:$0xff]  }
 0x417   : > { %4568 = vmatprep.subr.bf16.mxu0 %v8562_v11  ;;  %v8629_v11 = vld [vmem:[#allocation8 + $0x834] ss:$16 sps:$4 sm:$0xff]  }
 0x419   : > { %4526 = vmatpush1.bf16.msra.mxu1 %v8557_v33  ;;  %v8632_v33 = vld [vmem:[#allocation8 + $0x83c] ss:$16 sps:$4 sm:$0xff]  }
 0x41a   : > { %4569 = vmatpush1.bf16.msra.mxu0 %v8560_v19  ;;  %4527 = vmatprep.subr.bf16.mxu1 %v8565_v12  ;;  %v8630_v19 = vld [vmem:[#allocation8 + $0x838] ss:$16 sps:$4 sm:$0xff]   ;;  %v8635_v12 = vld [vmem:[#allocation8 + $0x814] ss:$16 sps:$4 sm:$0xff]  }
 0x41b   : > { %4570 = vmatprep.subr.bf16.mxu0 %v8568_v60  ;;  %v8638_v60 = vld [vmem:[#allocation8 + $0x81c] ss:$16 sps:$4 sm:$0xff]  }
 0x41d   : > { %4528 = vmatpush1.bf16.msra.mxu1 %v8563_v23  ;;  %v8633_v23 = vld [vmem:[#allocation8 + $0x810] ss:$16 sps:$4 sm:$0xff]  }
 0x41e   : > { %4571 = vmatpush1.bf16.msra.mxu0 %v8566_v15  ;;  %4529 = vmatprep.subr.bf16.mxu1 %v8571_v6  ;;  %v8636_v15 = vld [vmem:[#allocation8 + $0x818] ss:$16 sps:$4 sm:$0xff]   ;;  %v8641_v6 = vld [vmem:[#allocation8 + $0x7f4] ss:$16 sps:$4 sm:$0xff]  }
 0x41f   : > { %4572 = vmatprep.subr.bf16.mxu0 %v8574_v30  ;;  %v8644_v30 = vld [vmem:[#allocation8 + $0x7fc] ss:$16 sps:$4 sm:$0xff]  }
 0x421   : > { %4530 = vmatpush1.bf16.msra.mxu1 %v8569_v48  ;;  %v8647_v48 = vld [vmem:[#allocation8 + $0x7d4] ss:$16 sps:$4 sm:$0xff]  }
 0x422   : > { %4573 = vmatpush1.bf16.msra.mxu0 %v8572_v7  ;;  %7622 = vmatprep.subr.msk.bf16.mxu1 %vm2929_vm6, %v7619_v13  ;;  %v8650_v7 = vld [vmem:[#allocation8 + $0x7dc] ss:$16 sps:$4 sm:$0xff]   ;;  %v4658_v13 = vld [vmem:[#allocation8 + $0x950] sm:$0xff] }
 0x423   : > { %7624 = vmatprep.subr.msk.bf16.mxu0 %vm2929_vm6, %v7621_v28  ;;  %v8645_v28 = vld [vmem:[#allocation8 + $0x7d0] ss:$16 sps:$4 sm:$0xff]  }
 0x425   : > { %4538 = vmatpush2.bf16.msra.mxu1 %v4504_v63  ;;  %v7675_v63 = vcombine.high %v4658_v13, %v4658_v13 }
 0x426   : > { %4581 = vmatpush2.bf16.msra.mxu0 %v4510_v32  ;;  %4539 = vmatprep.subr.bf16.mxu1 %v8581_v10  ;;  %v7674_v10 = vcombine.low %v4658_v13, %v4658_v13  ;;  %v7677_v32 = vcombine.high %v4659_v26, %v4659_v26  ;;  %v8723_v13 = vld [vmem:[#allocation8 + $0x964] ss:$16 sps:$4 sm:$0xff]  }
 0x427   : > { %4582 = vmatprep.subr.bf16.mxu0 %v8584_v2  ;;  %v7676_v2 = vcombine.low %v4659_v26, %v4659_v26  ;;  %v8726_v26 = vld [vmem:[#allocation8 + $0x96c] ss:$16 sps:$4 sm:$0xff]  }
 0x429   : > { %4540 = vmatpush2.bf16.msra.mxu1 %v8579_v34  ;;  %v4914_v34 = vsel %vm2929_vm6, %v7674_v10, 0  ;;  %v8724_v10 = vld [vmem:[#allocation8 + $0x968] ss:$16 sps:$4 sm:$0xff]  }
 0x42a   : > { %4583 = vmatpush2.bf16.msra.mxu0 %v8582_v56  ;;  %4541 = vmatprep.subr.bf16.mxu1 %v8587_v27  ;;  %v8657_v56 = vld [vmem:[#allocation8 + $0x934] ss:$16 sps:$4 sm:$0xff]   ;;  %v4920_v27 = vsel %vm2929_vm6, %v7676_v2, 0 }
 0x42b   : > { %4584 = vmatprep.subr.bf16.mxu0 %v8590_v29  ;;  %v8660_v29 = vld [vmem:[#allocation8 + $0x93c] ss:$16 sps:$4 sm:$0xff]  }
 0x42d   : > { %4542 = vmatpush2.bf16.msra.mxu1 %v8585_v51  ;;  %v8655_v51 = vld [vmem:[#allocation8 + $0x930] ss:$16 sps:$4 sm:$0xff]  }
 0x42e   : > { %4585 = vmatpush2.bf16.msra.mxu0 %v8588_v41  ;;  %4543 = vmatprep.subr.bf16.mxu1 %v8593_v54  ;;  %v8658_v41 = vld [vmem:[#allocation8 + $0x938] ss:$16 sps:$4 sm:$0xff]   ;;  %v8663_v54 = vld [vmem:[#allocation8 + $0x914] ss:$16 sps:$4 sm:$0xff]  }
 0x42f   : > { %4586 = vmatprep.subr.bf16.mxu0 %v8596_v44  ;;  %v8666_v44 = vld [vmem:[#allocation8 + $0x91c] ss:$16 sps:$4 sm:$0xff]  }
 0x431   : > { %4544 = vmatpush2.bf16.msra.mxu1 %v8591_v4  ;;  %v8661_v4 = vld [vmem:[#allocation8 + $0x910] ss:$16 sps:$4 sm:$0xff]  }
 0x432   : > { %4587 = vmatpush2.bf16.msra.mxu0 %v8594_v62  ;;  %4545 = vmatprep.subr.bf16.mxu1 %v8599_v14  ;;  %v8664_v62 = vld [vmem:[#allocation8 + $0x918] ss:$16 sps:$4 sm:$0xff]   ;;  %v8669_v14 = vld [vmem:[#allocation8 + $0x8f4] ss:$16 sps:$4 sm:$0xff]  }
 0x433   : > { %4588 = vmatprep.subr.bf16.mxu0 %v8602_v46  ;;  %v8672_v46 = vld [vmem:[#allocation8 + $0x8fc] ss:$16 sps:$4 sm:$0xff]  }
 0x435   : > { %4546 = vmatpush2.bf16.msra.mxu1 %v8597_v36  ;;  %v8667_v36 = vld [vmem:[#allocation8 + $0x8f0] ss:$16 sps:$4 sm:$0xff]  }
 0x436   : > { %4589 = vmatpush2.bf16.msra.mxu0 %v8600_v16  ;;  %4925 = vmatprep.subr.bf16.mxu1 %v8605_v25  ;;  %v8670_v16 = vld [vmem:[#allocation8 + $0x8f8] ss:$16 sps:$4 sm:$0xff]   ;;  %v8675_v25 = vld [vmem:[#allocation8 + $0x8d4] ss:$16 sps:$4 sm:$0xff]  }
 0x437   : > { %4968 = vmatprep.subr.bf16.mxu0 %v8608_v0  ;;  %v8678_v0 = vld [vmem:[#allocation8 + $0x8dc] ss:$16 sps:$4 sm:$0xff]  }
 0x438   : > { %4548 = vmatmul.mubr.bf16.vlgmr.msra.gmra.mxu1 %v10218_v37 }
 0x439   : > { %4591 = vmatmul.mubr.bf16.vlgmr.msra.gmra.mxu0 %v10218_v37  ;;  %4926 = vmatpush1.bf16.msra.mxu1 %v8603_v55  ;;  %v8623_v37 = vld [vmem:[#allocation8 + $0x854] ss:$16 sps:$4 sm:$0xff]   ;;  %v8673_v55 = vld [vmem:[#allocation8 + $0x8d0] ss:$16 sps:$4 sm:$0xff]  }
 0x43a   : > { %7679 = vmatprep.mubr.msk.bf16.mxu1 %vm2925_vm7, %v10236_v49  ;;  %4969 = vmatpush1.bf16.msra.mxu0 %v8606_v35  ;;  %v8676_v35 = vld [vmem:[#allocation8 + $0x8d8] ss:$16 sps:$4 sm:$0xff]  }
 0x43b   : > { %7681 = vmatprep.mubr.msk.bf16.mxu0 %vm2925_vm7, %v10236_v49  ;;  %4927 = vmatprep.subr.bf16.mxu1 %v8611_v50  ;;  %v8627_v49 = vld [vmem:[#allocation8 + $0x830] ss:$16 sps:$4 sm:$0xff]   ;;  %v8681_v50 = vld [vmem:[#allocation8 + $0xa44] ss:$16 sps:$4 sm:$0xff]  }
 0x43c   : > { %4970 = vmatprep.subr.bf16.mxu0 %v8614_v58  ;;  %v8684_v58 = vld [vmem:[#allocation8 + $0xa4c] ss:$16 sps:$4 sm:$0xff]  }
 0x43d   : > { %4928 = vmatpush1.bf16.msra.mxu1 %v8609_v61  ;;  %v8679_v61 = vld [vmem:[#allocation8 + $0xa40] ss:$16 sps:$4 sm:$0xff]  }
 0x43e   : > { %4971 = vmatpush1.bf16.msra.mxu0 %v8612_v1  ;;  %4929 = vmatprep.subr.bf16.mxu1 %v8617_v42  ;;  %v8682_v1 = vld [vmem:[#allocation8 + $0xa48] ss:$16 sps:$4 sm:$0xff]   ;;  %v8687_v42 = vld [vmem:[#allocation8 + $0xa24] ss:$16 sps:$4 sm:$0xff]  }
 0x43f   : > { %4972 = vmatprep.subr.bf16.mxu0 %v8620_v38  ;;  %v8690_v38 = vld [vmem:[#allocation8 + $0xa2c] ss:$16 sps:$4 sm:$0xff]  }
 0x441   : > { %4930 = vmatpush1.bf16.msra.mxu1 %v8615_v5  ;;  %v8685_v5 = vld [vmem:[#allocation8 + $0xa20] ss:$16 sps:$4 sm:$0xff]  }
 0x442   : > { %4973 = vmatpush1.bf16.msra.mxu0 %v8618_v9  ;;  %4931 = vmatprep.subr.bf16.mxu1 %v8623_v37  ;;  %v8688_v9 = vld [vmem:[#allocation8 + $0xa28] ss:$16 sps:$4 sm:$0xff]   ;;  %v8693_v37 = vld [vmem:[#allocation8 + $0xa04] ss:$16 sps:$4 sm:$0xff]  }
 0x443   : > { %4974 = vmatprep.subr.bf16.mxu0 %v8626_v57  ;;  %v8696_v57 = vld [vmem:[#allocation8 + $0xa0c] ss:$16 sps:$4 sm:$0xff]  }
 0x445   : > { %4932 = vmatpush1.bf16.msra.mxu1 %v8621_v43  ;;  %v8691_v43 = vld [vmem:[#allocation8 + $0xa00] ss:$16 sps:$4 sm:$0xff]  }
 0x446   : > { %4975 = vmatpush1.bf16.msra.mxu0 %v8624_v21  ;;  %4933 = vmatprep.subr.bf16.mxu1 %v8629_v11  ;;  %v8694_v21 = vld [vmem:[#allocation8 + $0xa08] ss:$16 sps:$4 sm:$0xff]   ;;  %v8702_v11 = vld [vmem:[#allocation8 + $0x9ec] ss:$16 sps:$4 sm:$0xff]  }
 0x447   : > { %4976 = vmatprep.subr.bf16.mxu0 %v8632_v33  ;;  %v8697_v33 = vld [vmem:[#allocation8 + $0x9e0] ss:$16 sps:$4 sm:$0xff]  }
 0x449   : > { %4934 = vmatpush1.bf16.msra.mxu1 %v8627_v49  ;;  %v8700_v49 = vld [vmem:[#allocation8 + $0x9e8] ss:$16 sps:$4 sm:$0xff]  }
 0x44a   : > { %4977 = vmatpush1.bf16.msra.mxu0 %v8630_v19  ;;  %4935 = vmatprep.subr.bf16.mxu1 %v8635_v12  ;;  %v8705_v19 = vld [vmem:[#allocation8 + $0x9c4] ss:$16 sps:$4 sm:$0xff]   ;;  %v8708_v12 = vld [vmem:[#allocation8 + $0x9cc] ss:$16 sps:$4 sm:$0xff]  }
 0x44b   : > { %4978 = vmatprep.subr.bf16.mxu0 %v8638_v60  ;;  %v8706_v60 = vld [vmem:[#allocation8 + $0x9c8] ss:$16 sps:$4 sm:$0xff]  }
 0x44d   : > { %4936 = vmatpush1.bf16.msra.mxu1 %v8633_v23  ;;  %v8711_v23 = vld [vmem:[#allocation8 + $0x9a4] ss:$16 sps:$4 sm:$0xff]  }
 0x44e   : > { %4979 = vmatpush1.bf16.msra.mxu0 %v8636_v15  ;;  %4937 = vmatprep.subr.bf16.mxu1 %v8641_v6  ;;  %v8714_v15 = vld [vmem:[#allocation8 + $0x9ac] ss:$16 sps:$4 sm:$0xff]   ;;  %v8709_v6 = vld [vmem:[#allocation8 + $0x9a0] ss:$16 sps:$4 sm:$0xff]  }
 0x44f   : > { %4980 = vmatprep.subr.bf16.mxu0 %v8644_v30  ;;  %v8712_v30 = vld [vmem:[#allocation8 + $0x9a8] ss:$16 sps:$4 sm:$0xff]  }
 0x451   : > { %4938 = vmatpush1.bf16.msra.mxu1 %v8639_v24  ;;  %v8717_v24 = vld [vmem:[#allocation8 + $0x984] ss:$16 sps:$4 sm:$0xff]  }
 0x452   : > { %4981 = vmatpush1.bf16.msra.mxu0 %v8642_v45  ;;  %4939 = vmatprep.subr.bf16.mxu1 %v8647_v48  ;;  %v8720_v45 = vld [vmem:[#allocation8 + $0x98c] ss:$16 sps:$4 sm:$0xff]   ;;  %v8715_v48 = vld [vmem:[#allocation8 + $0x980] ss:$16 sps:$4 sm:$0xff]  }
 0x453   : > { %4982 = vmatprep.subr.bf16.mxu0 %v8650_v7  ;;  %v8718_v7 = vld [vmem:[#allocation8 + $0x988] ss:$16 sps:$4 sm:$0xff]  }
 0x455   : > { %4940 = vmatpush1.bf16.msra.mxu1 %v8645_v28  ;;  %v5068_v28 = vld [vmem:[#allocation8 + $0xae0] sm:$0xff] }
 0x456   : > { %4983 = vmatpush1.bf16.msra.mxu0 %v8648_v31  ;;  %7678 = vmatprep.subr.msk.bf16.mxu1 %vm2929_vm6, %v7675_v63  ;;  %v5069_v31 = vld [vmem:[#allocation8 + $0xae8] sm:$0xff]  ;;  %v8721_v63 = vld [vmem:[#allocation8 + $0x960] ss:$16 sps:$4 sm:$0xff]   ;;  %v7730_v2 = vcombine.low %v5068_v28, %v5068_v28 }
 0x457   : > { %7680 = vmatprep.subr.msk.bf16.mxu0 %vm2929_vm6, %v7677_v32  ;;  %v7731_v32 = vcombine.high %v5068_v28, %v5068_v28  ;;  %v5478_v28 = vld [vmem:[#allocation8 + $0xc70] sm:$0xff] }
 0x459   : > { %4948 = vmatpush2.bf16.msra.mxu1 %v4914_v34  ;;  %v7733_v34 = vcombine.high %v5069_v31, %v5069_v31 }
 0x45a   : > { %4991 = vmatpush2.bf16.msra.mxu0 %v4920_v27  ;;  %4949 = vmatprep.subr.bf16.mxu1 %v8657_v56  ;;  %v7732_v56 = vcombine.low %v5069_v31, %v5069_v31  ;;  %v5324_v27 = vsel %vm2929_vm6, %v7730_v2, 0  ;;  %v5479_v31 = vld [vmem:[#allocation8 + $0xc78] sm:$0xff]  ;;  %v7786_v2 = vcombine.low %v5478_v28, %v5478_v28 }
 0x45b   : > { %4992 = vmatprep.subr.bf16.mxu0 %v8660_v29  ;;  %v8733_v29 = vld [vmem:[#allocation8 + $0xac4] ss:$16 sps:$4 sm:$0xff]  }
 0x45d   : > { %4950 = vmatpush2.bf16.msra.mxu1 %v8655_v51  ;;  %v5330_v51 = vsel %vm2929_vm6, %v7732_v56, 0  ;;  %v7788_v56 = vcombine.low %v5479_v31, %v5479_v31 }
 0x45e   : > { %4993 = vmatpush2.bf16.msra.mxu0 %v8658_v41  ;;  %4951 = vmatprep.subr.bf16.mxu1 %v8663_v54  ;;  %v8736_v41 = vld [vmem:[#allocation8 + $0xacc] ss:$16 sps:$4 sm:$0xff]   ;;  %v8731_v54 = vld [vmem:[#allocation8 + $0xac0] ss:$16 sps:$4 sm:$0xff]  }
 0x45f   : > { %4994 = vmatprep.subr.bf16.mxu0 %v8666_v44  ;;  %v8734_v44 = vld [vmem:[#allocation8 + $0xac8] ss:$16 sps:$4 sm:$0xff]  }
 0x461   : > { %4952 = vmatpush2.bf16.msra.mxu1 %v8661_v4  ;;  %v8739_v4 = vld [vmem:[#allocation8 + $0xaa4] ss:$16 sps:$4 sm:$0xff]  }
 0x462   : > { %4995 = vmatpush2.bf16.msra.mxu0 %v8664_v62  ;;  %4953 = vmatprep.subr.bf16.mxu1 %v8669_v14  ;;  %v8742_v62 = vld [vmem:[#allocation8 + $0xaac] ss:$16 sps:$4 sm:$0xff]   ;;  %v8737_v14 = vld [vmem:[#allocation8 + $0xaa0] ss:$16 sps:$4 sm:$0xff]  }
 0x463   : > { %4996 = vmatprep.subr.bf16.mxu0 %v8672_v46  ;;  %v8740_v46 = vld [vmem:[#allocation8 + $0xaa8] ss:$16 sps:$4 sm:$0xff]  }
 0x465   : > { %4954 = vmatpush2.bf16.msra.mxu1 %v8667_v36  ;;  %v8745_v36 = vld [vmem:[#allocation8 + $0xa84] ss:$16 sps:$4 sm:$0xff]  }
 0x466   : > { %4997 = vmatpush2.bf16.msra.mxu0 %v8670_v16  ;;  %4955 = vmatprep.subr.bf16.mxu1 %v8675_v25  ;;  %v8748_v16 = vld [vmem:[#allocation8 + $0xa8c] ss:$16 sps:$4 sm:$0xff]   ;;  %v8743_v25 = vld [vmem:[#allocation8 + $0xa80] ss:$16 sps:$4 sm:$0xff]  }
 0x467   : > { %4998 = vmatprep.subr.bf16.mxu0 %v8678_v0  ;;  %v8746_v0 = vld [vmem:[#allocation8 + $0xa88] ss:$16 sps:$4 sm:$0xff]  }
 0x469   : > { %4956 = vmatpush2.bf16.msra.mxu1 %v8673_v55  ;;  %v8751_v55 = vld [vmem:[#allocation8 + $0xa64] ss:$16 sps:$4 sm:$0xff]  }
 0x46a   : > { %4999 = vmatpush2.bf16.msra.mxu0 %v8676_v35  ;;  %5335 = vmatprep.subr.bf16.mxu1 %v8681_v50  ;;  %v8754_v35 = vld [vmem:[#allocation8 + $0xa6c] ss:$16 sps:$4 sm:$0xff]   ;;  %v8749_v50 = vld [vmem:[#allocation8 + $0xa60] ss:$16 sps:$4 sm:$0xff]  }
 0x46b   : > { %5378 = vmatprep.subr.bf16.mxu0 %v8684_v58  ;;  %v8752_v58 = vld [vmem:[#allocation8 + $0xa68] ss:$16 sps:$4 sm:$0xff]  }
 0x46c   : > { %4958 = vmatmul.mubr.bf16.vlgmr.msra.gmra.mxu1 %v10230_v52 }
 0x46d   : > { %5001 = vmatmul.mubr.bf16.vlgmr.msra.gmra.mxu0 %v10230_v52  ;;  %5336 = vmatpush1.bf16.msra.mxu1 %v8679_v61  ;;  %v8699_v52 = vld [vmem:[#allocation8 + $0x9e4] ss:$16 sps:$4 sm:$0xff]  }
 0x46e   : > { %7735 = vmatprep.mubr.msk.bf16.mxu1 %vm2925_vm7, %v10252_v39  ;;  %5379 = vmatpush1.bf16.msra.mxu0 %v8682_v1  ;;  %v8757_v61 = vld [vmem:[#allocation8 + $0xbd4] ss:$16 sps:$4 sm:$0xff]   ;;  %v8760_v1 = vld [vmem:[#allocation8 + $0xbdc] ss:$16 sps:$4 sm:$0xff]  }
 0x46f   : > { %7737 = vmatprep.mubr.msk.bf16.mxu0 %vm2925_vm7, %v10252_v39  ;;  %5337 = vmatprep.subr.bf16.mxu1 %v8687_v42  ;;  %v8703_v39 = vld [vmem:[#allocation8 + $0x9c0] ss:$16 sps:$4 sm:$0xff]  }
 0x470   : > { %5380 = vmatprep.subr.bf16.mxu0 %v8690_v38  ;;  %v8755_v42 = vld [vmem:[#allocation8 + $0xbd0] ss:$16 sps:$4 sm:$0xff]   ;;  %v8758_v38 = vld [vmem:[#allocation8 + $0xbd8] ss:$16 sps:$4 sm:$0xff]  }
 0x471   : > { %5338 = vmatpush1.bf16.msra.mxu1 %v8685_v5  ;;  %v8763_v5 = vld [vmem:[#allocation8 + $0xbb4] ss:$16 sps:$4 sm:$0xff]  }
 0x472   : > { %5381 = vmatpush1.bf16.msra.mxu0 %v8688_v9  ;;  %5339 = vmatprep.subr.bf16.mxu1 %v8693_v37  ;;  %v8766_v9 = vld [vmem:[#allocation8 + $0xbbc] ss:$16 sps:$4 sm:$0xff]   ;;  %v8761_v37 = vld [vmem:[#allocation8 + $0xbb0] ss:$16 sps:$4 sm:$0xff]  }
 0x473   : > { %5382 = vmatprep.subr.bf16.mxu0 %v8696_v57  ;;  %v8764_v57 = vld [vmem:[#allocation8 + $0xbb8] ss:$16 sps:$4 sm:$0xff]  }
 0x475   : > { %5340 = vmatpush1.bf16.msra.mxu1 %v8691_v43  ;;  %v8769_v43 = vld [vmem:[#allocation8 + $0xb94] ss:$16 sps:$4 sm:$0xff]  }
 0x476   : > { %5383 = vmatpush1.bf16.msra.mxu0 %v8694_v21  ;;  %5341 = vmatprep.subr.bf16.mxu1 %v8699_v52  ;;  %v8772_v21 = vld [vmem:[#allocation8 + $0xb9c] ss:$16 sps:$4 sm:$0xff]   ;;  %v8767_v52 = vld [vmem:[#allocation8 + $0xb90] ss:$16 sps:$4 sm:$0xff]  }
 0x477   : > { %5384 = vmatprep.subr.bf16.mxu0 %v8702_v11  ;;  %v8770_v11 = vld [vmem:[#allocation8 + $0xb98] ss:$16 sps:$4 sm:$0xff]  }
 0x479   : > { %5342 = vmatpush1.bf16.msra.mxu1 %v8697_v33  ;;  %v8778_v33 = vld [vmem:[#allocation8 + $0xb7c] ss:$16 sps:$4 sm:$0xff]  }
 0x47a   : > { %5385 = vmatpush1.bf16.msra.mxu0 %v8700_v49  ;;  %5343 = vmatprep.subr.bf16.mxu1 %v8705_v19  ;;  %v8773_v49 = vld [vmem:[#allocation8 + $0xb70] ss:$16 sps:$4 sm:$0xff]   ;;  %v8776_v19 = vld [vmem:[#allocation8 + $0xb78] ss:$16 sps:$4 sm:$0xff]  }
 0x47b   : > { %5386 = vmatprep.subr.bf16.mxu0 %v8708_v12  ;;  %v8781_v12 = vld [vmem:[#allocation8 + $0xb54] ss:$16 sps:$4 sm:$0xff]  }
 0x47d   : > { %5344 = vmatpush1.bf16.msra.mxu1 %v8703_v39  ;;  %v8784_v39 = vld [vmem:[#allocation8 + $0xb5c] ss:$16 sps:$4 sm:$0xff]  }
 0x47e   : > { %5387 = vmatpush1.bf16.msra.mxu0 %v8706_v60  ;;  %5345 = vmatprep.subr.bf16.mxu1 %v8711_v23  ;;  %v8782_v60 = vld [vmem:[#allocation8 + $0xb58] ss:$16 sps:$4 sm:$0xff]   ;;  %v8787_v23 = vld [vmem:[#allocation8 + $0xb34] ss:$16 sps:$4 sm:$0xff]  }
 0x47f   : > { %5388 = vmatprep.subr.bf16.mxu0 %v8714_v15  ;;  %v8790_v15 = vld [vmem:[#allocation8 + $0xb3c] ss:$16 sps:$4 sm:$0xff]  }
 0x481   : > { %5346 = vmatpush1.bf16.msra.mxu1 %v8709_v6  ;;  %v8785_v6 = vld [vmem:[#allocation8 + $0xb30] ss:$16 sps:$4 sm:$0xff]  }
 0x482   : > { %5389 = vmatpush1.bf16.msra.mxu0 %v8712_v30  ;;  %5347 = vmatprep.subr.bf16.mxu1 %v8717_v24  ;;  %v8788_v30 = vld [vmem:[#allocation8 + $0xb38] ss:$16 sps:$4 sm:$0xff]   ;;  %v8793_v24 = vld [vmem:[#allocation8 + $0xb14] ss:$16 sps:$4 sm:$0xff]  }
 0x483   : > { %5390 = vmatprep.subr.bf16.mxu0 %v8720_v45  ;;  %v8796_v45 = vld [vmem:[#allocation8 + $0xb1c] ss:$16 sps:$4 sm:$0xff]  }
 0x485   : > { %5348 = vmatpush1.bf16.msra.mxu1 %v8715_v48  ;;  %v8791_v48 = vld [vmem:[#allocation8 + $0xb10] ss:$16 sps:$4 sm:$0xff]  }
 0x486   : > { %5391 = vmatpush1.bf16.msra.mxu0 %v8718_v7  ;;  %5349 = vmatprep.subr.bf16.mxu1 %v8723_v13  ;;  %v8794_v7 = vld [vmem:[#allocation8 + $0xb18] ss:$16 sps:$4 sm:$0xff]   ;;  %v8799_v13 = vld [vmem:[#allocation8 + $0xaf4] ss:$16 sps:$4 sm:$0xff]  }
 0x487   : > { %5392 = vmatprep.subr.bf16.mxu0 %v8726_v26  ;;  %v8802_v26 = vld [vmem:[#allocation8 + $0xafc] ss:$16 sps:$4 sm:$0xff]  }
 0x489   : > { %5350 = vmatpush1.bf16.msra.mxu1 %v8721_v63  ;;  %v8797_v63 = vld [vmem:[#allocation8 + $0xaf0] ss:$16 sps:$4 sm:$0xff]  }
 0x48a   : > { %5393 = vmatpush1.bf16.msra.mxu0 %v8724_v10  ;;  %7734 = vmatprep.subr.msk.bf16.mxu1 %vm2929_vm6, %v7731_v32  ;;  %v8800_v10 = vld [vmem:[#allocation8 + $0xaf8] ss:$16 sps:$4 sm:$0xff]   ;;  %v7787_v32 = vcombine.high %v5478_v28, %v5478_v28  ;;  %v8873_v28 = vld [vmem:[#allocation8 + $0xc80] ss:$16 sps:$4 sm:$0xff]  }
 0x48b   : > { %7736 = vmatprep.subr.msk.bf16.mxu0 %vm2929_vm6, %v7733_v34  ;;  %v7789_v34 = vcombine.high %v5479_v31, %v5479_v31  ;;  %v8876_v31 = vld [vmem:[#allocation8 + $0xc88] ss:$16 sps:$4 sm:$0xff]  }
 0x48d   : > { %5358 = vmatpush2.bf16.msra.mxu1 %v5324_v27  ;;  %v5734_v27 = vsel %vm2929_vm6, %v7786_v2, 0 }
 0x48e   : > { %5401 = vmatpush2.bf16.msra.mxu0 %v5330_v51  ;;  %5359 = vmatprep.subr.bf16.mxu1 %v8733_v29  ;;  %v8809_v29 = vld [vmem:[#allocation8 + $0xc54] ss:$16 sps:$4 sm:$0xff]   ;;  %v5740_v51 = vsel %vm2929_vm6, %v7788_v56, 0 }
 0x48f   : > { %5402 = vmatprep.subr.bf16.mxu0 %v8736_v41  ;;  %v8812_v41 = vld [vmem:[#allocation8 + $0xc5c] ss:$16 sps:$4 sm:$0xff]   ;;  %v8885_v56 = vld [vmem:[#allocation8 + $0xde4] ss:$16 sps:$4 sm:$0xff]  }
 0x491   : > { %5360 = vmatpush2.bf16.msra.mxu1 %v8731_v54  ;;  %v8807_v54 = vld [vmem:[#allocation8 + $0xc50] ss:$16 sps:$4 sm:$0xff]  }
 0x492   : > { %5403 = vmatpush2.bf16.msra.mxu0 %v8734_v44  ;;  %5361 = vmatprep.subr.bf16.mxu1 %v8739_v4  ;;  %v8810_v44 = vld [vmem:[#allocation8 + $0xc58] ss:$16 sps:$4 sm:$0xff]   ;;  %v8815_v4 = vld [vmem:[#allocation8 + $0xc34] ss:$16 sps:$4 sm:$0xff]  }
 0x493   : > { %5404 = vmatprep.subr.bf16.mxu0 %v8742_v62  ;;  %v8818_v62 = vld [vmem:[#allocation8 + $0xc3c] ss:$16 sps:$4 sm:$0xff]  }
 0x495   : > { %5362 = vmatpush2.bf16.msra.mxu1 %v8737_v14  ;;  %v8813_v14 = vld [vmem:[#allocation8 + $0xc30] ss:$16 sps:$4 sm:$0xff]  }
 0x496   : > { %5405 = vmatpush2.bf16.msra.mxu0 %v8740_v46  ;;  %5363 = vmatprep.subr.bf16.mxu1 %v8745_v36  ;;  %v8816_v46 = vld [vmem:[#allocation8 + $0xc38] ss:$16 sps:$4 sm:$0xff]   ;;  %v8821_v36 = vld [vmem:[#allocation8 + $0xc14] ss:$16 sps:$4 sm:$0xff]  }
 0x497   : > { %5406 = vmatprep.subr.bf16.mxu0 %v8748_v16  ;;  %v8824_v16 = vld [vmem:[#allocation8 + $0xc1c] ss:$16 sps:$4 sm:$0xff]  }
 0x499   : > { %5364 = vmatpush2.bf16.msra.mxu1 %v8743_v25  ;;  %v8819_v25 = vld [vmem:[#allocation8 + $0xc10] ss:$16 sps:$4 sm:$0xff]  }
 0x49a   : > { %5407 = vmatpush2.bf16.msra.mxu0 %v8746_v0  ;;  %5365 = vmatprep.subr.bf16.mxu1 %v8751_v55  ;;  %v8822_v0 = vld [vmem:[#allocation8 + $0xc18] ss:$16 sps:$4 sm:$0xff]   ;;  %v8827_v55 = vld [vmem:[#allocation8 + $0xbf4] ss:$16 sps:$4 sm:$0xff]  }
 0x49b   : > { %5408 = vmatprep.subr.bf16.mxu0 %v8754_v35  ;;  %v8830_v35 = vld [vmem:[#allocation8 + $0xbfc] ss:$16 sps:$4 sm:$0xff]  }
 0x49d   : > { %5366 = vmatpush2.bf16.msra.mxu1 %v8749_v50  ;;  %v8825_v50 = vld [vmem:[#allocation8 + $0xbf0] ss:$16 sps:$4 sm:$0xff]  }
 0x49e   : > { %5409 = vmatpush2.bf16.msra.mxu0 %v8752_v58  ;;  %5745 = vmatprep.subr.bf16.mxu1 %v8757_v61  ;;  %v8828_v58 = vld [vmem:[#allocation8 + $0xbf8] ss:$16 sps:$4 sm:$0xff]   ;;  %v8833_v61 = vld [vmem:[#allocation8 + $0xd64] ss:$16 sps:$4 sm:$0xff]  }
 0x49f   : > { %5788 = vmatprep.subr.bf16.mxu0 %v8760_v1  ;;  %v8836_v1 = vld [vmem:[#allocation8 + $0xd6c] ss:$16 sps:$4 sm:$0xff]  }
 0x4a0   : > { %5368 = vmatmul.mubr.bf16.vlgmr.msra.gmra.mxu1 %v10246_v8 }
 0x4a1   : > { %5411 = vmatmul.mubr.bf16.vlgmr.msra.gmra.mxu0 %v10246_v8  ;;  %5746 = vmatpush1.bf16.msra.mxu1 %v8755_v42  ;;  %v8775_v8 = vld [vmem:[#allocation8 + $0xb74] ss:$16 sps:$4 sm:$0xff]   ;;  %v8831_v42 = vld [vmem:[#allocation8 + $0xd60] ss:$16 sps:$4 sm:$0xff]  }
 0x4a2   : > { %7791 = vmatprep.mubr.msk.bf16.mxu1 %vm2925_vm7, %v10270_v3  ;;  %5789 = vmatpush1.bf16.msra.mxu0 %v8758_v38  ;;  %v8834_v38 = vld [vmem:[#allocation8 + $0xd68] ss:$16 sps:$4 sm:$0xff]  }
 0x4a3   : > { %7793 = vmatprep.mubr.msk.bf16.mxu0 %vm2925_vm7, %v10270_v3  ;;  %5747 = vmatprep.subr.bf16.mxu1 %v8763_v5  ;;  %v8779_v3 = vld [vmem:[#allocation8 + $0xb50] ss:$16 sps:$4 sm:$0xff]   ;;  %v8839_v5 = vld [vmem:[#allocation8 + $0xd44] ss:$16 sps:$4 sm:$0xff]  }
 0x4a4   : > { %5790 = vmatprep.subr.bf16.mxu0 %v8766_v9  ;;  %v8842_v9 = vld [vmem:[#allocation8 + $0xd4c] ss:$16 sps:$4 sm:$0xff]  }
 0x4a5   : > { %5748 = vmatpush1.bf16.msra.mxu1 %v8761_v37  ;;  %v8837_v37 = vld [vmem:[#allocation8 + $0xd40] ss:$16 sps:$4 sm:$0xff]  }
 0x4a6   : > { %5791 = vmatpush1.bf16.msra.mxu0 %v8764_v57  ;;  %5749 = vmatprep.subr.bf16.mxu1 %v8769_v43  ;;  %v8840_v57 = vld [vmem:[#allocation8 + $0xd48] ss:$16 sps:$4 sm:$0xff]   ;;  %v8845_v43 = vld [vmem:[#allocation8 + $0xd24] ss:$16 sps:$4 sm:$0xff]  }
 0x4a7   : > { %5792 = vmatprep.subr.bf16.mxu0 %v8772_v21  ;;  %v8848_v21 = vld [vmem:[#allocation8 + $0xd2c] ss:$16 sps:$4 sm:$0xff]  }
 0x4a9   : > { %5750 = vmatpush1.bf16.msra.mxu1 %v8767_v52  ;;  %v8843_v52 = vld [vmem:[#allocation8 + $0xd20] ss:$16 sps:$4 sm:$0xff]  }
 0x4aa   : > { %5793 = vmatpush1.bf16.msra.mxu0 %v8770_v11  ;;  %5751 = vmatprep.subr.bf16.mxu1 %v8775_v8  ;;  %v8846_v11 = vld [vmem:[#allocation8 + $0xd28] ss:$16 sps:$4 sm:$0xff]   ;;  %v8854_v8 = vld [vmem:[#allocation8 + $0xd0c] ss:$16 sps:$4 sm:$0xff]  }
 0x4ab   : > { %5794 = vmatprep.subr.bf16.mxu0 %v8778_v33  ;;  %v8849_v33 = vld [vmem:[#allocation8 + $0xd00] ss:$16 sps:$4 sm:$0xff]  }
 0x4ad   : > { %5752 = vmatpush1.bf16.msra.mxu1 %v8773_v49  ;;  %v8852_v49 = vld [vmem:[#allocation8 + $0xd08] ss:$16 sps:$4 sm:$0xff]  }
 0x4ae   : > { %5795 = vmatpush1.bf16.msra.mxu0 %v8776_v19  ;;  %5753 = vmatprep.subr.bf16.mxu1 %v8781_v12  ;;  %v8857_v19 = vld [vmem:[#allocation8 + $0xce4] ss:$16 sps:$4 sm:$0xff]   ;;  %v8860_v12 = vld [vmem:[#allocation8 + $0xcec] ss:$16 sps:$4 sm:$0xff]  }
 0x4af   : > { %5796 = vmatprep.subr.bf16.mxu0 %v8784_v39  ;;  %v8858_v39 = vld [vmem:[#allocation8 + $0xce8] ss:$16 sps:$4 sm:$0xff]  }
 0x4b1   : > { %5754 = vmatpush1.bf16.msra.mxu1 %v8779_v3  ;;  %v8863_v3 = vld [vmem:[#allocation8 + $0xcc4] ss:$16 sps:$4 sm:$0xff]  }
 0x4b2   : > { %5797 = vmatpush1.bf16.msra.mxu0 %v8782_v60  ;;  %5755 = vmatprep.subr.bf16.mxu1 %v8787_v23  ;;  %v8866_v60 = vld [vmem:[#allocation8 + $0xccc] ss:$16 sps:$4 sm:$0xff]   ;;  %v8861_v23 = vld [vmem:[#allocation8 + $0xcc0] ss:$16 sps:$4 sm:$0xff]  }
 0x4b3   : > { %5798 = vmatprep.subr.bf16.mxu0 %v8790_v15  ;;  %v8864_v15 = vld [vmem:[#allocation8 + $0xcc8] ss:$16 sps:$4 sm:$0xff]  }
 0x4b5   : > { %5756 = vmatpush1.bf16.msra.mxu1 %v8785_v6  ;;  %v8869_v6 = vld [vmem:[#allocation8 + $0xca4] ss:$16 sps:$4 sm:$0xff]  }
 0x4b6   : > { %5799 = vmatpush1.bf16.msra.mxu0 %v8788_v30  ;;  %5757 = vmatprep.subr.bf16.mxu1 %v8793_v24  ;;  %v8872_v30 = vld [vmem:[#allocation8 + $0xcac] ss:$16 sps:$4 sm:$0xff]   ;;  %v8867_v24 = vld [vmem:[#allocation8 + $0xca0] ss:$16 sps:$4 sm:$0xff]  }
 0x4b7   : > { %5800 = vmatprep.subr.bf16.mxu0 %v8796_v45  ;;  %v8870_v45 = vld [vmem:[#allocation8 + $0xca8] ss:$16 sps:$4 sm:$0xff]  }
 0x4b9   : > { %5758 = vmatpush1.bf16.msra.mxu1 %v8791_v48  ;;  %v8875_v48 = vld [vmem:[#allocation8 + $0xc84] ss:$16 sps:$4 sm:$0xff]  }
 0x4ba   : > { %5801 = vmatpush1.bf16.msra.mxu0 %v8794_v7  ;;  %5759 = vmatprep.subr.bf16.mxu1 %v8799_v13  ;;  %v8878_v7 = vld [vmem:[#allocation8 + $0xc8c] ss:$16 sps:$4 sm:$0xff]   ;;  %v5888_v13 = vld [vmem:[#allocation8 + $0xe00] sm:$0xff] }
 0x4bb   : > { %5802 = vmatprep.subr.bf16.mxu0 %v8802_v26  ;;  %v5889_v26 = vld [vmem:[#allocation8 + $0xe08] sm:$0xff] }
 0x4bc   : > { %v7844_v2 = vcombine.low %v5889_v26, %v5889_v26 }
 0x4bd   : > { %5760 = vmatpush1.bf16.msra.mxu1 %v8797_v63  ;;  %v7843_v63 = vcombine.high %v5888_v13, %v5888_v13 }
 0x4be   : > { %5803 = vmatpush1.bf16.msra.mxu0 %v8800_v10  ;;  %7790 = vmatprep.subr.msk.bf16.mxu1 %vm2929_vm6, %v7787_v32  ;;  %v7842_v10 = vcombine.low %v5888_v13, %v5888_v13  ;;  %v7845_v32 = vcombine.high %v5889_v26, %v5889_v26 }
 0x4bf   : > { %7792 = vmatprep.subr.msk.bf16.mxu0 %vm2929_vm6, %v7789_v34 }
 0x4c0   : > { %v6144_v34 = vsel %vm2929_vm6, %v7842_v10, 0  ;;  %v8961_v10 = vld [vmem:[#allocation8 + $0xf74] ss:$16 sps:$4 sm:$0xff]  }
 0x4c1   : > { %5768 = vmatpush2.bf16.msra.mxu1 %v5734_v27  ;;  %v6150_v27 = vsel %vm2929_vm6, %v7844_v2, 0  ;;  %v8964_v2 = vld [vmem:[#allocation8 + $0xf7c] ss:$16 sps:$4 sm:$0xff]  }
 0x4c2   : > { %5811 = vmatpush2.bf16.msra.mxu0 %v5740_v51  ;;  %5769 = vmatprep.subr.bf16.mxu1 %v8809_v29  ;;  %v8888_v29 = vld [vmem:[#allocation8 + $0xdec] ss:$16 sps:$4 sm:$0xff]   ;;  %v8883_v51 = vld [vmem:[#allocation8 + $0xde0] ss:$16 sps:$4 sm:$0xff]  }
 0x4c3   : > { %5812 = vmatprep.subr.bf16.mxu0 %v8812_v41  ;;  %v8886_v41 = vld [vmem:[#allocation8 + $0xde8] ss:$16 sps:$4 sm:$0xff]  }
 0x4c5   : > { %5770 = vmatpush2.bf16.msra.mxu1 %v8807_v54  ;;  %v8891_v54 = vld [vmem:[#allocation8 + $0xdc4] ss:$16 sps:$4 sm:$0xff]  }
 0x4c6   : > { %5813 = vmatpush2.bf16.msra.mxu0 %v8810_v44  ;;  %5771 = vmatprep.subr.bf16.mxu1 %v8815_v4  ;;  %v8894_v44 = vld [vmem:[#allocation8 + $0xdcc] ss:$16 sps:$4 sm:$0xff]   ;;  %v8889_v4 = vld [vmem:[#allocation8 + $0xdc0] ss:$16 sps:$4 sm:$0xff]  }
 0x4c7   : > { %5814 = vmatprep.subr.bf16.mxu0 %v8818_v62  ;;  %v8892_v62 = vld [vmem:[#allocation8 + $0xdc8] ss:$16 sps:$4 sm:$0xff]  }
 0x4c9   : > { %5772 = vmatpush2.bf16.msra.mxu1 %v8813_v14  ;;  %v8897_v14 = vld [vmem:[#allocation8 + $0xda4] ss:$16 sps:$4 sm:$0xff]  }
 0x4ca   : > { %5815 = vmatpush2.bf16.msra.mxu0 %v8816_v46  ;;  %5773 = vmatprep.subr.bf16.mxu1 %v8821_v36  ;;  %v8900_v46 = vld [vmem:[#allocation8 + $0xdac] ss:$16 sps:$4 sm:$0xff]   ;;  %v8895_v36 = vld [vmem:[#allocation8 + $0xda0] ss:$16 sps:$4 sm:$0xff]  }
 0x4cb   : > { %5816 = vmatprep.subr.bf16.mxu0 %v8824_v16  ;;  %v8898_v16 = vld [vmem:[#allocation8 + $0xda8] ss:$16 sps:$4 sm:$0xff]  }
 0x4cd   : > { %5774 = vmatpush2.bf16.msra.mxu1 %v8819_v25  ;;  %v8903_v25 = vld [vmem:[#allocation8 + $0xd84] ss:$16 sps:$4 sm:$0xff]  }
 0x4ce   : > { %5817 = vmatpush2.bf16.msra.mxu0 %v8822_v0  ;;  %5775 = vmatprep.subr.bf16.mxu1 %v8827_v55  ;;  %v8906_v0 = vld [vmem:[#allocation8 + $0xd8c] ss:$16 sps:$4 sm:$0xff]   ;;  %v8901_v55 = vld [vmem:[#allocation8 + $0xd80] ss:$16 sps:$4 sm:$0xff]  }
 0x4cf   : > { %5818 = vmatprep.subr.bf16.mxu0 %v8830_v35  ;;  %v8904_v35 = vld [vmem:[#allocation8 + $0xd88] ss:$16 sps:$4 sm:$0xff]  }
 0x4d1   : > { %5776 = vmatpush2.bf16.msra.mxu1 %v8825_v50  ;;  %v8909_v50 = vld [vmem:[#allocation8 + $0xef4] ss:$16 sps:$4 sm:$0xff]  }
 0x4d2   : > { %5819 = vmatpush2.bf16.msra.mxu0 %v8828_v58  ;;  %6155 = vmatprep.subr.bf16.mxu1 %v8833_v61  ;;  %v8912_v58 = vld [vmem:[#allocation8 + $0xefc] ss:$16 sps:$4 sm:$0xff]   ;;  %v8907_v61 = vld [vmem:[#allocation8 + $0xef0] ss:$16 sps:$4 sm:$0xff]  }
 0x4d3   : > { %6198 = vmatprep.subr.bf16.mxu0 %v8836_v1  ;;  %v8910_v1 = vld [vmem:[#allocation8 + $0xef8] ss:$16 sps:$4 sm:$0xff]  }
 0x4d4   : > { %5778 = vmatmul.mubr.bf16.vlgmr.msra.gmra.mxu1 %v10263_v17 }
 0x4d5   : > { %5821 = vmatmul.mubr.bf16.vlgmr.msra.gmra.mxu0 %v10263_v17  ;;  %6156 = vmatpush1.bf16.msra.mxu1 %v8831_v42  ;;  %v8851_v17 = vld [vmem:[#allocation8 + $0xd04] ss:$16 sps:$4 sm:$0xff]  }
 0x4d6   : > { %7847 = vmatprep.mubr.msk.bf16.mxu1 %vm2925_vm7, %v10284_v53  ;;  %6199 = vmatpush1.bf16.msra.mxu0 %v8834_v38  ;;  %v8915_v42 = vld [vmem:[#allocation8 + $0xed4] ss:$16 sps:$4 sm:$0xff]   ;;  %v8918_v38 = vld [vmem:[#allocation8 + $0xedc] ss:$16 sps:$4 sm:$0xff]  }
 0x4d7   : > { %7849 = vmatprep.mubr.msk.bf16.mxu0 %vm2925_vm7, %v10284_v53  ;;  %6157 = vmatprep.subr.bf16.mxu1 %v8839_v5  ;;  %v8855_v53 = vld [vmem:[#allocation8 + $0xce0] ss:$16 sps:$4 sm:$0xff]  }
 0x4d8   : > { %6200 = vmatprep.subr.bf16.mxu0 %v8842_v9  ;;  %v8913_v5 = vld [vmem:[#allocation8 + $0xed0] ss:$16 sps:$4 sm:$0xff]   ;;  %v8916_v9 = vld [vmem:[#allocation8 + $0xed8] ss:$16 sps:$4 sm:$0xff]  }
 0x4d9   : > { %6158 = vmatpush1.bf16.msra.mxu1 %v8837_v37  ;;  %v8921_v37 = vld [vmem:[#allocation8 + $0xeb4] ss:$16 sps:$4 sm:$0xff]  }
 0x4da   : > { %6201 = vmatpush1.bf16.msra.mxu0 %v8840_v57  ;;  %6159 = vmatprep.subr.bf16.mxu1 %v8845_v43  ;;  %v8924_v57 = vld [vmem:[#allocation8 + $0xebc] ss:$16 sps:$4 sm:$0xff]   ;;  %v8919_v43 = vld [vmem:[#allocation8 + $0xeb0] ss:$16 sps:$4 sm:$0xff]  }
 0x4db   : > { %6202 = vmatprep.subr.bf16.mxu0 %v8848_v21  ;;  %v8922_v21 = vld [vmem:[#allocation8 + $0xeb8] ss:$16 sps:$4 sm:$0xff]  }
 0x4dd   : > { %6160 = vmatpush1.bf16.msra.mxu1 %v8843_v52  ;;  %v8930_v52 = vld [vmem:[#allocation8 + $0xe9c] ss:$16 sps:$4 sm:$0xff]  }
 0x4de   : > { %6203 = vmatpush1.bf16.msra.mxu0 %v8846_v11  ;;  %6161 = vmatprep.subr.bf16.mxu1 %v8851_v17  ;;  %v8925_v11 = vld [vmem:[#allocation8 + $0xe90] ss:$16 sps:$4 sm:$0xff]   ;;  %v8928_v17 = vld [vmem:[#allocation8 + $0xe98] ss:$16 sps:$4 sm:$0xff]  }
 0x4df   : > { %6204 = vmatprep.subr.bf16.mxu0 %v8854_v8  ;;  %v8933_v8 = vld [vmem:[#allocation8 + $0xe74] ss:$16 sps:$4 sm:$0xff]  }
 0x4e1   : > { %6162 = vmatpush1.bf16.msra.mxu1 %v8849_v33  ;;  %v8936_v33 = vld [vmem:[#allocation8 + $0xe7c] ss:$16 sps:$4 sm:$0xff]  }
 0x4e2   : > { %6205 = vmatpush1.bf16.msra.mxu0 %v8852_v49  ;;  %6163 = vmatprep.subr.bf16.mxu1 %v8857_v19  ;;  %v8934_v49 = vld [vmem:[#allocation8 + $0xe78] ss:$16 sps:$4 sm:$0xff]   ;;  %v8939_v19 = vld [vmem:[#allocation8 + $0xe54] ss:$16 sps:$4 sm:$0xff]  }
 0x4e3   : > { %6206 = vmatprep.subr.bf16.mxu0 %v8860_v12  ;;  %v8942_v12 = vld [vmem:[#allocation8 + $0xe5c] ss:$16 sps:$4 sm:$0xff]  }
 0x4e5   : > { %6164 = vmatpush1.bf16.msra.mxu1 %v8855_v53  ;;  %v8937_v53 = vld [vmem:[#allocation8 + $0xe50] ss:$16 sps:$4 sm:$0xff]  }
 0x4e6   : > { %6207 = vmatpush1.bf16.msra.mxu0 %v8858_v39  ;;  %6165 = vmatprep.subr.bf16.mxu1 %v8863_v3  ;;  %v8940_v39 = vld [vmem:[#allocation8 + $0xe58] ss:$16 sps:$4 sm:$0xff]   ;;  %v8945_v3 = vld [vmem:[#allocation8 + $0xe34] ss:$16 sps:$4 sm:$0xff]  }
 0x4e7   : > { %6208 = vmatprep.subr.bf16.mxu0 %v8866_v60  ;;  %v8948_v60 = vld [vmem:[#allocation8 + $0xe3c] ss:$16 sps:$4 sm:$0xff]  }
 0x4e9   : > { %6166 = vmatpush1.bf16.msra.mxu1 %v8861_v23  ;;  %v8943_v23 = vld [vmem:[#allocation8 + $0xe30] ss:$16 sps:$4 sm:$0xff]  }
 0x4ea   : > { %6209 = vmatpush1.bf16.msra.mxu0 %v8864_v15  ;;  %6167 = vmatprep.subr.bf16.mxu1 %v8869_v6  ;;  %v8946_v15 = vld [vmem:[#allocation8 + $0xe38] ss:$16 sps:$4 sm:$0xff]   ;;  %v8951_v6 = vld [vmem:[#allocation8 + $0xe14] ss:$16 sps:$4 sm:$0xff]  }
 0x4eb   : > { %6210 = vmatprep.subr.bf16.mxu0 %v8872_v30  ;;  %v8954_v30 = vld [vmem:[#allocation8 + $0xe1c] ss:$16 sps:$4 sm:$0xff]  }
 0x4ed   : > { %6168 = vmatpush1.bf16.msra.mxu1 %v8867_v24  ;;  %v6298_v24 = vld [vmem:[#allocation8 + $0xf90] sm:$0xff] }
 0x4ee   : > { %6211 = vmatpush1.bf16.msra.mxu0 %v8870_v45  ;;  %6169 = vmatprep.subr.bf16.mxu1 %v8875_v48  ;;  %v6299_v45 = vld [vmem:[#allocation8 + $0xf98] sm:$0xff]  ;;  %v8949_v48 = vld [vmem:[#allocation8 + $0xe10] ss:$16 sps:$4 sm:$0xff]   ;;  %v7899_v13 = vcombine.high %v6298_v24, %v6298_v24  ;;  %v7898_v26 = vcombine.low %v6298_v24, %v6298_v24  ;;  %v9012_v24 = vld [vmem:[#allocation11 + $0xc0] sm:$0xff]  }
 0x4ef   : > { %6212 = vmatprep.subr.bf16.mxu0 %v8878_v7  ;;  %v8952_v7 = vld [vmem:[#allocation8 + $0xe18] ss:$16 sps:$4 sm:$0xff]  }
 0x4f1   : > { %6170 = vmatpush1.bf16.msra.mxu1 %v8873_v28  ;;  %v7901_v28 = vcombine.high %v6299_v45, %v6299_v45 }
 0x4f2   : > { %6213 = vmatpush1.bf16.msra.mxu0 %v8876_v31  ;;  %7846 = vmatprep.subr.msk.bf16.mxu1 %vm2929_vm6, %v7843_v63  ;;  %v7900_v31 = vcombine.low %v6299_v45, %v6299_v45  ;;  %v6554_v63 = vsel %vm2929_vm6, %v7898_v26, 0  ;;  %v9013_v45 = vld [vmem:[#allocation11] sm:$0xff]  }
 0x4f3   : > { %7848 = vmatprep.subr.msk.bf16.mxu0 %vm2929_vm6, %v7845_v32 }
 0x4f4   : > { %v6560_v32 = vsel %vm2929_vm6, %v7900_v31, 0 }
 0x4f5   : > { %6178 = vmatpush2.bf16.msra.mxu1 %v6144_v34  ;;  %v8959_v34 = vld [vmem:[#allocation8 + $0xf70] ss:$16 sps:$4 sm:$0xff]  }
 0x4f6   : > { %6221 = vmatpush2.bf16.msra.mxu0 %v6150_v27  ;;  %6179 = vmatprep.subr.bf16.mxu1 %v8885_v56  ;;  %v8962_v56 = vld [vmem:[#allocation8 + $0xf78] ss:$16 sps:$4 sm:$0xff]   ;;  %v8967_v27 = vld [vmem:[#allocation8 + $0xf54] ss:$16 sps:$4 sm:$0xff]  }
 0x4f7   : > { %6222 = vmatprep.subr.bf16.mxu0 %v8888_v29  ;;  %v8970_v29 = vld [vmem:[#allocation8 + $0xf5c] ss:$16 sps:$4 sm:$0xff]  }
 0x4f9   : > { %6180 = vmatpush2.bf16.msra.mxu1 %v8883_v51  ;;  %v8965_v51 = vld [vmem:[#allocation8 + $0xf50] ss:$16 sps:$4 sm:$0xff]  }
 0x4fa   : > { %6223 = vmatpush2.bf16.msra.mxu0 %v8886_v41  ;;  %6181 = vmatprep.subr.bf16.mxu1 %v8891_v54  ;;  %v8968_v41 = vld [vmem:[#allocation8 + $0xf58] ss:$16 sps:$4 sm:$0xff]   ;;  %v8973_v54 = vld [vmem:[#allocation8 + $0xf34] ss:$16 sps:$4 sm:$0xff]  }
 0x4fb   : > { %6224 = vmatprep.subr.bf16.mxu0 %v8894_v44  ;;  %v8976_v44 = vld [vmem:[#allocation8 + $0xf3c] ss:$16 sps:$4 sm:$0xff]  }
 0x4fd   : > { %6182 = vmatpush2.bf16.msra.mxu1 %v8889_v4  ;;  %v8971_v4 = vld [vmem:[#allocation8 + $0xf30] ss:$16 sps:$4 sm:$0xff]  }
 0x4fe   : > { %6225 = vmatpush2.bf16.msra.mxu0 %v8892_v62  ;;  %6183 = vmatprep.subr.bf16.mxu1 %v8897_v14  ;;  %v8974_v62 = vld [vmem:[#allocation8 + $0xf38] ss:$16 sps:$4 sm:$0xff]   ;;  %v8979_v14 = vld [vmem:[#allocation8 + $0xf14] ss:$16 sps:$4 sm:$0xff]  }
 0x4ff   : > { %6226 = vmatprep.subr.bf16.mxu0 %v8900_v46  ;;  %v8982_v46 = vld [vmem:[#allocation8 + $0xf1c] ss:$16 sps:$4 sm:$0xff]  }
 0x501   : > { %6184 = vmatpush2.bf16.msra.mxu1 %v8895_v36  ;;  %v8977_v36 = vld [vmem:[#allocation8 + $0xf10] ss:$16 sps:$4 sm:$0xff]  }
 0x502   : > { %6227 = vmatpush2.bf16.msra.mxu0 %v8898_v16  ;;  %6185 = vmatprep.subr.bf16.mxu1 %v8903_v25  ;;  %v8980_v16 = vld [vmem:[#allocation8 + $0xf18] ss:$16 sps:$4 sm:$0xff]   ;;  %v8983_v25 = vld [vmem:[#allocation11 + $0x78] sm:$0xff]  }
 0x503   : > { %6228 = vmatprep.subr.bf16.mxu0 %v8906_v0  ;;  %v8984_v0 = vld [vmem:[#allocation11 + $0xf8] ss:$0 sps:$4 sm:$0x33]  }
 0x505   : > { %6186 = vmatpush2.bf16.msra.mxu1 %v8901_v55  ;;  %v8985_v55 = vld [vmem:[#allocation11 + $0x38] sm:$0xff]  }
 0x506   : > { %6229 = vmatpush2.bf16.msra.mxu0 %v8904_v35  ;;  %6565 = vmatprep.subr.bf16.mxu1 %v8909_v50  ;;  %v8986_v35 = vld [vmem:[#allocation11 + $0xb8] sm:$0xff]   ;;  %v8987_v50 = vld [vmem:[#allocation11 + $0x70] sm:$0xff]  }
 0x507   : > { %6608 = vmatprep.subr.bf16.mxu0 %v8912_v58  ;;  %v8988_v58 = vld [vmem:[#allocation11 + $0xf0] sm:$0xff]  }
 0x508   : > { %6188 = vmatmul.mubr.bf16.vlgmr.msra.gmra.mxu1 %v10276_v59 }
 0x509   : > { %6231 = vmatmul.mubr.bf16.vlgmr.msra.gmra.mxu0 %v10276_v59  ;;  %6566 = vmatpush1.bf16.msra.mxu1 %v8907_v61  ;;  %v8927_v59 = vld [vmem:[#allocation8 + $0xe94] ss:$16 sps:$4 sm:$0xff]  }
 0x50a   : > { %7903 = vmatprep.mubr.msk.bf16.mxu1 %vm2925_vm7, %v10292_v47  ;;  %6609 = vmatpush1.bf16.msra.mxu0 %v8910_v1  ;;  %v8989_v61 = vld [vmem:[#allocation11 + $0x30] sm:$0xff]  }
 0x50b   : > { %7905 = vmatprep.mubr.msk.bf16.mxu0 %vm2925_vm7, %v10292_v47  ;;  %6567 = vmatprep.subr.bf16.mxu1 %v8915_v42  ;;  %v8931_v47 = vld [vmem:[#allocation8 + $0xe70] ss:$16 sps:$4 sm:$0xff]   ;;  %v8990_v1 = vld [vmem:[#allocation11 + $0xb0] sm:$0xff]  }
 0x50c   : > { %6610 = vmatprep.subr.bf16.mxu0 %v8918_v38  ;;  %v8991_v42 = vld [vmem:[#allocation11 + $0x68] sm:$0xff]  }
 0x50d   : > { %6568 = vmatpush1.bf16.msra.mxu1 %v8913_v5  ;;  %v8992_v38 = vld [vmem:[#allocation11 + $0xe8] sm:$0xff]  }
 0x50e   : > { %6611 = vmatpush1.bf16.msra.mxu0 %v8916_v9  ;;  %6569 = vmatprep.subr.bf16.mxu1 %v8921_v37  ;;  %v8994_v5 = vld [vmem:[#allocation11 + $0xa8] sm:$0xff]   ;;  %v8995_v9 = vld [vmem:[#allocation11 + $0x60] sm:$0xff]  }
 0x50f   : > { %6612 = vmatprep.subr.bf16.mxu0 %v8924_v57  ;;  %v8996_v37 = vld [vmem:[#allocation11 + $0xe0] sm:$0xff]  }
 0x510   : > { %v8997_v57 = vld [vmem:[#allocation11 + $0x20] sm:$0xff]  }
 0x511   : > { %6570 = vmatpush1.bf16.msra.mxu1 %v8919_v43  ;;  %v8998_v43 = vld [vmem:[#allocation11 + $0xa0] sm:$0xff]  }
 0x512   : > { %6613 = vmatpush1.bf16.msra.mxu0 %v8922_v21  ;;  %6571 = vmatprep.subr.bf16.mxu1 %v8927_v59  ;;  %v8999_v21 = vld [vmem:[#allocation11 + $0x58] sm:$0xff]  }
 0x513   : > { %6614 = vmatprep.subr.bf16.mxu0 %v8930_v52  ;;  %v9000_v59 = vld [vmem:[#allocation11 + $0xd8] sm:$0xff]  }
 0x514   : > { %v9001_v52 = vld [vmem:[#allocation11 + $0x18] sm:$0xff]  }
 0x515   : > { %6572 = vmatpush1.bf16.msra.mxu1 %v8925_v11  ;;  %v9002_v11 = vld [vmem:[#allocation11 + $0x98] sm:$0xff]  }
 0x516   : > { %6615 = vmatpush1.bf16.msra.mxu0 %v8928_v17  ;;  %6573 = vmatprep.subr.bf16.mxu1 %v8933_v8  ;;  %v10370_v17 = vpop.f32.mrf.mxu1  ;;  %v10372_v8 = vpop.f32.mrf.mxu0 }
 0x517   : > { %6616 = vmatprep.subr.bf16.mxu0 %v8936_v33  ;;  %v9003_v33 = vld [vmem:[#allocation11 + $0x50] sm:$0xff]  }
 0x519   : > { %6574 = vmatpush1.bf16.msra.mxu1 %v8931_v47  ;;  %v9004_v47 = vld [vmem:[#allocation11 + $0xd0] sm:$0xff]  }
 0x51a   : > { %6617 = vmatpush1.bf16.msra.mxu0 %v8934_v49  ;;  %6575 = vmatprep.subr.bf16.mxu1 %v8939_v19  ;;  %v9005_v49 = vld [vmem:[#allocation11 + $0x10] sm:$0xff]  }
 0x51b   : > { %6618 = vmatprep.subr.bf16.mxu0 %v8942_v12  ;;  %v9006_v19 = vld [vmem:[#allocation11 + $0x90] sm:$0xff]   ;;  %v10374_v12 = vpop.f32.mrf.mxu1 }
 0x51d   : > { %6576 = vmatpush1.bf16.msra.mxu1 %v8937_v53  ;;  %v10376_v53 = vpop.f32.mrf.mxu0 }
 0x51e   : > { %6619 = vmatpush1.bf16.msra.mxu0 %v8940_v39  ;;  %6577 = vmatprep.subr.bf16.mxu1 %v8945_v3  ;;  %v9007_v39 = vld [vmem:[#allocation11 + $0x48] sm:$0xff]  }
 0x51f   : > { %6620 = vmatprep.subr.bf16.mxu0 %v8948_v60  ;;  %v9008_v3 = vld [vmem:[#allocation11 + $0xc8] sm:$0xff]  }
 0x520   : > { %v9009_v60 = vld [vmem:[#allocation11 + $0x8] sm:$0xff]  }
 0x521   : > { %6578 = vmatpush1.bf16.msra.mxu1 %v8943_v23  ;;  %v9010_v23 = vld [vmem:[#allocation11 + $0x88] sm:$0xff]  }
 0x522   : > { %6621 = vmatpush1.bf16.msra.mxu0 %v8946_v15  ;;  %6579 = vmatprep.subr.bf16.mxu1 %v8951_v6  ;;  %v10378_v15 = vpop.f32.mrf.mxu1  ;;  %v10380_v6 = vpop.f32.mrf.mxu0 }
 0x523   : > { %6622 = vmatprep.subr.bf16.mxu0 %v8954_v30  ;;  %v9011_v30 = vld [vmem:[#allocation11 + $0x40] sm:$0xff]  }
 0x525   : > { %6580 = vmatpush1.bf16.msra.mxu1 %v8949_v48  ;;  %v9014_v48 = vld [vmem:[#allocation11 + $0x80] sm:$0xff]  }
 0x526   : > { %6623 = vmatpush1.bf16.msra.mxu0 %v8952_v7  ;;  %7902 = vmatprep.subr.msk.bf16.mxu1 %vm2929_vm6, %v7899_v13  ;;  %v10382_v7 = vpop.f32.mrf.mxu1  ;;  %v10384_v13 = vpop.f32.mrf.mxu0 }
 0x527   : > { %7904 = vmatprep.subr.msk.bf16.mxu0 %vm2929_vm6, %v7901_v28 }
 0x528   : > { %v3327_v26 = vpop.f32.mrf.mxu1  ;;  %v3370_v28 = vpop.f32.mrf.mxu0 }
 0x529   : > { %6588 = vmatpush2.bf16.msra.mxu1 %v6554_v63 }
 0x52a   : > { %6631 = vmatpush2.bf16.msra.mxu0 %v6560_v32  ;;  %6589 = vmatprep.subr.bf16.mxu1 %v8961_v10  ;;  %v3329_v31 = vpop.f32.mrf.mxu1  ;;  %v3372_v63 = vpop.f32.mrf.mxu0 }
 0x52b   : > { %6632 = vmatprep.subr.bf16.mxu0 %v8964_v2 }
 0x52c   : > { %v3331_v10 = vpop.f32.mrf.mxu1  ;;  %v3374_v32 = vpop.f32.mrf.mxu0 }
 0x52d   : > { %6590 = vmatpush2.bf16.msra.mxu1 %v8959_v34 }
 0x52e   : > { %6633 = vmatpush2.bf16.msra.mxu0 %v8962_v56  ;;  %6591 = vmatprep.subr.bf16.mxu1 %v8967_v27  ;;  %v3333_v2 = vpop.f32.mrf.mxu1  ;;  %v3376_v34 = vpop.f32.mrf.mxu0 }
 0x52f   : > { %6634 = vmatprep.subr.bf16.mxu0 %v8970_v29 }
 0x530   : > { %v3729_v56 = vpop.f32.mrf.mxu1  ;;  %v3772_v27 = vpop.f32.mrf.mxu0 }
 0x531   : > { %6592 = vmatpush2.bf16.msra.mxu1 %v8965_v51 }
 0x532   : > { %6635 = vmatpush2.bf16.msra.mxu0 %v8968_v41  ;;  %6593 = vmatprep.subr.bf16.mxu1 %v8973_v54  ;;  %v3731_v29 = vpop.f32.mrf.mxu1  ;;  %v3774_v51 = vpop.f32.mrf.mxu0 }
 0x533   : > { %6636 = vmatprep.subr.bf16.mxu0 %v8976_v44 }
 0x534   : > { %v3733_v41 = vpop.f32.mrf.mxu1  ;;  %v3776_v54 = vpop.f32.mrf.mxu0 }
 0x535   : > { %6594 = vmatpush2.bf16.msra.mxu1 %v8971_v4 }
 0x536   : > { %6637 = vmatpush2.bf16.msra.mxu0 %v8974_v62  ;;  %6595 = vmatprep.subr.bf16.mxu1 %v8979_v14  ;;  %v3735_v44 = vpop.f32.mrf.mxu1  ;;  %v3778_v4 = vpop.f32.mrf.mxu0 }
 0x537   : > { %6638 = vmatprep.subr.bf16.mxu0 %v8982_v46 }
 0x538   : > { %v4139_v62 = vpop.f32.mrf.mxu1  ;;  %v4182_v14 = vpop.f32.mrf.mxu0 }
 0x539   : > { %6596 = vmatpush2.bf16.msra.mxu1 %v8977_v36 }
 0x53a   : > { %6639 = vmatpush2.bf16.msra.mxu0 %v8980_v16  ;;  %7943 = vmatprep.subr.bf16.mxu1 %v8983_v25  ;;  %v4141_v46 = vpop.f32.mrf.mxu1  ;;  %v4184_v36 = vpop.f32.mrf.mxu0 }
 0x53b   : > { %7987 = vmatprep.subr.msk.bf16.mxu0 %vm6964_vm8, %v8984_v0 }
 0x53c   : > { %6598 = vmatmul.mubr.bf16.vlgmr.msra.gmra.mxu1 %v10290_v40  ;;  %v4143_v16 = vpop.f32.mrf.mxu1  ;;  %v4186_v25 = vpop.f32.mrf.mxu0 }
 0x53d   : > { %6641 = vmatmul.mubr.bf16.vlgmr.msra.gmra.mxu0 %v10290_v40  ;;  %7944 = vmatpush3.bf16.msra.mxu1 %v8985_v55  ;;  %v8993_v40 = vld [vmem:[#allocation11 + $0x28] sm:$0xff]  }
 0x53e   : > { %7966 = vmatpush3.bf16.msra.mxu0 %v8986_v35  ;;  %7945 = vmatprep.subr.bf16.mxu1 %v8987_v50  ;;  %v4145_v0 = vpop.f32.mrf.mxu1  ;;  %v4188_v55 = vpop.f32.mrf.mxu0 }
 0x53f   : > { %7967 = vmatprep.subr.bf16.mxu0 %v8988_v58 }
 0x540   : > { %v4549_v35 = vpop.f32.mrf.mxu1  ;;  %v4592_v50 = vpop.f32.mrf.mxu0 }
 0x541   : > { %7946 = vmatpush3.bf16.msra.mxu1 %v8989_v61 }
 0x542   : > { %7968 = vmatpush3.bf16.msra.mxu0 %v8990_v1  ;;  %7947 = vmatprep.subr.bf16.mxu1 %v8991_v42  ;;  %v4551_v58 = vpop.f32.mrf.mxu1  ;;  %v4594_v61 = vpop.f32.mrf.mxu0 }
 0x543   : > { %7969 = vmatprep.subr.bf16.mxu0 %v8992_v38 }
 0x544   : > { %v4553_v1 = vpop.f32.mrf.mxu1  ;;  %v4596_v42 = vpop.f32.mrf.mxu0 }
 0x545   : > { %7948 = vmatpush3.bf16.msra.mxu1 %v8993_v40 }
 0x546   : > { %7970 = vmatpush3.bf16.msra.mxu0 %v8994_v5  ;;  %7949 = vmatprep.subr.bf16.mxu1 %v8995_v9  ;;  %v4555_v38 = vpop.f32.mrf.mxu1  ;;  %v4598_v40 = vpop.f32.mrf.mxu0 }
 0x547   : > { %7971 = vmatprep.subr.bf16.mxu0 %v8996_v37 }
 0x548   : > { %v4959_v5 = vpop.f32.mrf.mxu1  ;;  %v10386_v9 = vpop.f32.mrf.mxu0 }
 0x549   : > { %7950 = vmatpush3.bf16.msra.mxu1 %v8997_v57 }
 0x54a   : > { %7972 = vmatpush3.bf16.msra.mxu0 %v8998_v43  ;;  %7951 = vmatprep.subr.bf16.mxu1 %v8999_v21  ;;  %v4961_v37 = vpop.f32.mrf.mxu1  ;;  %v5004_v57 = vpop.f32.mrf.mxu0 }
 0x54b   : > { %7973 = vmatprep.subr.bf16.mxu0 %v9000_v59 }
 0x54c   : > { %v4963_v43 = vpop.f32.mrf.mxu1  ;;  %v5006_v21 = vpop.f32.mrf.mxu0 }
 0x54d   : > { %7952 = vmatpush3.bf16.msra.mxu1 %v9001_v52 }
 0x54e   : > { %7974 = vmatpush3.bf16.msra.mxu0 %v9002_v11  ;;  %7953 = vmatprep.subr.bf16.mxu1 %v9003_v33  ;;  %v4965_v59 = vpop.f32.mrf.mxu1  ;;  %v5008_v52 = vpop.f32.mrf.mxu0 }
 0x54f   : > { %7975 = vmatprep.subr.bf16.mxu0 %v9004_v47 }
 0x551   : > { %7954 = vmatpush3.bf16.msra.mxu1 %v9005_v49 }
 0x552   : > { %7976 = vmatpush3.bf16.msra.mxu0 %v9006_v19  ;;  %7955 = vmatprep.subr.bf16.mxu1 %v9007_v39 }
 0x553   : > { %7977 = vmatprep.subr.bf16.mxu0 %v9008_v3 }
 0x555   : > { %7956 = vmatpush3.bf16.msra.mxu1 %v9009_v60 }
 0x556   : > { %7978 = vmatpush3.bf16.msra.mxu0 %v9010_v23  ;;  %7957 = vmatprep.subr.bf16.mxu1 %v9011_v30 }
 0x557   : > { %7979 = vmatprep.subr.bf16.mxu0 %v9012_v24 }
 0x559   : > { %7958 = vmatpush3.bf16.msra.mxu1 %v9013_v45 }
 0x55a   : > { %7980 = vmatpush3.bf16.msra.mxu0 %v9014_v48 }
 0x560   : > { %v5369_v11 = vpop.f32.mrf.mxu1 }
 0x561   : > { %v10388_v33 = vpop.f32.mrf.mxu0 }
 0x562   : > { %v5371_v47 = vpop.f32.mrf.mxu1 }
 0x563   : > { %v10390_v49 = vpop.f32.mrf.mxu0 }
 0x564   : > { %10493 = vst [vmem:[#allocation19_spill] sm:$0xff] %v10390_v49  ;;  %v10392_v19 = vpop.f32.mrf.mxu1 }
 0x565   : > { %10494 = vst [vmem:[#allocation20_spill] sm:$0xff] %v10392_v19  ;;  %v10394_v39 = vpop.f32.mrf.mxu0 }
 0x566   : > { %10495 = vst [vmem:[#allocation21_spill] sm:$0xff] %v10394_v39  ;;  %v10396_v3 = vpop.f32.mrf.mxu1 }
 0x567   : > { %10496 = vst [vmem:[#allocation22_spill] sm:$0xff] %v10396_v3  ;;  %v10398_v60 = vpop.f32.mrf.mxu0 }
 0x568   : > { %10497 = vst [vmem:[#allocation23_spill] sm:$0xff] %v10398_v60  ;;  %v3328_v60 = vadd.f32 %v3327_v26, %v10370_v17 }
 0x594   : > { %v10400_v23 = vpop.f32.mrf.mxu1 }
 0x595   : > { %10498 = vst [vmem:[#allocation24_spill] sm:$0xff] %v10400_v23  ;;  %v10402_v30 = vpop.f32.mrf.mxu0  ;;  %v3330_v23 = vadd.f32 %v3329_v31, %v10374_v12 }
 0x596   : > { %10499 = vst [vmem:[#allocation25_spill] sm:$0xff] %v10402_v30  ;;  %v10404_v24 = vpop.f32.mrf.mxu1  ;;  %v3371_v30 = vadd.f32 %v3370_v28, %v10372_v8 }
 0x597   : > { %10500 = vst [vmem:[#allocation26_spill] sm:$0xff] %v10404_v24  ;;  %v10406_v45 = vpop.f32.mrf.mxu0  ;;  %v3781_v24 = vadd.f32 %v3729_v56, %v3328_v60 }
 0x598   : > { %10501 = vst [vmem:[#allocation27_spill] sm:$0xff] %v10406_v45  ;;  %v10408_v48 = vpop.f32.mrf.mxu1  ;;  %v3373_v45 = vadd.f32 %v3372_v63, %v10376_v53  ;;  %v3783_v19 = vadd.f32 %v3772_v27, %v3371_v30 }
 0x599   : > { %10502 = vst [vmem:[#allocation28_spill] sm:$0xff] %v10408_v48  ;;  %v10410_v18 = vpop.f32.mrf.mxu0  ;;  %v3332_v48 = vadd.f32 %v3331_v10, %v10378_v15  ;;  %v4191_v8 = vadd.f32 %v4139_v62, %v3781_v24 }
 0x59a   : > { %10503 = vst [vmem:[#allocation29_spill] sm:$0xff] %v10410_v18  ;;  %v10412_v22 = vpop.f32.mrf.mxu1  ;;  %v3375_v18 = vadd.f32 %v3374_v32, %v10380_v6  ;;  %v3784_v17 = vadd.f32 %v3774_v51, %v3373_v45  ;;  %v4193_v63 = vadd.f32 %v4182_v14, %v3783_v19 }
 0x59b   : > { %10504 = vst [vmem:[#allocation30_spill] sm:$0xff] %v10412_v22  ;;  %v10414_v20 = vpop.f32.mrf.mxu0  ;;  %v3334_v22 = vadd.f32 %v3333_v2, %v10382_v7  ;;  %v3785_v26 = vadd.f32 %v3733_v41, %v3332_v48  ;;  %v4601_v2 = vadd.f32 %v4549_v35, %v4191_v8  ;;  %v10508_v35 = vld [vmem:[#allocation19_spill] sm:$0xff] }
 0x59c   : > { %10505 = vst [vmem:[#allocation31_spill] sm:$0xff] %v10414_v20  ;;  %v3377_v20 = vadd.f32 %v3376_v34, %v10384_v13  ;;  %v3787_v12 = vadd.f32 %v3776_v54, %v3375_v18  ;;  %v4194_v15 = vadd.f32 %v4184_v36, %v3784_v17  ;;  %v4603_v34 = vadd.f32 %v4592_v50, %v4193_v63 }
 0x59d   : > { %v4195_v10 = vadd.f32 %v4143_v16, %v3785_v26 }
 0x59e   : > { %v3788_v49 = vadd.f32 %v3778_v4, %v3377_v20  ;;  %v4197_v6 = vadd.f32 %v4186_v25, %v3787_v12  ;;  %v4604_v56 = vadd.f32 %v4594_v61, %v4194_v15 }
 0x59f   : > { %v4605_v27 = vadd.f32 %v4553_v1, %v4195_v10 }
 0x5a0   : > { %v4198_v7 = vadd.f32 %v4188_v55, %v3788_v49  ;;  %v5014_v4 = vadd.f32 %v5004_v57, %v4604_v56  ;;  %v10513_v57 = vld [vmem:[#allocation23_spill] sm:$0xff]  ;;  %v10519_v24 = vld [vmem:[#allocation28_spill] sm:$0xff] }
 0x5a1   : > { %v5015_v62 = vadd.f32 %v4963_v43, %v4605_v27  ;;  %v10516_v49 = vld [vmem:[#allocation27_spill] sm:$0xff]  ;;  %v10521_v8 = vld [vmem:[#allocation29_spill] sm:$0xff] }
 0x5a2   : > { %v4608_v41 = vadd.f32 %v4598_v40, %v4198_v7  ;;  %v5424_v50 = vadd.f32 %v10508_v35, %v5014_v4  ;;  %v10511_v40 = vld [vmem:[#allocation21_spill] sm:$0xff]  ;;  %v10523_v7 = vld [vmem:[#allocation30_spill] sm:$0xff] }
 0x5a4   : > { %v5018_v36 = vadd.f32 %v5008_v52, %v4608_v41 }
 0x5a6   : > { %v5428_v43 = vadd.f32 %v10513_v57, %v5018_v36 }
 0x5c8   : > { %v10416_v39 = vpop.f32.mrf.mxu1 }
 0x5c9   : > { %10506 = vst [vmem:[#allocation32_spill] sm:$0xff] %v10416_v39  ;;  %v10420_v3 = vpop.f32.mrf.mxu0  ;;  %v3782_v39 = vadd.f32 %v3731_v29, %v3330_v23  ;;  %v4607_v29 = vadd.f32 %v4596_v42, %v4197_v6  ;;  %v10510_v42 = vld [vmem:[#allocation18_spill] sm:$0xff]  ;;  %v10518_v23 = vld [vmem:[#allocation25_spill] sm:$0xff] }
 0x5ca   : > { %10507 = vst [vmem:[#allocation33_spill] sm:$0xff] %v10420_v3  ;;  %v6191_v31 = vpop.f32.mrf.mxu1  ;;  %v3786_v3 = vadd.f32 %v3735_v44, %v3334_v22  ;;  %v5011_v22 = vadd.f32 %v4959_v5, %v4601_v2  ;;  %v5013_v44 = vadd.f32 %v10386_v9, %v4603_v34  ;;  %v10512_v9 = vld [vmem:[#allocation22_spill] sm:$0xff]  ;;  %v6671_v60 = vsub.s32 2, %v10510_v42 }
 0x5cb   : > { %v4192_v28 = vadd.f32 %v4141_v46, %v3782_v39  ;;  %v6234_v53 = vpop.f32.mrf.mxu0  ;;  %v5017_v14 = vadd.f32 %v5006_v21, %v4607_v29  ;;  %v10514_v21 = vld [vmem:[#allocation26_spill] sm:$0xff]  ;;  %v10517_v39 = vsub.s32 0, %v10510_v42  ;;  %v10520_v26 = vsub.s32 1, %v10510_v42 }
 0x5cc   : > { %v4196_v32 = vadd.f32 %v4145_v0, %v3786_v3  ;;  %v6193_v51 = vpop.f32.mrf.mxu1  ;;  %v5421_v16 = vadd.f32 %v5369_v11, %v5011_v22  ;;  %v6659_v0 = vld [vmem:[#allocation10] sm:$0xf]  ;;  %v5423_v55 = vadd.f32 %v10388_v33, %v5013_v44  ;;  %v10515_v11 = vld [vmem:[#allocation24_spill] sm:$0xff]  ;;  %v5834_v33 = vadd.f32 %v10516_v49, %v5424_v50 }
 0x5cd   : > { %v4602_v13 = vadd.f32 %v4551_v58, %v4192_v28  ;;  %v6236_v54 = vpop.f32.mrf.mxu0  ;;  %v10509_v58 = vld [vmem:[#allocation20_spill] sm:$0xff]  ;;  %v5427_v5 = vadd.f32 %v10511_v40, %v5017_v14  ;;  %v6664_v3 = vrot.slane %v6659_v0, %v10517_v39  ;;  %v6668_v12 = vrot.slane %v6659_v0, %v10520_v26  ;;  %v7906_v39 = vld [vmem:[#allocation13] ss:$0 sm:$0xff] }
 0x5ce   : > { %v4606_v18 = vadd.f32 %v4555_v38, %v4196_v32  ;;  %v5425_v61 = vadd.f32 %v10509_v58, %v5015_v62  ;;  %v6195_v1 = vpop.f32.mrf.mxu1  ;;  %v6675_v38 = vsub.s32 3, %v10510_v42  ;;  %v5833_v30 = vadd.f32 %v10518_v23, %v5423_v55 }
 0x5cf   : > { %v5012_v20 = vadd.f32 %v4961_v37, %v4602_v13  ;;  %v6238_v52 = vpop.f32.mrf.mxu0  ;;  %v5837_v28 = vadd.f32 %v10521_v8, %v5427_v5  ;;  %v6244_v10 = vadd.f32 %v6234_v53, %v5834_v33  ;;  %v6672_v14 = vrot.slane %v6659_v0, %v6671_v60 }
 0x5d0   : > { %v5016_v46 = vadd.f32 %v4965_v59, %v4606_v18  ;;  %v5835_v45 = vadd.f32 %v10519_v24, %v5425_v61  ;;  %v10522_v63 = vld [vmem:[#allocation32_spill] sm:$0xff]  ;;  %v6676_v32 = vrot.slane %v6659_v0, %v6675_v38  ;;  %v10525_v18 = vld [vmem:[#allocation31_spill] sm:$0xff] }
 0x5d1   : > { %v5422_v25 = vadd.f32 %v5371_v47, %v5012_v20  ;;  %v5831_v47 = vadd.f32 %v10515_v11, %v5421_v16  ;;  %v10524_v13 = vld [vmem:[#allocation33_spill] sm:$0xff]  ;;  %v6247_v41 = vadd.f32 %v6236_v54, %v5837_v28 }
 0x5d2   : > { %v5426_v37 = vadd.f32 %v10512_v9, %v5016_v46  ;;  %v6243_v34 = vadd.f32 %v10524_v13, %v5833_v30  ;;  %v6245_v56 = vadd.f32 %v6193_v51, %v5835_v45 }
 0x5d3   : > { %v5832_v59 = vadd.f32 %v10514_v21, %v5422_v25  ;;  %v6241_v15 = vadd.f32 %v10522_v63, %v5831_v47 }
 0x5d4   : > { %v5836_v2 = vadd.f32 %v10523_v7, %v5426_v37 }
 0x5d5   : > { %v6242_v48 = vadd.f32 %v6191_v31, %v5832_v59  ;;  %v5838_v31 = vadd.f32 %v10525_v18, %v5428_v43 }
 0x5d6   : > { %v6246_v4 = vadd.f32 %v6195_v1, %v5836_v2 }
 0x5d7   : > { %v6248_v36 = vadd.f32 %v6238_v52, %v5838_v31 }
 0x5fc   : > { %v6599_v19 = vpop.f32.mrf.mxu1 }
 0x5fd   : > { %v6642_v17 = vpop.f32.mrf.mxu0  ;;  %v6651_v22 = vadd.f32 %v6599_v19, %v6241_v15 }
 0x5fe   : > { %v6601_v6 = vpop.f32.mrf.mxu1  ;;  %v6653_v62 = vadd.f32 %v6642_v17, %v6243_v34 }
 0x5ff   : > { %v6652_v27 = vadd.f32 %v6601_v6, %v6242_v48  ;;  %v6644_v29 = vpop.f32.mrf.mxu0  ;;  %v6681_v58 = vadd.f32 %v6664_v3, %v6651_v22 }
 0x600   : > { %v6654_v20 = vadd.f32 %v6644_v29, %v6244_v10  ;;  %v6603_v44 = vpop.f32.mrf.mxu1  ;;  %v6683_v54 = vadd.f32 %v6672_v14, %v6653_v62 }
 0x601   : > { %v6655_v46 = vadd.f32 %v6603_v44, %v6245_v56  ;;  %v6646_v53 = vpop.f32.mrf.mxu0  ;;  %v6682_v55 = vadd.f32 %v6668_v12, %v6652_v27  ;;  %v6689_v57 = vmax.f32 %v6681_v58, 0.0 }
 0x602   : > { %v6657_v16 = vadd.f32 %v6646_v53, %v6247_v41  ;;  %v6605_v25 = vpop.f32.mrf.mxu1  ;;  %v6684_v61 = vadd.f32 %v6676_v32, %v6654_v20  ;;  %v6691_v59 = vmax.f32 %v6683_v54, 0.0 }
 0x603   : > { %v6685_v35 = vadd.f32 %v6664_v3, %v6655_v46  ;;  %v6656_v50 = vadd.f32 %v6605_v25, %v6246_v4  ;;  %v6648_v51 = vpop.f32.mrf.mxu0  ;;  %v6690_v1 = vmax.f32 %v6682_v55, 0.0 }
 0x604   : > { %v6687_v42 = vadd.f32 %v6672_v14, %v6657_v16  ;;  %v6658_v38 = vadd.f32 %v6648_v51, %v6248_v36  ;;  %v6692_v43 = vmax.f32 %v6684_v61, 0.0 }
 0x605   : > { %v6686_v40 = vadd.f32 %v6668_v12, %v6656_v50  ;;  %v6693_v5 = vmax.f32 %v6685_v35, 0.0 }
 0x606   : > { %v6688_v9 = vadd.f32 %v6676_v32, %v6658_v38  ;;  %v6695_v37 = vmax.f32 %v6687_v42, 0.0 }
 0x607   : > { %v6694_v0 = vmax.f32 %v6686_v40, 0.0  ;;  %v6697_v11 = vpack.c.bf16 %v6693_v5, %v6689_v57 }
 0x608   : > { %v6696_v21 = vmax.f32 %v6688_v9, 0.0  ;;  %v6699_v49 = vpack.c.bf16 %v6695_v37, %v6691_v59 }
 0x609   : > { %v6698_v52 = vpack.c.bf16 %v6694_v0, %v6690_v1 }
 0x60a   : > { %v6700_v47 = vpack.c.bf16 %v6696_v21, %v6692_v43 }
 0x60b   : > { %7000 = vmatprep.mubr.bf16.mxu1 %v6698_v52 }
 0x60c   : > { %7939 = vmatprep.mubr.msk.bf16.mxu0 %vm6960_vm9, %v6700_v47  ;;  %7001 = vmatmul.mubr.bf16.vlgmr.msra.gmra.mxu1 %v6697_v11 }
 0x60d   : > { %7042 = vmatmul.mubr.bf16.vlgmr.msra.gmra.mxu0 %v6699_v49 }
 0x6cc   : > { %v7959_v33 = vpop.f32.mrf.mxu1 }
 0x6cd   : > { %v7981_v19 = vpop.f32.mrf.mxu0 }
 0x6ce   : > { %v7960_v3 = vpop.f32.mrf.mxu1 }
 0x6cf   : > { %v7961_v60 = vadd.f32 %v7960_v3, %v7959_v33  ;;  %v7982_v23 = vpop.f32.mrf.mxu0 }
 0x6d0   : > { %v7962_v30 = vpop.f32.mrf.mxu1  ;;  %v7983_v45 = vadd.f32 %v7982_v23, %v7981_v19 }
 0x6d1   : > { %v7003_v24 = vadd.f32 %v7961_v60, %v7906_v39  ;;  %v7984_v48 = vpop.f32.mrf.mxu0 }
 0x6d2   : > { %v7963_v17 = vpop.f32.mrf.mxu1 }
 0x6d3   : > { %v7964_v26 = vadd.f32 %v7963_v17, %v7962_v30  ;;  %v7985_v12 = vpop.f32.mrf.mxu0  ;;  %v7044_v8 = vadd.f32 %v7983_v45, %v7003_v24 }
 0x6d4   : > { %v7986_v63 = vadd.f32 %v7985_v12, %v7984_v48 }
 0x6d5   : > { %v7006_v28 = vadd.f32 %v7964_v26, %v7906_v39  ;;  %7050 = vmax.xlane.f32.xlu0 %v7044_v8 }
 0x6d7   : > { %v7047_v15 = vadd.f32 %v7986_v63, %v7006_v28 }
 0x6d9   : > { %7052 = vmax.xlane.f32.xlu1 %v7047_v15 }
 0x75e   : > { %v7051_v10 = vpop.xlane.xlu0 %7050 }
 0x75f   : > { %v7054_v6 = vsub.f32 %v7044_v8, %v7051_v10 }
 0x761   : > { %v7056_v32 = vmul.f32 1.442695, %v7054_v6 }
 0x762   : > { %v7053_v7 = vpop.xlane.xlu1 %7052 }
 0x763   : > { %9015 = vpow2.f32 %v7056_v32  ;;  %v7055_v2 = vsub.f32 %v7047_v15, %v7053_v7 }
 0x765   : > { %v7058_v13 = vmul.f32 1.442695, %v7055_v2 }
 0x767   : > { %9017 = vpow2.f32 %v7058_v13 }
 0x770   : > { %v9016_v34 = vpop.eup %9015 }
 0x771   : > { %7060 = vadd.xlane.f32.xlu0 %v9016_v34 }
 0x774   : > { %v9018_v56 = vpop.eup %9017 }
 0x775   : > { %7062 = vadd.xlane.f32.xlu0 %v9018_v56 }
 0x7fa   : > { %v7061_v27 = vpop.xlane.xlu0 %7060 }
 0x7fb   : > { %9019 = vlog2.f32 %v7061_v27 }
 0x7fe   : > { %v7063_v29 = vpop.xlane.xlu0 %7062 }
 0x7ff   : > { %9021 = vlog2.f32 %v7063_v29 }
 0x808   : > { %v9020_v18 = vpop.eup %9019 }
 0x809   : > { %v7065_v31 = vmul.f32 0.6931472, %v9020_v18 }
 0x80b   : > { %v7068_v41 = vsub.f32 %v7054_v6, %v7065_v31 }
 0x80c   : > { %v9022_v22 = vpop.eup %9021 }
 0x80d   : > { %7070 = vst [vmem:[%s691_s28] sm:$0xff] %v7068_v41  ;;  %v7067_v20 = vmul.f32 0.6931472, %v9022_v22 }
 0x80f   : > { %v7069_v44 = vsub.f32 %v7055_v2, %v7067_v20 }
 0x811   : > { %7071 = vst [vmem:[%s691_s28 + $0x8] sm:$0xff] %v7069_v44 }
 0x812 PF: > { %p20_p11 = scmp.ge.s32.totalorder %s9351_s13, 4   ;;  %s10527_s30 = smov %s9260_s10 }
 0x813   : > { %s10528_s10 = smov %s9361_s16  ;;  %s10529_s11 = smov %s9351_s13 }
 0x814   :  { %22 = sbr.rel (!%p20_p11) target bundleno = 5 (0x5), region = 170 }
 0x819   :  { %7094 = vsyncpa [#allocation4], 1 }
 0x81a   :  { %7096 = vsyncpa [#allocation4 + $0x1], 1 }
 0x81b   :  { %7097 = vsyncpa [#allocation6], 1 }
 0x81c   :  { %7098 = vsyncpa [#allocation9], 1 }
 0x81d   :  { %7099 = vsyncpa [#allocation12], 1 }

</bundles_post_ra>
